<compile_context>
chip_gen: v5e
topology: v5e:2x2
jax: 0.10.0
libtpu: 0.0.40
codegen_flags: <defaults>
</compile_context>

<pallas_src>
import functools
import math

import jax
import jax.numpy as jnp
from jax.experimental import pallas as pl
from jax.experimental.pallas import tpu as pltpu

BN_EPS = 1e-5


def _round_up(x, m):
    return (x + m - 1) // m * m


def gclstm_kernel(adj_ref, x_ref, hx_ref, cx_ref, gw_ref, wcat_ref, bcat_ref,
                  hy_ref, cy_ref, ax_acc):
    """Grid = (row tiles i, adj-column / reduction tiles k)."""
    k = pl.program_id(1)

    @pl.when(k == 0)
    def _():
        ax_acc[...] = jnp.zeros_like(ax_acc)

    # (adj @ x) accumulated over adj-column tiles: bf16 MXU, fp32 accumulate.
    ax_acc[...] += jnp.dot(adj_ref[...], x_ref[...],
                           preferred_element_type=jnp.float32)

    @pl.when(k == pl.num_programs(1) - 1)
    def _():
        H = hx_ref.shape[-1]
        # Graph conv reassociated: xg = (adj @ x) @ gcn_weight.
        xg = jnp.dot(ax_acc[...].astype(jnp.bfloat16), gw_ref[...],
                     preferred_element_type=jnp.float32)
        xg = jnp.maximum(xg, 0.0)
        # TODO(synk): F.dropout is identity here (inference semantics, training=False);
        # training-mode dropout would need PyTorch-matching RNG.
        # Regularization bias + eval-mode BatchNorm are folded into wcat/bcat
        # in the wrapper (_fold_params), so only the packed gate matmul remains.
        cat = jnp.concatenate([xg.astype(jnp.bfloat16), hx_ref[...]],
                              axis=-1)                         # (tm, 2H) bf16
        gates = jnp.dot(cat, wcat_ref[...],
                        preferred_element_type=jnp.float32) + bcat_ref[...]
        ingate = jax.nn.sigmoid(gates[:, 0 * H:1 * H])
        forgetgate = jax.nn.sigmoid(gates[:, 1 * H:2 * H])
        cellgate = jnp.tanh(gates[:, 2 * H:3 * H])
        outgate = jax.nn.sigmoid(gates[:, 3 * H:4 * H])
        cy = cx_ref[...] * forgetgate + ingate * cellgate
        hy_ref[...] = outgate * jnp.tanh(cy)
        cy_ref[...] = cy


def _fold_params(p):
    """Fold relu-bias + eval-mode BatchNorm (running_mean=0, running_var=1)
    into the x2h weights/bias and pack both gate matmuls into one (2H,4H)
    matrix.  Done in fp32, then MXU operands cast to bf16."""
    scale = p["bn_gamma"] / jnp.sqrt(jnp.float32(1.0 + BN_EPS))      # (H,)
    wx_eff = scale[:, None] * p["w_x2h"]                             # (H, 4H)
    b_eff = ((p["bias"] * scale + p["bn_beta"]) @ p["w_x2h"]
             + p["b_x2h"] + p["b_h2h"])                              # (4H,)
    wcat = jnp.concatenate([wx_eff, p["w_h2h"]], axis=0)             # (2H, 4H)
    return (p["gcn_weight"].astype(jnp.bfloat16),
            wcat.astype(jnp.bfloat16),
            b_eff.reshape(1, -1).astype(jnp.float32))


@functools.partial(jax.jit, static_argnames=("tm", "tk"))
def gclstm_cell(x, hx, cx, adj, params, *, tm=256, tk=512):
    """Fused GCLSTMCell forward. Returns (hy, cy)."""
    N, H = hx.shape
    I = x.shape[-1]

    # Shrink tiles for small problems, then pad N so tiles divide evenly.
    n128 = _round_up(N, 128)
    tm = min(tm, n128)
    tk = min(tk, n128)
    Np = _round_up(N, math.lcm(tm, tk))
    pad = Np - N

    adj_p = jnp.pad(adj, ((0, pad), (0, pad))).astype(jnp.bfloat16)
    x_p = jnp.pad(x, ((0, pad), (0, 0))).astype(jnp.bfloat16)
    hx_p = jnp.pad(hx, ((0, pad), (0, 0))).astype(jnp.bfloat16)
    cx_p = jnp.pad(cx, ((0, pad), (0, 0))).astype(jnp.float32)

    gw, wcat, bcat = _fold_params(params)

    grid = (Np // tm, Np // tk)
    out_shape = (jax.ShapeDtypeStruct((Np, H), jnp.float32),
                 jax.ShapeDtypeStruct((Np, H), jnp.float32))

    hy, cy = pl.pallas_call(
        gclstm_kernel,
        out_shape=out_shape,
        grid_spec=pltpu.PrefetchScalarGridSpec(
            num_scalar_prefetch=0,
            grid=grid,
            in_specs=[
                pl.BlockSpec((tm, tk), lambda i, k: (i, k)),        # adj tile
                pl.BlockSpec((tk, I), lambda i, k: (k, 0)),         # x rows
                pl.BlockSpec((tm, H), lambda i, k: (i, 0)),         # hx rows
                pl.BlockSpec((tm, H), lambda i, k: (i, 0)),         # cx rows
                pl.BlockSpec((I, H), lambda i, k: (0, 0)),          # gcn weight
                pl.BlockSpec((2 * H, 4 * H), lambda i, k: (0, 0)),  # packed W
                pl.BlockSpec((1, 4 * H), lambda i, k: (0, 0)),      # packed b
            ],
            out_specs=(pl.BlockSpec((tm, H), lambda i, k: (i, 0)),
                       pl.BlockSpec((tm, H), lambda i, k: (i, 0))),
            scratch_shapes=[pltpu.VMEM((tm, I), jnp.float32)],      # adj@x acc
        ),
        compiler_params=pltpu.CompilerParams(
            dimension_semantics=("parallel", "arbitrary"),
            vmem_limit_bytes=32 * 1024 * 1024),
    )(adj_p, x_p, hx_p, cx_p, gw, wcat, bcat)

    return hy[:N], cy[:N]


def init_params(key, input_size, hidden_size):
    """Deterministic init mirroring reset_parameters(): uniform(-std, std)."""
    std = 1.0 / math.sqrt(hidden_size)
    ks = jax.random.split(key, 8)

    def u(k, shape):
        return jax.random.uniform(k, shape, jnp.float32, -std, std)

    return dict(
        gcn_weight=u(ks[0], (input_size, hidden_size)),
        bias=u(ks[1], (hidden_size,)),
        bn_gamma=u(ks[2], (hidden_size,)),
        bn_beta=u(ks[3], (hidden_size,)),
        # nn.Linear stores (out, in); we keep the transposed (in, out) form.
        w_x2h=u(ks[4], (hidden_size, 4 * hidden_size)),
        b_x2h=u(ks[5], (4 * hidden_size,)),
        w_h2h=u(ks[6], (hidden_size, 4 * hidden_size)),
        b_h2h=u(ks[7], (4 * hidden_size,)),
    )


def gclstm_reference(x, hx, cx, adj, p):
    """Pure-JAX fp32 reference (un-folded, matches the PyTorch eval forward)."""
    H = hx.shape[-1]
    support = x @ p["gcn_weight"]
    xg = adj @ support
    xg = jnp.maximum(xg, 0.0)
    xg = xg + p["bias"]
    xg = xg * (p["bn_gamma"] / jnp.sqrt(1.0 + BN_EPS)) + p["bn_beta"]
    gates = xg @ p["w_x2h"] + p["b_x2h"] + hx @ p["w_h2h"] + p["b_h2h"]
    i = jax.nn.sigmoid(gates[:, 0 * H:1 * H])
    f = jax.nn.sigmoid(gates[:, 1 * H:2 * H])
    g = jnp.tanh(gates[:, 2 * H:3 * H])
    o = jax.nn.sigmoid(gates[:, 3 * H:4 * H])
    cy = cx * f + i * g
    hy = o * jnp.tanh(cy)
    return hy, cy


if __name__ == "__main__":
    batch, num_nodes = 2, 144
    N = batch * num_nodes          # 288 rows -> padded to 384, grid (3, 3)
    input_size = 16
    hidden_size = 128

    key = jax.random.PRNGKey(0)
    k_x, k_h, k_c, k_a, k_p = jax.random.split(key, 5)

    x = jax.random.normal(k_x, (N, input_size), jnp.float32)
    hx = jax.random.normal(k_h, (N, hidden_size), jnp.float32)
    cx = jax.random.normal(k_c, (N, hidden_size), jnp.float32)

    # Row-normalized non-negative adjacency (module expects a normalized adj).
    adj_raw = jnp.abs(jax.random.normal(k_a, (N, N), jnp.float32))
    adj = adj_raw / jnp.sum(adj_raw, axis=1, keepdims=True)

    params = init_params(k_p, input_size, hidden_size)

    hy, cy = gclstm_cell(x, hx, cx, adj, params, tm=128, tk=128)
    jax.block_until_ready((hy, cy))

    hy_ref, cy_ref = gclstm_reference(x, hx, cx, adj, params)
    assert hy.shape == (N, hidden_size) and cy.shape == (N, hidden_size)
    # bf16 MXU operands -> relaxed tolerance vs. the fp32 reference.
    assert jnp.allclose(hy, hy_ref, atol=2e-2, rtol=2e-2)
    assert jnp.allclose(cy, cy_ref, atol=2e-2, rtol=2e-2)

    print("KERNEL_OK")
</pallas_src>

<mosaic_0001>
module attributes {stable_mosaic.version = 11 : i64} {
  func.func @gclstm_kernel(%arg0: i32, %arg1: i32, %arg2: memref<128x128xbf16, #tpu.memory_space<vmem>>, %arg3: memref<128x16xbf16, #tpu.memory_space<vmem>>, %arg4: memref<128x128xbf16, #tpu.memory_space<vmem>>, %arg5: memref<128x128xf32, #tpu.memory_space<vmem>>, %arg6: memref<16x128xbf16, #tpu.memory_space<vmem>>, %arg7: memref<256x512xbf16, #tpu.memory_space<vmem>>, %arg8: memref<1x512xf32, #tpu.memory_space<vmem>>, %arg9: memref<128x128xf32, #tpu.memory_space<vmem>>, %arg10: memref<128x128xf32, #tpu.memory_space<vmem>>, %arg11: memref<128x16xf32, #tpu.memory_space<vmem>>) attributes {dimension_semantics = [#tpu.dimension_semantics<parallel>, #tpu.dimension_semantics<arbitrary>], iteration_bounds = array<i64: 3, 3>, scalar_prefetch = 0 : i64, scratch_operands = 1 : i64, tpu.core_type = #tpu.core_type<tc>, window_params = [{transform_indices = @transform_0, window_bounds = array<i64: 128, 128>}, {transform_indices = @transform_1, window_bounds = array<i64: 128, 16>}, {transform_indices = @transform_2, window_bounds = array<i64: 128, 128>}, {transform_indices = @transform_3, window_bounds = array<i64: 128, 128>}, {pipeline_mode = #tpu.pipeline_mode<synchronous>, transform_indices = @transform_4, window_bounds = array<i64: 16, 128>}, {pipeline_mode = #tpu.pipeline_mode<synchronous>, transform_indices = @transform_5, window_bounds = array<i64: 256, 512>}, {pipeline_mode = #tpu.pipeline_mode<synchronous>, transform_indices = @transform_6, window_bounds = array<i64: 1, 512>}, {transform_indices = @transform_7, window_bounds = array<i64: 128, 128>}, {transform_indices = @transform_8, window_bounds = array<i64: 128, 128>}]} {
    %c0_i32 = arith.constant 0 : i32
    %0 = arith.cmpi eq, %arg1, %c0_i32 : i32
    %1 = arith.extui %0 : i1 to i32
    %c0_i32_0 = arith.constant 0 : i32
    %2 = arith.cmpi ne, %1, %c0_i32_0 : i32
    scf.if %2 {
      %cst_9 = arith.constant 0.000000e+00 : f32
      %12 = vector.broadcast %cst_9 : f32 to vector<128x16xf32>
      %c0_10 = arith.constant 0 : index
      %c0_11 = arith.constant 0 : index
      %13 = vector.load %arg11[%c0_10, %c0_11] : memref<128x16xf32, #tpu.memory_space<vmem>>, vector<128x16xf32>
      tpu.vector_store %arg11[%c0_10, %c0_11], %12 {strides = array<i32>} : memref<128x16xf32, #tpu.memory_space<vmem>>, vector<128x16xf32>,
    } else {
    }
    %c0 = arith.constant 0 : index
    %c0_1 = arith.constant 0 : index
    %3 = vector.load %arg11[%c0, %c0_1] : memref<128x16xf32, #tpu.memory_space<vmem>>, vector<128x16xf32>
    %c0_2 = arith.constant 0 : index
    %c0_3 = arith.constant 0 : index
    %4 = vector.load %arg2[%c0_2, %c0_3] : memref<128x128xbf16, #tpu.memory_space<vmem>>, vector<128x128xbf16>
    %c0_4 = arith.constant 0 : index
    %c0_5 = arith.constant 0 : index
    %5 = vector.load %arg3[%c0_4, %c0_5] : memref<128x16xbf16, #tpu.memory_space<vmem>>, vector<128x16xbf16>
    %cst = arith.constant dense<0.000000e+00> : vector<128x16xf32>
    %6 = tpu.matmul %4, %5, %cst {dimension_numbers = #tpu.dot_dimension_numbers<[1], [0], [0], [1], [0, 0, 1, 1], [], []>} : vector<128x128xbf16>, vector<128x16xbf16>, vector<128x16xf32> -> vector<128x16xf32>
    %7 = arith.addf %3, %6 : vector<128x16xf32>
    %c0_6 = arith.constant 0 : index
    %c0_7 = arith.constant 0 : index
    %8 = vector.load %arg11[%c0_6, %c0_7] : memref<128x16xf32, #tpu.memory_space<vmem>>, vector<128x16xf32>
    tpu.vector_store %arg11[%c0_6, %c0_7], %7 {strides = array<i32>} : memref<128x16xf32, #tpu.memory_space<vmem>>, vector<128x16xf32>,
    %c2_i32 = arith.constant 2 : i32
    %9 = arith.cmpi eq, %arg1, %c2_i32 : i32
    %10 = arith.extui %9 : i1 to i32
    %c0_i32_8 = arith.constant 0 : i32
    %11 = arith.cmpi ne, %10, %c0_i32_8 : i32
    scf.if %11 {
      %c0_9 = arith.constant 0 : index
      %c0_10 = arith.constant 0 : index
      %12 = vector.load %arg11[%c0_9, %c0_10] : memref<128x16xf32, #tpu.memory_space<vmem>>, vector<128x16xf32>
      %13 = arith.truncf %12 : vector<128x16xf32> to vector<128x16xbf16>
      %c0_11 = arith.constant 0 : index
      %c0_12 = arith.constant 0 : index
      %14 = vector.load %arg6[%c0_11, %c0_12] : memref<16x128xbf16, #tpu.memory_space<vmem>>, vector<16x128xbf16>
      %cst_13 = arith.constant dense<0.000000e+00> : vector<128x128xf32>
      %15 = tpu.matmul %13, %14, %cst_13 {dimension_numbers = #tpu.dot_dimension_numbers<[1], [0], [0], [1], [0, 0, 1, 1], [], []>} : vector<128x16xbf16>, vector<16x128xbf16>, vector<128x128xf32> -> vector<128x128xf32>
      %cst_14 = arith.constant 0.000000e+00 : f32
      %16 = vector.broadcast %cst_14 : f32 to vector<128x128xf32>
      %17 = arith.maximumf %15, %16 : vector<128x128xf32>
      %18 = arith.truncf %17 : vector<128x128xf32> to vector<128x128xbf16>
      %c0_15 = arith.constant 0 : index
      %c0_16 = arith.constant 0 : index
      %19 = vector.load %arg4[%c0_15, %c0_16] : memref<128x128xbf16, #tpu.memory_space<vmem>>, vector<128x128xbf16>
      %20 = tpu.concatenate %18, %19 in 1 : vector<128x128xbf16>, vector<128x128xbf16> -> vector<128x256xbf16>
      %c0_17 = arith.constant 0 : index
      %c0_18 = arith.constant 0 : index
      %21 = vector.load %arg7[%c0_17, %c0_18] : memref<256x512xbf16, #tpu.memory_space<vmem>>, vector<256x512xbf16>
      %cst_19 = arith.constant dense<0.000000e+00> : vector<128x512xf32>
      %22 = tpu.matmul %20, %21, %cst_19 {dimension_numbers = #tpu.dot_dimension_numbers<[1], [0], [0], [1], [0, 0, 1, 1], [], []>} : vector<128x256xbf16>, vector<256x512xbf16>, vector<128x512xf32> -> vector<128x512xf32>
      %c0_20 = arith.constant 0 : index
      %c0_21 = arith.constant 0 : index
      %23 = vector.load %arg8[%c0_20, %c0_21] : memref<1x512xf32, #tpu.memory_space<vmem>>, vector<1x512xf32>
      %24 = vector.broadcast %23 : vector<1x512xf32> to vector<128x512xf32>
      %25 = arith.addf %22, %24 : vector<128x512xf32>
      %26 = vector.extract_strided_slice %25 {offsets = [0, 0], sizes = [128, 128], strides = [1, 1]} : vector<128x512xf32> to vector<128x128xf32>
      %27 = arith.negf %26 : vector<128x128xf32>
      %28 = math.exp %27 : vector<128x128xf32>
      %cst_22 = arith.constant 1.000000e+00 : f32
      %29 = vector.broadcast %cst_22 : f32 to vector<128x128xf32>
      %30 = arith.addf %29, %28 : vector<128x128xf32>
      %31 = arith.divf %29, %30 : vector<128x128xf32>
      %32 = vector.extract_strided_slice %25 {offsets = [0, 128], sizes = [128, 128], strides = [1, 1]} : vector<128x512xf32> to vector<128x128xf32>
      %33 = arith.negf %32 : vector<128x128xf32>
      %34 = math.exp %33 : vector<128x128xf32>
      %cst_23 = arith.constant 1.000000e+00 : f32
      %35 = vector.broadcast %cst_23 : f32 to vector<128x128xf32>
      %36 = arith.addf %35, %34 : vector<128x128xf32>
      %37 = arith.divf %35, %36 : vector<128x128xf32>
      %38 = vector.extract_strided_slice %25 {offsets = [0, 256], sizes = [128, 128], strides = [1, 1]} : vector<128x512xf32> to vector<128x128xf32>
      %39 = math.tanh %38 : vector<128x128xf32>
      %40 = vector.extract_strided_slice %25 {offsets = [0, 384], sizes = [128, 128], strides = [1, 1]} : vector<128x512xf32> to vector<128x128xf32>
      %41 = arith.negf %40 : vector<128x128xf32>
      %42 = math.exp %41 : vector<128x128xf32>
      %cst_24 = arith.constant 1.000000e+00 : f32
      %43 = vector.broadcast %cst_24 : f32 to vector<128x128xf32>
      %44 = arith.addf %43, %42 : vector<128x128xf32>
      %45 = arith.divf %43, %44 : vector<128x128xf32>
      %c0_25 = arith.constant 0 : index
      %c0_26 = arith.constant 0 : index
      %46 = vector.load %arg5[%c0_25, %c0_26] : memref<128x128xf32, #tpu.memory_space<vmem>>, vector<128x128xf32>
      %47 = arith.mulf %46, %37 : vector<128x128xf32>
      %48 = arith.mulf %31, %39 : vector<128x128xf32>
      %49 = arith.addf %47, %48 : vector<128x128xf32>
      %50 = math.tanh %49 : vector<128x128xf32>
      %51 = arith.mulf %45, %50 : vector<128x128xf32>
      %c0_27 = arith.constant 0 : index
      %c0_28 = arith.constant 0 : index
      %52 = vector.load %arg9[%c0_27, %c0_28] : memref<128x128xf32, #tpu.memory_space<vmem>>, vector<128x128xf32>
      tpu.vector_store %arg9[%c0_27, %c0_28], %51 {strides = array<i32>} : memref<128x128xf32, #tpu.memory_space<vmem>>, vector<128x128xf32>,
      %c0_29 = arith.constant 0 : index
      %c0_30 = arith.constant 0 : index
      %53 = vector.load %arg10[%c0_29, %c0_30] : memref<128x128xf32, #tpu.memory_space<vmem>>, vector<128x128xf32>
      tpu.vector_store %arg10[%c0_29, %c0_30], %49 {strides = array<i32>} : memref<128x128xf32, #tpu.memory_space<vmem>>, vector<128x128xf32>,
    } else {
    }
    return
  }
  func.func @transform_0(%arg0: i32, %arg1: i32) -> (i32, i32) {
    %c0_i32 = arith.constant 0 : i32
    return %arg0, %arg1 : i32, i32
  }
  func.func @transform_1(%arg0: i32, %arg1: i32) -> (i32, i32) {
    %c0_i32 = arith.constant 0 : i32
    %c0_i32_0 = arith.constant 0 : i32
    return %arg1, %c0_i32 : i32, i32
  }
  func.func @transform_2(%arg0: i32, %arg1: i32) -> (i32, i32) {
    %c0_i32 = arith.constant 0 : i32
    %c0_i32_0 = arith.constant 0 : i32
    return %arg0, %c0_i32 : i32, i32
  }
  func.func @transform_3(%arg0: i32, %arg1: i32) -> (i32, i32) {
    %c0_i32 = arith.constant 0 : i32
    %c0_i32_0 = arith.constant 0 : i32
    return %arg0, %c0_i32 : i32, i32
  }
  func.func @transform_4(%arg0: i32, %arg1: i32) -> (i32, i32) {
    %c0_i32 = arith.constant 0 : i32
    %c0_i32_0 = arith.constant 0 : i32
    %c0_i32_1 = arith.constant 0 : i32
    return %c0_i32, %c0_i32_0 : i32, i32
  }
  func.func @transform_5(%arg0: i32, %arg1: i32) -> (i32, i32) {
    %c0_i32 = arith.constant 0 : i32
    %c0_i32_0 = arith.constant 0 : i32
    %c0_i32_1 = arith.constant 0 : i32
    return %c0_i32, %c0_i32_0 : i32, i32
  }
  func.func @transform_6(%arg0: i32, %arg1: i32) -> (i32, i32) {
    %c0_i32 = arith.constant 0 : i32
    %c0_i32_0 = arith.constant 0 : i32
    %c0_i32_1 = arith.constant 0 : i32
    return %c0_i32, %c0_i32_0 : i32, i32
  }
  func.func @transform_7(%arg0: i32, %arg1: i32) -> (i32, i32) {
    %c0_i32 = arith.constant 0 : i32
    %c0_i32_0 = arith.constant 0 : i32
    return %arg0, %c0_i32 : i32, i32
  }
  func.func @transform_8(%arg0: i32, %arg1: i32) -> (i32, i32) {
    %c0_i32 = arith.constant 0 : i32
    %c0_i32_0 = arith.constant 0 : i32
    return %arg0, %c0_i32 : i32, i32
  }
}

</mosaic_0001>

<bundles_post_ra>
// kernel: gclstm_cell.1
= control target key start
LH: loop header
LB: loop body
LE: loop exit
PB: predicated region body
PF: predicated region fallthrough
CT: control target
= control target key end

     0   :  { %s6185_s0 = inlined_call_operand.vmem [shape: bf16[384,384], index: 0, kind: input, shape index: {}]   ;;  %s6186_s1 = inlined_call_operand.vmem [shape: bf16[384,16], index: 1, kind: input, shape index: {}]   ;;  %s6187_s2 = inlined_call_operand.vmem [shape: bf16[384,128], index: 2, kind: input, shape index: {}]   ;;  %s6188_s3 = inlined_call_operand.vmem [shape: f32[384,128], index: 3, kind: input, shape index: {}]   ;;  %s6189_s4 = inlined_call_operand.vmem [shape: bf16[16,128], index: 4, kind: input, shape index: {}]   ;;  %s6190_s5 = inlined_call_operand.vmem [shape: bf16[256,512], index: 5, kind: input, shape index: {}]   ;;  %s6191_s6 = inlined_call_operand.vmem [shape: f32[1,512], index: 6, kind: input, shape index: {}]   ;;  %s6192_s7 = inlined_call_operand.vmem [shape: f32[384,128], index: 7, kind: output, shape index: {0}]   ;;  %s6193_s8 = inlined_call_operand.vmem [shape: f32[384,128], index: 8, kind: output, shape index: {1}]  }
   0x1   :  { %6206 = sst [smem:[#allocation16_spill]] %s6185_s0 }
   0x2   :  { %s3966_s27 = smov 0   ;;  %s3968_s28 = smov 0  }
   0x3   :  { %s3970_s29 = smov 0   ;;  %s3972_s30 = smov 0  }
   0x4   :  { %s3974_s9 = smov 0   ;;  %s3976_s10 = smov 0  }
   0x5   :  { %s3978_s11 = smov 0  }
   0x6 LB: > { %s28_s12 = sadd.s32 1, %s3910_s9  ;;  %s31_s13 = sadd.s32 1, %s3914_s10  ;;  %s3918_s11 = sphi %s3978_s11, %s19_s11   ;;  %s3914_s10 = sphi %s3976_s10, %s6354_s10   ;;  %s3910_s9 = sphi %s3974_s9, %s6353_s9   ;;  %s3906_s30 = sphi %s3972_s30, %s6352_s30   ;;  %s3902_s29 = sphi %s3970_s29, %s6351_s29   ;;  %s3898_s28 = sphi %s3968_s28, %s6350_s28   ;;  %s3894_s27 = sphi %s3966_s27, %s6349_s27  }
   0x7   : > { %p29_p0 = scmp.ge.s32.totalorder %s28_s12, 3  ;;  %p47_p1 = scmp.ne.s32.totalorder %s3898_s28, %s3894_s27 }
   0x8   : > { %p48_p2 = scmp.eq.s32.totalorder %s3918_s11, 0  ;;  %s40_s17 = sadd.s32 1, %s3898_s28 }
   0x9   : > { %s6356_s12 = smov (%p29_p0, %s28_s12), 0  ;;  %s6358_s13 = smov (!%p29_p0, %s31_s13), %s3914_s10 }
   0xa   : > { %6207 = sst [smem:[#allocation4_spill]] %s6356_s12  ;;  %p49_p3 = por %p48_p2, %p47_p1 }
   0xb   : > { %p33_p4 = scmp.ge.s32.totalorder %s6358_s13, 3  ;;  %s36_s14 = ssub.s32 %s3910_s9, %s6356_s12 }
   0xc   : > { %p3000_p6 = scmp.ge.s32.totalorder %s3918_s11, 9 }
   0xd   : > { %s6360_s13 = smov (%p33_p4, %s6358_s13), 0 }
   0xe   : > { %6208 = sst [smem:[#allocation5_spill]] %s6360_s13  ;;  %s35_s15 = ssub.s32 %s3914_s10, %s6360_s13 }
   0xf   : > { %s37_s16 = sor.u32 %s36_s14, %s35_s15  ;;  %275 = sbr.rel (%p3000_p6) target bundleno = 46 (0x2e), region = 28 }
  0x10   : > { %p38_p5 = scmp.eq.s32.totalorder %s37_s16, 0 }
  0x12   : > { %s4017_s18 = scalar_select %p38_p5, %s3898_s28, %s40_s17  }
  0x14   : > { %278 = sbr.rel (!%p49_p3) target bundleno = 46 (0x2e), region = 32  ;;  %s280_s19 = sand.u32 (%p49_p3), 1, %s3898_s28  }
  0x15   : > { %s3549_s20 = smul.u32 (%p49_p3), 48, %s3914_s10  ;;  %s3001_s21 = sshll.u32 (%p49_p3), %s280_s19, 6 }
  0x16   : > { %s6209_s0 = sld [smem:[#allocation16_spill]] (%p49_p3)  ;;  %s282_s14 = scalar_lea.vmem (%p49_p3), [#allocation3], %s3001_s21 }
  0x17   : > { %s285_s22 = sadd.s32 (%p49_p3), %s3910_s9, %s3549_s20 }
  0x18   : > { %s3004_s23 = sshll.u32 (%p49_p3), %s285_s22, 2 }
  0x1c   : > { %s4026_s26 = scalar_lea.vmem %s6209_s0, %s3004_s23 }
  0x1d   : > { %v304_v0 = vld [vmem:[%s4026_s26] sm:$0xf]  ;;  %v306_v1 = vld [vmem:[%s4026_s26 + $0xc] sm:$0xf]  ;;  %v308_v2 = vld [vmem:[%s4026_s26 + $0x18] sm:$0xf] }
  0x1e   : > { %305 = vst [vmem:[%s282_s14] sm:$0xf] %v304_v0  ;;  %v310_v3 = vld [vmem:[%s4026_s26 + $0x24] sm:$0xf]  ;;  %v312_v4 = vld [vmem:[%s4026_s26 + $0x30] sm:$0xf] }
  0x1f   : > { %307 = vst [vmem:[%s282_s14 + $0x4] sm:$0xf] %v306_v1  ;;  %v314_v5 = vld [vmem:[%s4026_s26 + $0x3c] sm:$0xf]  ;;  %v316_v6 = vld [vmem:[%s4026_s26 + $0x48] sm:$0xf] }
  0x20   : > { %309 = vst [vmem:[%s282_s14 + $0x8] sm:$0xf] %v308_v2  ;;  %v318_v7 = vld [vmem:[%s4026_s26 + $0x54] sm:$0xf]  ;;  %v320_v8 = vld [vmem:[%s4026_s26 + $0x60] sm:$0xf] }
  0x21   : > { %311 = vst [vmem:[%s282_s14 + $0xc] sm:$0xf] %v310_v3  ;;  %v322_v9 = vld [vmem:[%s4026_s26 + $0x6c] sm:$0xf]  ;;  %v324_v10 = vld [vmem:[%s4026_s26 + $0x78] sm:$0xf] }
  0x22   : > { %313 = vst [vmem:[%s282_s14 + $0x10] sm:$0xf] %v312_v4  ;;  %v326_v11 = vld [vmem:[%s4026_s26 + $0x84] sm:$0xf]  ;;  %v328_v12 = vld [vmem:[%s4026_s26 + $0x90] sm:$0xf] }
  0x23   : > { %315 = vst [vmem:[%s282_s14 + $0x14] sm:$0xf] %v314_v5  ;;  %v330_v13 = vld [vmem:[%s4026_s26 + $0x9c] sm:$0xf]  ;;  %v332_v14 = vld [vmem:[%s4026_s26 + $0xa8] sm:$0xf] }
  0x24   : > { %317 = vst [vmem:[%s282_s14 + $0x18] sm:$0xf] %v316_v6  ;;  %v334_v15 = vld [vmem:[%s4026_s26 + $0xb4] sm:$0xf] }
  0x25   : > { %319 = vst [vmem:[%s282_s14 + $0x1c] sm:$0xf] %v318_v7 }
  0x26   : > { %321 = vst [vmem:[%s282_s14 + $0x20] sm:$0xf] %v320_v8 }
  0x27   : > { %323 = vst [vmem:[%s282_s14 + $0x24] sm:$0xf] %v322_v9 }
  0x28   : > { %325 = vst [vmem:[%s282_s14 + $0x28] sm:$0xf] %v324_v10 }
  0x29   : > { %327 = vst [vmem:[%s282_s14 + $0x2c] sm:$0xf] %v326_v11 }
  0x2a   : > { %329 = vst [vmem:[%s282_s14 + $0x30] sm:$0xf] %v328_v12 }
  0x2b   : > { %331 = vst [vmem:[%s282_s14 + $0x34] sm:$0xf] %v330_v13 }
  0x2c   : > { %333 = vst [vmem:[%s282_s14 + $0x38] sm:$0xf] %v332_v14 }
  0x2d   : > { %335 = vst [vmem:[%s282_s14 + $0x3c] sm:$0xf] %v334_v15 }
  0x2e PF: > { %p3005_p7 = scmp.ge.s32.totalorder %s3918_s11, 1  ;;  %p417_p8 = scmp.lt.s32.totalorder %s3918_s11, 10 }
  0x30   : > { %p418_p9 = pnand %p3005_p7, %p417_p8 }
  0x31   : > { %s424_s15 = sand.u32 (!%p418_p9), 1, %s3894_s27   ;;  %s3007_s16 = sshll.u32 (!%p418_p9), %s3902_s29, 4 }
  0x32   : > { %421 = sbr.rel (%p418_p9) target bundleno = 838 (0x346), region = 85  ;;  %s3006_s17 = sshll.u32 (!%p418_p9), %s424_s15, 6 }
  0x33   : > { %p479_p10 = scmp.lt.s32.totalorder (!%p418_p9), %s3007_s16, 47  ;;  %s3009_s19 = sshll.u32 (!%p418_p9), %s3906_s30, 4 }
  0x34   : > { %p485_p11 = scmp.lt.s32.totalorder (!%p418_p9), %s3009_s19, 47  ;;  %p3017_p12 = scmp.ne.s32.totalorder (!%p418_p9), %s3902_s29, 0 }
  0x37   : > { %s6362_s16 = smov (!%p479_p10, %s3007_s16), 47  ;;  %s6364_s19 = smov (!%p485_p11, %s3009_s19), 47 }
  0x38   : > { %s3008_s20 = sshll.u32 %s6362_s16, 2  ;;  %s3010_s24 = sshll.u32 %s6364_s19, 2 }
  0x39   : > { %s4052_s23 = scalar_lea.vmem %s6186_s1, %s3008_s20  ;;  %s3012_s25 = sshll.u32 %s6364_s19, 3 }
  0x3a   : > { %s4057_s0 = scalar_lea.vmem %s6187_s2, %s3010_s24  ;;  %s4062_s30 = scalar_lea.vmem %s6188_s3, %s3012_s25 }
  0x3b   : > { %s4067_s12 = scalar_lea.vmem %s6192_s7, %s3012_s25  ;;  %s4072_s22 = scalar_lea.vmem %s6193_s8, %s3012_s25 }
  0x3c   : > { %s4074_s19 = scalar_lea.vmem [#allocation3], %s3006_s17  ;;  %512 = sbr.rel (%p3017_p12) target bundleno = 82 (0x52), region = 93 }
  0x41   : > { %vm513_vm0 = vcmask 130048   ;;  %v3920_v16 = vmov 0.0  }
  0x42   : > { %514 = vst.msk [vmem:[#allocation2] sm:$0xff] %vm513_vm0, %v3920_v16 }
  0x43   : > { %515 = vst.msk [vmem:[#allocation2 + $0x8] sm:$0xff] %vm513_vm0, %v3920_v16 }
  0x44   : > { %516 = vst.msk [vmem:[#allocation2 + $0x10] sm:$0xff] %vm513_vm0, %v3920_v16 }
  0x45   : > { %517 = vst.msk [vmem:[#allocation2 + $0x18] sm:$0xff] %vm513_vm0, %v3920_v16 }
  0x46   : > { %518 = vst.msk [vmem:[#allocation2 + $0x20] sm:$0xff] %vm513_vm0, %v3920_v16 }
  0x47   : > { %519 = vst.msk [vmem:[#allocation2 + $0x28] sm:$0xff] %vm513_vm0, %v3920_v16 }
  0x48   : > { %520 = vst.msk [vmem:[#allocation2 + $0x30] sm:$0xff] %vm513_vm0, %v3920_v16 }
  0x49   : > { %521 = vst.msk [vmem:[#allocation2 + $0x38] sm:$0xff] %vm513_vm0, %v3920_v16 }
  0x4a   : > { %522 = vst.msk [vmem:[#allocation2 + $0x40] sm:$0xff] %vm513_vm0, %v3920_v16 }
  0x4b   : > { %523 = vst.msk [vmem:[#allocation2 + $0x48] sm:$0xff] %vm513_vm0, %v3920_v16 }
  0x4c   : > { %524 = vst.msk [vmem:[#allocation2 + $0x50] sm:$0xff] %vm513_vm0, %v3920_v16 }
  0x4d   : > { %525 = vst.msk [vmem:[#allocation2 + $0x58] sm:$0xff] %vm513_vm0, %v3920_v16 }
  0x4e   : > { %526 = vst.msk [vmem:[#allocation2 + $0x60] sm:$0xff] %vm513_vm0, %v3920_v16 }
  0x4f   : > { %527 = vst.msk [vmem:[#allocation2 + $0x68] sm:$0xff] %vm513_vm0, %v3920_v16 }
  0x50   : > { %528 = vst.msk [vmem:[#allocation2 + $0x70] sm:$0xff] %vm513_vm0, %v3920_v16 }
  0x51   : > { %529 = vst.msk [vmem:[#allocation2 + $0x78] sm:$0xff] %vm513_vm0, %v3920_v16 }
  0x52 PF: > { %v3448_v17 = vld [vmem:[%s4052_s23 + $0x38] sm:$0xff]  ;;  %v3447_v18 = vld [vmem:[%s4052_s23 + $0x30] sm:$0xff]  ;;  %v3446_v19 = vld [vmem:[%s4052_s23 + $0x28] sm:$0xff]  ;;  %vm739_vm1 = vcmask 130048   ;;  %p3082_p13 = scmp.ne.s32.totalorder %s3902_s29, 2 }
  0x53   : > { %674 = vmatpush.bf16.msra.mxu0 %v3448_v17  ;;  %3522 = vmatpush.bf16.msra.mxu1 %v3448_v17  ;;  %v3445_v20 = vld [vmem:[%s4052_s23 + $0x20] sm:$0xff]  ;;  %v3444_v21 = vld [vmem:[%s4052_s23 + $0x18] sm:$0xff]  ;;  %v3443_v22 = vld [vmem:[%s4052_s23 + $0x10] sm:$0xff] }
  0x54   : > { %3523 = vmatpush.bf16.msra.mxu2 %v3448_v17  ;;  %3524 = vmatpush.bf16.msra.mxu3 %v3448_v17  ;;  %v3442_v23 = vld [vmem:[%s4052_s23 + $0x8] sm:$0xff]  ;;  %v3441_v24 = vld [vmem:[%s4052_s23] sm:$0xff]  ;;  %v3435_v26 = vld [vmem:[%s4074_s19 + $0x10] sm:$0xff] }
  0x55   : > { %v3433_v25 = vld [vmem:[%s4074_s19] sm:$0xff]  ;;  %v3439_v28 = vld [vmem:[%s4074_s19 + $0x30] sm:$0xff]  ;;  %v3434_v29 = vld [vmem:[%s4074_s19 + $0x8] sm:$0xff] }
  0x56   : > { %v3437_v27 = vld [vmem:[%s4074_s19 + $0x20] sm:$0xff]  ;;  %v3436_v30 = vld [vmem:[%s4074_s19 + $0x18] sm:$0xff]  ;;  %v3438_v31 = vld [vmem:[%s4074_s19 + $0x28] sm:$0xff] }
  0x57   : > { %675 = vmatpush.bf16.msra.mxu0 %v3447_v18  ;;  %3525 = vmatpush.bf16.msra.mxu1 %v3447_v18  ;;  %v3440_v32 = vld [vmem:[%s4074_s19 + $0x38] sm:$0xff]  ;;  %v530_v33 = vld [vmem:[#allocation2] sm:$0xff]  ;;  %v531_v41 = vld [vmem:[#allocation2 + $0x8] sm:$0xff] }
  0x58   : > { %3526 = vmatpush.bf16.msra.mxu2 %v3447_v18  ;;  %3527 = vmatpush.bf16.msra.mxu3 %v3447_v18  ;;  %v534_v34 = vld [vmem:[#allocation2 + $0x20] sm:$0xff]  ;;  %v535_v42 = vld [vmem:[#allocation2 + $0x28] sm:$0xff]  ;;  %v532_v53 = vld [vmem:[#allocation2 + $0x10] sm:$0xff] }
  0x59   : > { %v538_v39 = vld [vmem:[#allocation2 + $0x40] sm:$0xff]  ;;  %v539_v51 = vld [vmem:[#allocation2 + $0x48] sm:$0xff]  ;;  %v536_v54 = vld [vmem:[#allocation2 + $0x30] sm:$0xff] }
  0x5a   : > { %v542_v40 = vld [vmem:[#allocation2 + $0x60] sm:$0xff]  ;;  %v543_v52 = vld [vmem:[#allocation2 + $0x68] sm:$0xff]  ;;  %v540_v63 = vld [vmem:[#allocation2 + $0x50] sm:$0xff] }
  0x5b   : > { %676 = vmatpush.bf16.msra.mxu0 %v3446_v19  ;;  %3528 = vmatpush.bf16.msra.mxu1 %v3446_v19  ;;  %v544_v0 = vld [vmem:[#allocation2 + $0x70] sm:$0xff]  ;;  %v533_v1 = vld [vmem:[#allocation2 + $0x18] sm:$0xff] }
  0x5c   : > { %3529 = vmatpush.bf16.msra.mxu2 %v3446_v19  ;;  %3530 = vmatpush.bf16.msra.mxu3 %v3446_v19  ;;  %v537_v2 = vld [vmem:[#allocation2 + $0x38] sm:$0xff] }
  0x5d   : > { %v541_v11 = vld [vmem:[#allocation2 + $0x58] sm:$0xff] }
  0x5e   : > { %v545_v12 = vld [vmem:[#allocation2 + $0x78] sm:$0xff] }
  0x5f   : > { %677 = vmatpush.bf16.msra.mxu0 %v3445_v20  ;;  %3531 = vmatpush.bf16.msra.mxu1 %v3445_v20 }
  0x60   : > { %3532 = vmatpush.bf16.msra.mxu2 %v3445_v20  ;;  %3533 = vmatpush.bf16.msra.mxu3 %v3445_v20 }
  0x63   : > { %678 = vmatpush.bf16.msra.mxu0 %v3444_v21  ;;  %3534 = vmatpush.bf16.msra.mxu1 %v3444_v21 }
  0x64   : > { %3535 = vmatpush.bf16.msra.mxu2 %v3444_v21  ;;  %3536 = vmatpush.bf16.msra.mxu3 %v3444_v21 }
  0x67   : > { %679 = vmatpush.bf16.msra.mxu0 %v3443_v22  ;;  %3537 = vmatpush.bf16.msra.mxu1 %v3443_v22 }
  0x68   : > { %3538 = vmatpush.bf16.msra.mxu2 %v3443_v22  ;;  %3539 = vmatpush.bf16.msra.mxu3 %v3443_v22 }
  0x6b   : > { %680 = vmatpush.bf16.msra.mxu0 %v3442_v23  ;;  %3540 = vmatpush.bf16.msra.mxu1 %v3442_v23 }
  0x6c   : > { %3541 = vmatpush.bf16.msra.mxu2 %v3442_v23  ;;  %3542 = vmatpush.bf16.msra.mxu3 %v3442_v23 }
  0x6f   : > { %681 = vmatpush.bf16.msra.mxu0 %v3441_v24  ;;  %3543 = vmatpush.bf16.msra.mxu1 %v3441_v24 }
  0x70   : > { %3544 = vmatpush.bf16.msra.mxu2 %v3441_v24  ;;  %3545 = vmatpush.bf16.msra.mxu3 %v3441_v24 }
  0x72   : > { %682 = vmatmul.bf16.vlgmr.msra.gmra.mxu0 %v3433_v25  ;;  %692 = vmatmul.bf16.vlgmr.msra.gmra.mxu1 %v3435_v26 }
  0x73   : > { %702 = vmatmul.bf16.vlgmr.msra.gmra.mxu2 %v3437_v27  ;;  %712 = vmatmul.bf16.vlgmr.msra.gmra.mxu3 %v3439_v28 }
  0x82   : > { %687 = vmatmul.bf16.gmra.mxu0 %v3434_v29  ;;  %697 = vmatmul.bf16.gmra.mxu1 %v3436_v30 }
  0x83   : > { %707 = vmatmul.bf16.gmra.mxu2 %v3438_v31  ;;  %717 = vmatmul.bf16.gmra.mxu3 %v3440_v32 }
  0xef   : > { %v683_v35 = vpop.f32.mrf.mxu0  ;;  %v693_v36 = vpop.f32.mrf.mxu1 }
  0xf0   : > { %v723_v37 = vadd.f32 %v683_v35, %v530_v33  ;;  %v727_v38 = vadd.f32 %v693_v36, %v534_v34 }
  0xf2   : > { %740 = vst.msk [vmem:[#allocation2] sm:$0xff] %vm739_vm1, %v723_v37 }
  0xf3   : > { %744 = vst.msk [vmem:[#allocation2 + $0x20] sm:$0xff] %vm739_vm1, %v727_v38 }
  0xf6   : > { %v703_v43 = vpop.f32.mrf.mxu2  ;;  %v713_v44 = vpop.f32.mrf.mxu3 }
  0xf7   : > { %v731_v45 = vadd.f32 %v703_v43, %v538_v39  ;;  %v735_v46 = vadd.f32 %v713_v44, %v542_v40  ;;  %v685_v47 = vpop.f32.mrf.mxu0  ;;  %v695_v48 = vpop.f32.mrf.mxu1 }
  0xf8   : > { %v724_v49 = vadd.f32 %v685_v47, %v531_v41  ;;  %v728_v50 = vadd.f32 %v695_v48, %v535_v42 }
  0xf9   : > { %748 = vst.msk [vmem:[#allocation2 + $0x40] sm:$0xff] %vm739_vm1, %v731_v45 }
  0xfa   : > { %752 = vst.msk [vmem:[#allocation2 + $0x60] sm:$0xff] %vm739_vm1, %v735_v46 }
  0xfb   : > { %741 = vst.msk [vmem:[#allocation2 + $0x8] sm:$0xff] %vm739_vm1, %v724_v49 }
  0xfc   : > { %745 = vst.msk [vmem:[#allocation2 + $0x28] sm:$0xff] %vm739_vm1, %v728_v50 }
  0xfe   : > { %v705_v55 = vpop.f32.mrf.mxu2  ;;  %v715_v56 = vpop.f32.mrf.mxu3 }
  0xff   : > { %v732_v57 = vadd.f32 %v705_v55, %v539_v51  ;;  %v736_v58 = vadd.f32 %v715_v56, %v543_v52  ;;  %v688_v59 = vpop.f32.mrf.mxu0  ;;  %v698_v60 = vpop.f32.mrf.mxu1 }
 0x100   : > { %v725_v61 = vadd.f32 %v688_v59, %v532_v53  ;;  %v729_v62 = vadd.f32 %v698_v60, %v536_v54 }
 0x101   : > { %749 = vst.msk [vmem:[#allocation2 + $0x48] sm:$0xff] %vm739_vm1, %v732_v57 }
 0x102   : > { %753 = vst.msk [vmem:[#allocation2 + $0x68] sm:$0xff] %vm739_vm1, %v736_v58 }
 0x103   : > { %742 = vst.msk [vmem:[#allocation2 + $0x10] sm:$0xff] %vm739_vm1, %v725_v61 }
 0x104   : > { %746 = vst.msk [vmem:[#allocation2 + $0x30] sm:$0xff] %vm739_vm1, %v729_v62 }
 0x106   : > { %v708_v3 = vpop.f32.mrf.mxu2  ;;  %v718_v4 = vpop.f32.mrf.mxu3 }
 0x107   : > { %v733_v5 = vadd.f32 %v708_v3, %v540_v63  ;;  %v737_v6 = vadd.f32 %v718_v4, %v544_v0  ;;  %v690_v7 = vpop.f32.mrf.mxu0  ;;  %v700_v8 = vpop.f32.mrf.mxu1 }
 0x108   : > { %v726_v9 = vadd.f32 %v690_v7, %v533_v1  ;;  %v730_v10 = vadd.f32 %v700_v8, %v537_v2 }
 0x109   : > { %750 = vst.msk [vmem:[#allocation2 + $0x50] sm:$0xff] %vm739_vm1, %v733_v5 }
 0x10a   : > { %754 = vst.msk [vmem:[#allocation2 + $0x70] sm:$0xff] %vm739_vm1, %v737_v6 }
 0x10b   : > { %743 = vst.msk [vmem:[#allocation2 + $0x18] sm:$0xff] %vm739_vm1, %v726_v9 }
 0x10c   : > { %747 = vst.msk [vmem:[#allocation2 + $0x38] sm:$0xff] %vm739_vm1, %v730_v10 }
 0x10e   : > { %v710_v13 = vpop.f32.mrf.mxu2  ;;  %v720_v14 = vpop.f32.mrf.mxu3  ;;  %759 = sbr.rel (%p3082_p13) target bundleno = 838 (0x346), region = 97 }
 0x10f   : > { %v734_v15 = vadd.f32 %v710_v13, %v541_v11  ;;  %v738_v16 = vadd.f32 %v720_v14, %v545_v12 }
 0x111   : > { %751 = vst.msk [vmem:[#allocation2 + $0x58] sm:$0xff] %vm739_vm1, %v734_v15 }
 0x112   : > { %755 = vst.msk [vmem:[#allocation2 + $0x78] sm:$0xff] %vm739_vm1, %v738_v16 }
 0x113   : > { %v3449_v17 = vld [vmem:[%s6189_s4] sm:$0xff]  ;;  %v761_v19 = vld [vmem:[#allocation2 + $0x8] sm:$0xff]  ;;  %v774_v27 = vld [vmem:[#allocation2 + $0x70] sm:$0xff] }
 0x114   : > { %v760_v18 = vld [vmem:[#allocation2] sm:$0xff]  ;;  %823 = vmatpush.bf16.msra.mxu0 %v3449_v17  ;;  %3546 = vmatpush.bf16.msra.mxu1 %v3449_v17  ;;  %v765_v22 = vld [vmem:[#allocation2 + $0x28] sm:$0xff]  ;;  %v3520_v31 = vld [vmem:[%s6190_s5 + $0x1ec] sm:$0xf0] }
 0x115   : > { %v776_v20 = vpack.c.bf16 %v761_v19, %v760_v18  ;;  %v764_v21 = vld [vmem:[#allocation2 + $0x20] sm:$0xff]  ;;  %3547 = vmatpush.bf16.msra.mxu2 %v3449_v17  ;;  %v769_v25 = vld [vmem:[#allocation2 + $0x48] sm:$0xff]  ;;  %3548 = vmatpush.bf16.msra.mxu3 %v3449_v17  ;;  %v3488_v33 = vld [vmem:[%s6190_s5 + $0xec] sm:$0xf0] }
 0x116   : > { %v778_v23 = vpack.c.bf16 %v765_v22, %v764_v21  ;;  %v768_v24 = vld [vmem:[#allocation2 + $0x40] sm:$0xff]  ;;  %v3516_v37 = vld [vmem:[%s6190_s5 + $0x1cc] sm:$0xf0]  ;;  %v3243_v39 = vld [vmem:[%s6190_s5 + $0xf0] sm:$0xf0] }
 0x117   : > { %v780_v26 = vpack.c.bf16 %v769_v25, %v768_v24  ;;  %3087 = vmatmul.msk.bf16.vlgmr.msra.gmra.mxu0 %vm739_vm1, %v776_v20  ;;  %v3369_v29 = vld [vmem:[%s6190_s5 + $0x1e0] sm:$0xf]  ;;  %v3486_v38 = vld [vmem:[%s6190_s5 + $0xe4] sm:$0xf]  ;;  %v3371_v41 = vld [vmem:[%s6190_s5 + $0x1f0] sm:$0xf0] }
 0x118   : > { %3089 = vmatmul.msk.bf16.vlgmr.msra.gmra.mxu1 %vm739_vm1, %v778_v23  ;;  %v3241_v32 = vld [vmem:[%s6190_s5 + $0xe0] sm:$0xf]  ;;  %v3370_v34 = vor.u32 %v3520_v31, %v3369_v29  ;;  %v3518_v40 = vld [vmem:[%s6190_s5 + $0x1e4] sm:$0xf]  ;;  %v3246_v43 = vor.u32 %v3486_v38, %v3243_v39  ;;  %v3484_v46 = vld [vmem:[%s6190_s5 + $0xcc] sm:$0xf0] }
 0x119   : > { %3091 = vmatmul.msk.bf16.vlgmr.msra.gmra.mxu2 %vm739_vm1, %v780_v26  ;;  %v775_v28 = vld [vmem:[#allocation2 + $0x78] sm:$0xff]  ;;  %v3242_v35 = vor.u32 %v3488_v33, %v3241_v32  ;;  %v3353_v36 = vld [vmem:[%s6190_s5 + $0x1c0] sm:$0xf]  ;;  %v3374_v44 = vor.u32 %v3518_v40, %v3371_v41  ;;  %v3512_v49 = vld [vmem:[%s6190_s5 + $0x1ac] sm:$0xf0] }
 0x11a   : > { %v783_v30 = vpack.c.bf16 %v775_v28, %v774_v27  ;;  %1452 = vmatpush.bf16.msrb.mxu2 %v3370_v34  ;;  %v3354_v42 = vor.u32 %v3516_v37, %v3353_v36  ;;  %v3225_v45 = vld [vmem:[%s6190_s5 + $0xc0] sm:$0xf]  ;;  %v3482_v50 = vld [vmem:[%s6190_s5 + $0xc4] sm:$0xf]  ;;  %v3227_v51 = vld [vmem:[%s6190_s5 + $0xd0] sm:$0xf0]  ;;  %1501 = vmatpush.bf16.msrb.mxu3 %v3246_v43 }
 0x11b   : > { %1403 = vmatpush.bf16.msrb.mxu1 %v3242_v35  ;;  %v3337_v47 = vld [vmem:[%s6190_s5 + $0x1a0] sm:$0xf]  ;;  %v3226_v48 = vor.u32 %v3484_v46, %v3225_v45  ;;  %v762_v52 = vld [vmem:[#allocation2 + $0x10] sm:$0xff]  ;;  %v763_v53 = vld [vmem:[#allocation2 + $0x18] sm:$0xff]  ;;  %1550 = vmatpush.bf16.msrb.mxu0 %v3374_v44  ;;  %v3230_v56 = vor.u32 %v3482_v50, %v3227_v51 }
 0x11c   : > { %3094 = vmatmul.msk.bf16.vlgmr.msra.gmra.mxu3 %vm739_vm1, %v783_v30  ;;  %v766_v54 = vld [vmem:[#allocation2 + $0x30] sm:$0xff]  ;;  %v767_v55 = vld [vmem:[#allocation2 + $0x38] sm:$0xff]  ;;  %v3514_v57 = vld [vmem:[%s6190_s5 + $0x1c4] sm:$0xf]  ;;  %v3338_v0 = vor.u32 %v3512_v49, %v3337_v47  ;;  %v777_v13 = vpack.c.bf16 %v763_v53, %v762_v52 }
 0x11d   : > { %v3355_v58 = vld [vmem:[%s6190_s5 + $0x1d0] sm:$0xf0]  ;;  %v3209_v59 = vld [vmem:[%s6190_s5 + $0xa0] sm:$0xf]  ;;  %v771_v61 = vld [vmem:[#allocation2 + $0x58] sm:$0xff]  ;;  %v779_v14 = vpack.c.bf16 %v767_v55, %v766_v54 }
 0x11e   : > { %v770_v60 = vld [vmem:[#allocation2 + $0x50] sm:$0xff]  ;;  %v3358_v62 = vor.u32 %v3514_v57, %v3355_v58  ;;  %1453 = vmatpush.bf16.msrb.mxu2 %v3354_v42  ;;  %v3478_v2 = vld [vmem:[%s6190_s5 + $0xa4] sm:$0xf]  ;;  %v3193_v6 = vld [vmem:[%s6190_s5 + $0x80] sm:$0xf]  ;;  %1502 = vmatpush.bf16.msrb.mxu3 %v3230_v56 }
 0x11f   : > { %v3480_v63 = vld [vmem:[%s6190_s5 + $0xac] sm:$0xf0]  ;;  %1404 = vmatpush.bf16.msrb.mxu1 %v3226_v48  ;;  %v3211_v3 = vld [vmem:[%s6190_s5 + $0xb0] sm:$0xf0]  ;;  %v3510_v4 = vld [vmem:[%s6190_s5 + $0x1a4] sm:$0xf]  ;;  %v781_v18 = vpack.c.bf16 %v771_v61, %v770_v60 }
 0x120   : > { %v3210_v1 = vor.u32 %v3480_v63, %v3209_v59  ;;  %v3339_v5 = vld [vmem:[%s6190_s5 + $0x1b0] sm:$0xf0]  ;;  %v3476_v7 = vld [vmem:[%s6190_s5 + $0x8c] sm:$0xf0]  ;;  %1551 = vmatpush.bf16.msrb.mxu0 %v3358_v62  ;;  %v3321_v8 = vld [vmem:[%s6190_s5 + $0x180] sm:$0xf]  ;;  %v3214_v10 = vor.u32 %v3478_v2, %v3211_v3 }
 0x121   : > { %v3508_v9 = vld [vmem:[%s6190_s5 + $0x18c] sm:$0xf0]  ;;  %v3342_v11 = vor.u32 %v3510_v4, %v3339_v5  ;;  %v3474_v12 = vld [vmem:[%s6190_s5 + $0x84] sm:$0xf]  ;;  %v3195_v15 = vld [vmem:[%s6190_s5 + $0x90] sm:$0xf0]  ;;  %v3194_v19 = vor.u32 %v3476_v7, %v3193_v6 }
 0x122   : > { %v3506_v16 = vld [vmem:[%s6190_s5 + $0x184] sm:$0xf]  ;;  %v3323_v17 = vld [vmem:[%s6190_s5 + $0x190] sm:$0xf0]  ;;  %1454 = vmatpush.bf16.msrb.mxu2 %v3338_v0  ;;  %v3322_v20 = vor.u32 %v3508_v9, %v3321_v8  ;;  %1503 = vmatpush.bf16.msrb.mxu3 %v3214_v10  ;;  %v3305_v21 = vld [vmem:[%s6190_s5 + $0x160] sm:$0xf]  ;;  %v3198_v23 = vor.u32 %v3474_v12, %v3195_v15 }
 0x123   : > { %1405 = vmatpush.bf16.msrb.mxu1 %v3210_v1  ;;  %v3504_v22 = vld [vmem:[%s6190_s5 + $0x16c] sm:$0xf0]  ;;  %v3326_v24 = vor.u32 %v3506_v16, %v3323_v17  ;;  %v772_v26 = vld [vmem:[#allocation2 + $0x60] sm:$0xff]  ;;  %v773_v27 = vld [vmem:[#allocation2 + $0x68] sm:$0xff] }
 0x124   : > { %1552 = vmatpush.bf16.msrb.mxu0 %v3342_v11  ;;  %v3306_v25 = vor.u32 %v3504_v22, %v3305_v21  ;;  %v782_v28 = vpack.c.bf16 %v773_v27, %v772_v26  ;;  %v3177_v29 = vld [vmem:[%s6190_s5 + $0x60] sm:$0xf]  ;;  %v3472_v30 = vld [vmem:[%s6190_s5 + $0x6c] sm:$0xf0]  ;;  %v3470_v34 = vld [vmem:[%s6190_s5 + $0x64] sm:$0xf] }
 0x125   : > { %v3289_v31 = vld [vmem:[%s6190_s5 + $0x140] sm:$0xf]  ;;  %v3178_v32 = vor.u32 %v3472_v30, %v3177_v29  ;;  %v3500_v33 = vld [vmem:[%s6190_s5 + $0x14c] sm:$0xf0]  ;;  %v3179_v35 = vld [vmem:[%s6190_s5 + $0x70] sm:$0xf0] }
 0x126   : > { %1455 = vmatpush.bf16.msrb.mxu2 %v3322_v20  ;;  %1504 = vmatpush.bf16.msrb.mxu3 %v3198_v23  ;;  %v3290_v36 = vor.u32 %v3500_v33, %v3289_v31  ;;  %v3182_v37 = vor.u32 %v3470_v34, %v3179_v35  ;;  %v3502_v38 = vld [vmem:[%s6190_s5 + $0x164] sm:$0xf]  ;;  %v3307_v39 = vld [vmem:[%s6190_s5 + $0x170] sm:$0xf0]  ;;  %v3161_v41 = vld [vmem:[%s6190_s5 + $0x40] sm:$0xf] }
 0x127   : > { %3088 = vmatmul.msk.bf16.gmra.mxu0 %vm739_vm1, %v777_v13  ;;  %1406 = vmatpush.bf16.msrb.mxu1 %v3194_v19  ;;  %v3310_v40 = vor.u32 %v3502_v38, %v3307_v39  ;;  %v3468_v42 = vld [vmem:[%s6190_s5 + $0x4c] sm:$0xf0]  ;;  %v3273_v43 = vld [vmem:[%s6190_s5 + $0x120] sm:$0xf]  ;;  %v3466_v46 = vld [vmem:[%s6190_s5 + $0x44] sm:$0xf] }
 0x128   : > { %3090 = vmatmul.msk.bf16.gmra.mxu1 %vm739_vm1, %v779_v14  ;;  %1553 = vmatpush.bf16.msrb.mxu0 %v3326_v24  ;;  %v3162_v44 = vor.u32 %v3468_v42, %v3161_v41  ;;  %v3496_v45 = vld [vmem:[%s6190_s5 + $0x12c] sm:$0xf0]  ;;  %v3163_v47 = vld [vmem:[%s6190_s5 + $0x50] sm:$0xf0]  ;;  %v3498_v50 = vld [vmem:[%s6190_s5 + $0x144] sm:$0xf] }
 0x129   : > { %3092 = vmatmul.msk.bf16.gmra.mxu2 %vm739_vm1, %v781_v18  ;;  %v3274_v48 = vor.u32 %v3496_v45, %v3273_v43  ;;  %v3166_v49 = vor.u32 %v3466_v46, %v3163_v47  ;;  %v3291_v51 = vld [vmem:[%s6190_s5 + $0x150] sm:$0xf0]  ;;  %v3145_v53 = vld [vmem:[%s6190_s5 + $0x20] sm:$0xf]  ;;  %v3464_v54 = vld [vmem:[%s6190_s5 + $0x2c] sm:$0xf0] }
 0x12a   : > { %1456 = vmatpush.bf16.msrb.mxu2 %v3306_v25  ;;  %1505 = vmatpush.bf16.msrb.mxu3 %v3182_v37  ;;  %v3294_v52 = vor.u32 %v3498_v50, %v3291_v51  ;;  %v3257_v55 = vld [vmem:[%s6190_s5 + $0x100] sm:$0xf]  ;;  %v3146_v56 = vor.u32 %v3464_v54, %v3145_v53  ;;  %v3492_v57 = vld [vmem:[%s6190_s5 + $0x10c] sm:$0xf0]  ;;  %v3462_v58 = vld [vmem:[%s6190_s5 + $0x24] sm:$0xf] }
 0x12b   : > { %1407 = vmatpush.bf16.msrb.mxu1 %v3178_v32  ;;  %v3147_v59 = vld [vmem:[%s6190_s5 + $0x30] sm:$0xf0]  ;;  %v3258_v60 = vor.u32 %v3492_v57, %v3257_v55  ;;  %v3494_v62 = vld [vmem:[%s6190_s5 + $0x124] sm:$0xf]  ;;  %v3129_v2 = vld [vmem:[%s6190_s5] sm:$0xf] }
 0x12c   : > { %1554 = vmatpush.bf16.msrb.mxu0 %v3310_v40  ;;  %v3150_v61 = vor.u32 %v3462_v58, %v3147_v59  ;;  %v3275_v63 = vld [vmem:[%s6190_s5 + $0x130] sm:$0xf0]  ;;  %v4312_v1 = vld [vmem:[%s4057_s0] sm:$0xff]  ;;  %v3460_v3 = vld [vmem:[%s6190_s5 + $0xc] sm:$0xf0] }
 0x12d   : > { %v3278_v0 = vor.u32 %v3494_v62, %v3275_v63  ;;  %v3130_v4 = vor.u32 %v3460_v3, %v3129_v2  ;;  %v3458_v5 = vld [vmem:[%s6190_s5 + $0x4] sm:$0xf]  ;;  %v3131_v6 = vld [vmem:[%s6190_s5 + $0x10] sm:$0xf0]  ;;  %v3487_v11 = vld [vmem:[%s6190_s5 + $0xec] sm:$0xf] }
 0x12e   : > { %1457 = vmatpush.bf16.msrb.mxu2 %v3290_v36  ;;  %1506 = vmatpush.bf16.msrb.mxu3 %v3166_v49  ;;  %v3490_v7 = vld [vmem:[%s6190_s5 + $0x104] sm:$0xf]  ;;  %v3134_v8 = vor.u32 %v3458_v5, %v3131_v6  ;;  %v3259_v9 = vld [vmem:[%s6190_s5 + $0x110] sm:$0xf0]  ;;  %v3251_v12 = vld [vmem:[%s6190_s5 + $0xf8] sm:$0xf0] }
 0x12f   : > { %1408 = vmatpush.bf16.msrb.mxu1 %v3162_v44  ;;  %v3262_v10 = vor.u32 %v3490_v7, %v3259_v9  ;;  %v3254_v13 = vor.u32 %v3487_v11, %v3251_v12  ;;  %v4341_v14 = vld [vmem:[%s4057_s0 + $0x8] sm:$0xff]  ;;  %v3379_v16 = vld [vmem:[%s6190_s5 + $0x1f8] sm:$0xf0]  ;;  %v3521_v20 = vld [vmem:[%s6190_s5 + $0x1f4] sm:$0xf0] }
 0x130   : > { %1555 = vmatpush.bf16.msrb.mxu0 %v3294_v52  ;;  %v3519_v15 = vld [vmem:[%s6190_s5 + $0x1ec] sm:$0xf]  ;;  %v3377_v17 = vld [vmem:[%s6190_s5 + $0x1e8] sm:$0xf]  ;;  %v3489_v23 = vld [vmem:[%s6190_s5 + $0xf4] sm:$0xf0] }
 0x131   : > { %v3382_v19 = vor.u32 %v3519_v15, %v3379_v16  ;;  %v3378_v21 = vor.u32 %v3521_v20, %v3377_v17  ;;  %v3249_v22 = vld [vmem:[%s6190_s5 + $0xe8] sm:$0xf]  ;;  %v3483_v25 = vld [vmem:[%s6190_s5 + $0xcc] sm:$0xf]  ;;  %v3235_v26 = vld [vmem:[%s6190_s5 + $0xd8] sm:$0xf0] }
 0x132   : > { %1458 = vmatpush.bf16.msrb.mxu2 %v3274_v48  ;;  %1507 = vmatpush.bf16.msrb.mxu3 %v3150_v61  ;;  %v3250_v24 = vor.u32 %v3489_v23, %v3249_v22  ;;  %v3515_v27 = vld [vmem:[%s6190_s5 + $0x1cc] sm:$0xf]  ;;  %v3363_v29 = vld [vmem:[%s6190_s5 + $0x1d8] sm:$0xf0]  ;;  %v3361_v30 = vld [vmem:[%s6190_s5 + $0x1c8] sm:$0xf] }
 0x133   : > { %1409 = vmatpush.bf16.msrb.mxu1 %v3146_v56  ;;  %v3366_v31 = vor.u32 %v3515_v27, %v3363_v29  ;;  %v3517_v32 = vld [vmem:[%s6190_s5 + $0x1d4] sm:$0xf0]  ;;  %v4382_v38 = vld [vmem:[%s4057_s0 + $0x10] sm:$0xff]  ;;  %v3233_v45 = vld [vmem:[%s6190_s5 + $0xc8] sm:$0xf] }
 0x134   : > { %1556 = vmatpush.bf16.msrb.mxu0 %v3278_v0  ;;  %v3362_v34 = vor.u32 %v3517_v32, %v3361_v30  ;;  %v3485_v46 = vld [vmem:[%s6190_s5 + $0xd4] sm:$0xf0]  ;;  %v3479_v48 = vld [vmem:[%s6190_s5 + $0xac] sm:$0xf]  ;;  %v3219_v49 = vld [vmem:[%s6190_s5 + $0xb8] sm:$0xf0] }
 0x135   : > { %v3234_v47 = vor.u32 %v3485_v46, %v3233_v45  ;;  %v3222_v50 = vor.u32 %v3479_v48, %v3219_v49  ;;  %v3511_v51 = vld [vmem:[%s6190_s5 + $0x1ac] sm:$0xf]  ;;  %v3347_v52 = vld [vmem:[%s6190_s5 + $0x1b8] sm:$0xf0]  ;;  %v3345_v53 = vld [vmem:[%s6190_s5 + $0x1a8] sm:$0xf] }
 0x136   : > { %1459 = vmatpush.bf16.msrb.mxu2 %v3258_v60  ;;  %1508 = vmatpush.bf16.msrb.mxu3 %v3134_v8  ;;  %v3350_v54 = vor.u32 %v3511_v51, %v3347_v52  ;;  %v3513_v55 = vld [vmem:[%s6190_s5 + $0x1b4] sm:$0xf0]  ;;  %v3475_v6 = vld [vmem:[%s6190_s5 + $0x8c] sm:$0xf]  ;;  %v3329_v15 = vld [vmem:[%s6190_s5 + $0x188] sm:$0xf] }
 0x137   : > { %1410 = vmatpush.bf16.msrb.mxu1 %v3130_v4  ;;  %v3346_v57 = vor.u32 %v3513_v55, %v3345_v53  ;;  %v4415_v61 = vld [vmem:[%s4057_s0 + $0x18] sm:$0xff]  ;;  %v3217_v4 = vld [vmem:[%s6190_s5 + $0xa8] sm:$0xf]  ;;  %v3507_v11 = vld [vmem:[%s6190_s5 + $0x18c] sm:$0xf] }
 0x138   : > { %1557 = vmatpush.bf16.msrb.mxu0 %v3262_v10  ;;  %v3481_v5 = vld [vmem:[%s6190_s5 + $0xb4] sm:$0xf0]  ;;  %v3203_v10 = vld [vmem:[%s6190_s5 + $0x98] sm:$0xf0]  ;;  %v4448_v22 = vld [vmem:[%s4057_s0 + $0x20] sm:$0xff] }
 0x139   : > { %3093 = vmatmul.msk.bf16.gmra.mxu2 %vm739_vm1, %v782_v28  ;;  %v3238_v28 = vor.u32 %v3483_v25, %v3235_v26  ;;  %v3218_v9 = vor.u32 %v3481_v5, %v3217_v4  ;;  %v3206_v12 = vor.u32 %v3475_v6, %v3203_v10  ;;  %v3509_v16 = vld [vmem:[%s6190_s5 + $0x194] sm:$0xf0]  ;;  %v3471_v30 = vld [vmem:[%s6190_s5 + $0x6c] sm:$0xf]  ;;  %v3185_v51 = vld [vmem:[%s6190_s5 + $0x68] sm:$0xf] }
 0x13a   : > { %1697 = vmatpush.bf16.msra.mxu3 %v3254_v13  ;;  %1648 = vmatpush.bf16.msra.mxu2 %v3378_v21  ;;  %v3331_v13 = vld [vmem:[%s6190_s5 + $0x198] sm:$0xf0]  ;;  %v3477_v29 = vld [vmem:[%s6190_s5 + $0x94] sm:$0xf0]  ;;  %v3467_v53 = vld [vmem:[%s6190_s5 + $0x4c] sm:$0xf] }
 0x13b   : > { %1558 = vmatmul.bf16.vlgmr.msrb.gmra.mxu0 %v4312_v1  ;;  %1599 = vmatpush.bf16.msra.mxu1 %v3250_v24  ;;  %v3334_v17 = vor.u32 %v3507_v11, %v3331_v13  ;;  %v3473_v52 = vld [vmem:[%s6190_s5 + $0x74] sm:$0xf0] }
 0x13c   : > { %1746 = vmatpush.bf16.msra.mxu0 %v3382_v19  ;;  %v3469_v13 = vld [vmem:[%s6190_s5 + $0x54] sm:$0xf0] }
 0x13e   : > { %1698 = vmatpush.bf16.msra.mxu3 %v3238_v28  ;;  %1649 = vmatpush.bf16.msra.mxu2 %v3362_v34  ;;  %v3201_v28 = vld [vmem:[%s6190_s5 + $0x88] sm:$0xf]  ;;  %v3187_v34 = vld [vmem:[%s6190_s5 + $0x78] sm:$0xf0] }
 0x13f   : > { %1600 = vmatpush.bf16.msra.mxu1 %v3234_v47  ;;  %v4481_v47 = vld [vmem:[%s4057_s0 + $0x28] sm:$0xff] }
 0x140   : > { %1747 = vmatpush.bf16.msra.mxu0 %v3366_v31 }
 0x142   : > { %1699 = vmatpush.bf16.msra.mxu3 %v3222_v50  ;;  %1650 = vmatpush.bf16.msra.mxu2 %v3346_v57  ;;  %v3186_v57 = vor.u32 %v3473_v52, %v3185_v51  ;;  %v3265_v52 = vld [vmem:[%s6190_s5 + $0x108] sm:$0xf] }
 0x143   : > { %1601 = vmatpush.bf16.msra.mxu1 %v3218_v9 }
 0x144   : > { %1748 = vmatpush.bf16.msra.mxu0 %v3350_v54 }
 0x146   : > { %1700 = vmatpush.bf16.msra.mxu3 %v3206_v12  ;;  %v3169_v12 = vld [vmem:[%s6190_s5 + $0x48] sm:$0xf] }
 0x148   : > { %1749 = vmatpush.bf16.msra.mxu0 %v3334_v17  ;;  %v3155_v17 = vld [vmem:[%s6190_s5 + $0x38] sm:$0xf0] }
 0x149   : > { %1460 = vmatmul.bf16.vlgmr.msrb.gmra.mxu2 %v4312_v1 }
 0x14b   : > { %1563 = vmatmul.bf16.gmra.mxu0 %v4341_v14 }
 0x159   : > { %1465 = vmatmul.bf16.gmra.mxu2 %v4341_v14 }
 0x15b   : > { %1568 = vmatmul.bf16.gmra.mxu0 %v4382_v38 }
 0x169   : > { %1470 = vmatmul.bf16.gmra.mxu2 %v4382_v38 }
 0x16b   : > { %1573 = vmatmul.bf16.gmra.mxu0 %v4415_v61 }
 0x179   : > { %1475 = vmatmul.bf16.gmra.mxu2 %v4415_v61 }
 0x17b   : > { %1578 = vmatmul.bf16.gmra.mxu0 %v4448_v22 }
 0x189   : > { %1480 = vmatmul.bf16.gmra.mxu2 %v4448_v22 }
 0x18b   : > { %1583 = vmatmul.bf16.gmra.mxu0 %v4481_v47 }
 0x194   : > { %v825_v18 = vpop.f32.mrf.mxu0 }
 0x195   : > { %v865_v33 = vmax.f32 %v825_v18, 0.0  ;;  %v835_v44 = vpop.f32.mrf.mxu1  ;;  %v3330_v18 = vor.u32 %v3509_v16, %v3329_v15  ;;  %v3463_v15 = vld [vmem:[%s6190_s5 + $0x2c] sm:$0xf]  ;;  %v3170_v16 = vor.u32 %v3469_v13, %v3169_v12 }
 0x196   : > { %v869_v7 = vmax.f32 %v835_v44, 0.0 }
 0x197   : > { %v881_v36 = vpack.c.bf16 %v865_v33, %v865_v33  ;;  %1651 = vmatpush.bf16.msra.mxu2 %v3330_v18  ;;  %v3202_v33 = vor.u32 %v3477_v29, %v3201_v28  ;;  %v3495_v18 = vld [vmem:[%s6190_s5 + $0x12c] sm:$0xf] }
 0x198   : > { %v885_v20 = vpack.c.bf16 %v869_v7, %v869_v7  ;;  %v4514_v7 = vld [vmem:[%s4057_s0 + $0x30] sm:$0xff] }
 0x199   : > { %v929_v40 = vunpack.c.l.b16 %v881_v36  ;;  %v3190_v36 = vor.u32 %v3471_v30, %v3187_v34  ;;  %1602 = vmatpush.bf16.msra.mxu1 %v3202_v33  ;;  %1485 = vmatmul.bf16.gmra.mxu2 %v4481_v47 }
 0x19a   : > { %v933_v23 = vunpack.c.l.b16 %v885_v20 }
 0x19b   : > { %1701 = vmatpush.bf16.msra.mxu3 %v3190_v36  ;;  %1588 = vmatmul.bf16.gmra.mxu0 %v4514_v7 }
 0x19c   : > { %v827_v35 = vpop.f32.mrf.mxu0  ;;  %v845_v25 = vpop.f32.mrf.mxu2 }
 0x19d   : > { %v866_v37 = vmax.f32 %v827_v35, 0.0  ;;  %v837_v63 = vpop.f32.mrf.mxu1  ;;  %v3503_v35 = vld [vmem:[%s6190_s5 + $0x16c] sm:$0xf]  ;;  %v873_v54 = vmax.f32 %v845_v25, 0.0  ;;  %1603 = vmatpush.bf16.msra.mxu1 %v3186_v57  ;;  %v3281_v25 = vld [vmem:[%s6190_s5 + $0x128] sm:$0xf] }
 0x19e   : > { %v870_v8 = vmax.f32 %v837_v63, 0.0  ;;  %v3297_v63 = vld [vmem:[%s6190_s5 + $0x148] sm:$0xf] }
 0x19f   : > { %v882_v39 = vpack.c.bf16 %v866_v37, %v866_v37  ;;  %v3315_v37 = vld [vmem:[%s6190_s5 + $0x178] sm:$0xf0]  ;;  %v889_v5 = vpack.c.bf16 %v873_v54, %v873_v54 }
 0x1a0   : > { %v886_v21 = vpack.c.bf16 %v870_v8, %v870_v8 }
 0x1a1   : > { %v930_v41 = vunpack.c.l.b16 %v882_v39  ;;  %v3313_v39 = vld [vmem:[%s6190_s5 + $0x168] sm:$0xf]  ;;  %v937_v8 = vunpack.c.l.b16 %v889_v5  ;;  %1604 = vmatpush.bf16.msra.mxu1 %v3170_v16 }
 0x1a2   : > { %v934_v24 = vunpack.c.l.b16 %v886_v21 }
 0x1a3   : > { %v4385_v42 = vpack.c.b16 %v930_v41, %v929_v40  ;;  %v3505_v40 = vld [vmem:[%s6190_s5 + $0x174] sm:$0xf0]  ;;  %v3318_v41 = vor.u32 %v3503_v35, %v3315_v37  ;;  %v3153_v37 = vld [vmem:[%s6190_s5 + $0x28] sm:$0xf] }
 0x1a4   : > { %v830_v43 = vpop.f32.mrf.mxu0  ;;  %v4451_v26 = vpack.c.b16 %v934_v24, %v933_v23  ;;  %v847_v46 = vpop.f32.mrf.mxu2  ;;  %v3158_v23 = vor.u32 %v3463_v15, %v3155_v17 }
 0x1a5   : > { %1411 = vmatmul.bf16.vlgmr.msrb.gmra.mxu1 %v4385_v42  ;;  %1509 = vmatmul.bf16.vlgmr.msrb.gmra.mxu3 %v4385_v42  ;;  %v867_v56 = vmax.f32 %v830_v43, 0.0  ;;  %v840_v19 = vpop.f32.mrf.mxu1  ;;  %v3314_v43 = vor.u32 %v3505_v40, %v3313_v39  ;;  %v874_v55 = vmax.f32 %v847_v46, 0.0  ;;  %v3465_v39 = vld [vmem:[%s6190_s5 + $0x34] sm:$0xf0]  ;;  %v3459_v40 = vld [vmem:[%s6190_s5 + $0xc] sm:$0xf] }
 0x1a6   : > { %v871_v31 = vmax.f32 %v840_v19, 0.0  ;;  %1750 = vmatpush.bf16.msra.mxu0 %v3318_v41  ;;  %v3283_v19 = vld [vmem:[%s6190_s5 + $0x138] sm:$0xf0]  ;;  %v3154_v41 = vor.u32 %v3465_v39, %v3153_v37 }
 0x1a7   : > { %v883_v59 = vpack.c.bf16 %v867_v56, %v867_v56  ;;  %1652 = vmatpush.bf16.msra.mxu2 %v3314_v43  ;;  %v890_v6 = vpack.c.bf16 %v874_v55, %v874_v55  ;;  %v3286_v24 = vor.u32 %v3495_v18, %v3283_v19  ;;  %v3139_v43 = vld [vmem:[%s6190_s5 + $0x18] sm:$0xf0]  ;;  %v860_v55 = vpop.f32.mrf.mxu3 }
 0x1a8   : > { %v887_v44 = vpack.c.bf16 %v871_v31, %v871_v31  ;;  %1605 = vmatpush.bf16.msra.mxu1 %v3154_v41 }
 0x1a9   : > { %v931_v0 = vunpack.c.l.b16 %v883_v59  ;;  %v3499_v59 = vld [vmem:[%s6190_s5 + $0x14c] sm:$0xf]  ;;  %v938_v9 = vunpack.c.l.b16 %v890_v6  ;;  %1490 = vmatmul.bf16.gmra.mxu2 %v4514_v7  ;;  %v879_v6 = vmax.f32 %v860_v55, 0.0 }
 0x1aa   : > { %v935_v48 = vunpack.c.l.b16 %v887_v44  ;;  %v3491_v44 = vld [vmem:[%s6190_s5 + $0x10c] sm:$0xf] }
 0x1ab   : > { %v4517_v11 = vpack.c.b16 %v938_v9, %v937_v8  ;;  %v895_v9 = vpack.c.bf16 %v879_v6, %v879_v6 }
 0x1ac   : > { %v832_v58 = vpop.f32.mrf.mxu0  ;;  %v850_v56 = vpop.f32.mrf.mxu2 }
 0x1ad   : > { %v868_v60 = vmax.f32 %v832_v58, 0.0  ;;  %v842_v27 = vpop.f32.mrf.mxu1  ;;  %v3171_v58 = vld [vmem:[%s6190_s5 + $0x58] sm:$0xf0]  ;;  %v875_v20 = vmax.f32 %v850_v56, 0.0  ;;  %v943_v15 = vunpack.c.l.b16 %v895_v9 }
 0x1ae   : > { %v872_v32 = vmax.f32 %v842_v27, 0.0  ;;  %v3497_v27 = vld [vmem:[%s6190_s5 + $0x134] sm:$0xf0] }
 0x1af   : > { %v884_v62 = vpack.c.bf16 %v868_v60, %v868_v60  ;;  %v3174_v60 = vor.u32 %v3467_v53, %v3171_v58  ;;  %v3282_v28 = vor.u32 %v3497_v27, %v3281_v25  ;;  %v891_v30 = vpack.c.bf16 %v875_v20, %v875_v20  ;;  %v3493_v53 = vld [vmem:[%s6190_s5 + $0x114] sm:$0xf0] }
 0x1b0   : > { %v888_v45 = vpack.c.bf16 %v872_v32, %v872_v32  ;;  %v4547_v32 = vld [vmem:[%s4057_s0 + $0x38] sm:$0xff]  ;;  %v3266_v54 = vor.u32 %v3493_v53, %v3265_v52 }
 0x1b1   : > { %v932_v2 = vunpack.c.l.b16 %v884_v62  ;;  %v3299_v62 = vld [vmem:[%s6190_s5 + $0x158] sm:$0xf0]  ;;  %1702 = vmatpush.bf16.msra.mxu3 %v3174_v60  ;;  %v939_v33 = vunpack.c.l.b16 %v891_v30  ;;  %1593 = vmatmul.bf16.gmra.mxu0 %v4547_v32  ;;  %v3137_v60 = vld [vmem:[%s6190_s5 + $0x8] sm:$0xf] }
 0x1b2   : > { %v936_v49 = vunpack.c.l.b16 %v888_v45  ;;  %v3267_v45 = vld [vmem:[%s6190_s5 + $0x118] sm:$0xf0] }
 0x1b3   : > { %v4418_v3 = vpack.c.b16 %v932_v2, %v931_v0  ;;  %v3501_v0 = vld [vmem:[%s6190_s5 + $0x154] sm:$0xf0]  ;;  %v3302_v2 = vor.u32 %v3499_v59, %v3299_v62  ;;  %v3270_v51 = vor.u32 %v3491_v44, %v3267_v45 }
 0x1b4   : > { %v4484_v50 = vpack.c.b16 %v936_v49, %v935_v48  ;;  %v3298_v4 = vor.u32 %v3501_v0, %v3297_v63  ;;  %v852_v10 = vpop.f32.mrf.mxu2  ;;  %v3142_v49 = vor.u32 %v3459_v40, %v3139_v43  ;;  %v3461_v62 = vld [vmem:[%s6190_s5 + $0x14] sm:$0xf0] }
 0x1b5   : > { %1416 = vmatmul.bf16.gmra.mxu1 %v4418_v3  ;;  %1514 = vmatmul.bf16.gmra.mxu3 %v4418_v3  ;;  %v876_v21 = vmax.f32 %v852_v10, 0.0  ;;  %v3138_v63 = vor.u32 %v3461_v62, %v3137_v60 }
 0x1b6   : > { %1751 = vmatpush.bf16.msra.mxu0 %v3302_v2  ;;  %1653 = vmatpush.bf16.msra.mxu2 %v3298_v4  ;;  %v862_v2 = vpop.f32.mrf.mxu3 }
 0x1b7   : > { %1703 = vmatpush.bf16.msra.mxu3 %v3158_v23  ;;  %v892_v31 = vpack.c.bf16 %v876_v21, %v876_v21  ;;  %1606 = vmatpush.bf16.msra.mxu1 %v3138_v63  ;;  %v880_v8 = vmax.f32 %v862_v2, 0.0 }
 0x1b8   : > { %v1559_v4 = vpop.f32.mrf.mxu0 }
 0x1b9   : > { %v940_v34 = vunpack.c.l.b16 %v892_v31  ;;  %1495 = vmatmul.bf16.gmra.mxu2 %v4547_v32  ;;  %v896_v10 = vpack.c.bf16 %v880_v8, %v880_v8 }
 0x1ba   : > { %1752 = vmatpush.bf16.msra.mxu0 %v3286_v24  ;;  %1654 = vmatpush.bf16.msra.mxu2 %v3282_v28 }
 0x1bb   : > { %v4550_v35 = vpack.c.b16 %v940_v34, %v939_v33  ;;  %1704 = vmatpush.bf16.msra.mxu3 %v3142_v49  ;;  %v944_v16 = vunpack.c.l.b16 %v896_v10 }
 0x1bc   : > { %v855_v29 = vpop.f32.mrf.mxu2 }
 0x1bd   : > { %v877_v46 = vmax.f32 %v855_v29, 0.0  ;;  %v4592_v17 = vpack.c.b16 %v944_v16, %v943_v15 }
 0x1be   : > { %1753 = vmatpush.bf16.msra.mxu0 %v3270_v51  ;;  %1655 = vmatpush.bf16.msra.mxu2 %v3266_v54 }
 0x1bf   : > { %v893_v56 = vpack.c.bf16 %v877_v46, %v877_v46 }
 0x1c0   : > { %v1561_v12 = vpop.f32.mrf.mxu0 }
 0x1c1   : > { %v941_v58 = vunpack.c.l.b16 %v893_v56  ;;  %1754 = vmatmul.bf16.vlgmr.msra.gmra.mxu0 %v4312_v1 }
 0x1c4   : > { %v857_v36 = vpop.f32.mrf.mxu2 }
 0x1c5   : > { %1421 = vmatmul.bf16.gmra.mxu1 %v4451_v26  ;;  %1519 = vmatmul.bf16.gmra.mxu3 %v4451_v26  ;;  %v878_v48 = vmax.f32 %v857_v36, 0.0 }
 0x1c7   : > { %v894_v57 = vpack.c.bf16 %v878_v48, %v878_v48 }
 0x1c8   : > { %v1564_v18 = vpop.f32.mrf.mxu0 }
 0x1c9   : > { %v942_v59 = vunpack.c.l.b16 %v894_v57  ;;  %1656 = vmatmul.bf16.vlgmr.msra.gmra.mxu2 %v4312_v1  ;;  %v4600_v1 = vld [vmem:[%s6191_s6] sm:$0xf] }
 0x1ca   : > { %v4605_v23 = vperm.slane %v4600_v1, 0 }
 0x1cb   : > { %v4586_v0 = vpack.c.b16 %v942_v59, %v941_v58 }
 0x1cc   : > { %v1461_v5 = vpop.f32.mrf.mxu2 }
 0x1d0   : > { %v4602_v20 = vpop.f32.mrf.mxu0 }
 0x1d1   : > { %1759 = vmatmul.bf16.gmra.mxu0 %v4341_v14 }
 0x1d4   : > { %v1463_v13 = vpop.f32.mrf.mxu2 }
 0x1d5   : > { %1426 = vmatmul.bf16.gmra.mxu1 %v4484_v50  ;;  %1524 = vmatmul.bf16.gmra.mxu3 %v4484_v50 }
 0x1d8   : > { %v4609_v27 = vpop.f32.mrf.mxu0 }
 0x1d9   : > { %1661 = vmatmul.bf16.gmra.mxu2 %v4341_v14  ;;  %v4614_v14 = vperm.slane %v4600_v1, 1 }
 0x1dc   : > { %v1466_v19 = vpop.f32.mrf.mxu2 }
 0x1e0   : > { %v4619_v39 = vpop.f32.mrf.mxu0 }
 0x1e1   : > { %1764 = vmatmul.bf16.gmra.mxu0 %v4382_v38 }
 0x1e4   : > { %v1468_v21 = vpop.f32.mrf.mxu2 }
 0x1e5   : > { %1431 = vmatmul.bf16.gmra.mxu1 %v4517_v11  ;;  %1529 = vmatmul.bf16.gmra.mxu3 %v4517_v11 }
 0x1e8   : > { %v4626_v46 = vpop.f32.mrf.mxu0 }
 0x1e9   : > { %1666 = vmatmul.bf16.gmra.mxu2 %v4382_v38 }
 0x1ec   : > { %v1471_v29 = vpop.f32.mrf.mxu2 }
 0x1f1   : > { %1769 = vmatmul.bf16.gmra.mxu0 %v4415_v61 }
 0x1f4   : > { %v4621_v41 = vpop.f32.mrf.mxu2 }
 0x1f5   : > { %1436 = vmatmul.bf16.gmra.mxu1 %v4550_v35  ;;  %1534 = vmatmul.bf16.gmra.mxu3 %v4550_v35 }
 0x1f9   : > { %1671 = vmatmul.bf16.gmra.mxu2 %v4415_v61 }
 0x1fc   : > { %v4630_v51 = vpop.f32.mrf.mxu2 }
 0x201   : > { %1774 = vmatmul.bf16.gmra.mxu0 %v4448_v22 }
 0x204   : > { %v4640_v61 = vpop.f32.mrf.mxu2 }
 0x205   : > { %1441 = vmatmul.bf16.gmra.mxu1 %v4586_v0  ;;  %1539 = vmatmul.bf16.gmra.mxu3 %v4586_v0 }
 0x209   : > { %1676 = vmatmul.bf16.gmra.mxu2 %v4448_v22 }
 0x211   : > { %1779 = vmatmul.bf16.gmra.mxu0 %v4481_v47 }
 0x215   : > { %1446 = vmatmul.bf16.gmra.mxu1 %v4592_v17  ;;  %1544 = vmatmul.bf16.gmra.mxu3 %v4592_v17 }
 0x219   : > { %1681 = vmatmul.bf16.gmra.mxu2 %v4481_v47 }
 0x221   : > { %1784 = vmatmul.bf16.gmra.mxu0 %v4514_v7 }
 0x222   : > { %v1412_v24 = vpop.f32.mrf.mxu1 }
 0x223   : > { %v1413_v25 = vadd.f32 %v1412_v24, %v4605_v23 }
 0x225   : > { %v1462_v28 = vadd.f32 %v1461_v5, %v1413_v25  ;;  %1607 = vmatmul.bf16.vlgmr.msra.gmra.mxu1 %v4385_v42  ;;  %1705 = vmatmul.bf16.vlgmr.msra.gmra.mxu3 %v4385_v42 }
 0x227   : > { %v3383_v37 = vmul.f32 -1.442695, %v1462_v28  ;;  %v4658_v28 = vpop.f32.mrf.mxu2 }
 0x228   : > { %v1510_v30 = vpop.f32.mrf.mxu3 }
 0x229   : > { %v1511_v31 = vadd.f32 %v1510_v30, %v4614_v14  ;;  %3607 = vpow2.f32 %v3383_v37  ;;  %1686 = vmatmul.bf16.gmra.mxu2 %v4514_v7 }
 0x22a   : > { %v1414_v33 = vpop.f32.mrf.mxu1 }
 0x22b   : > { %v1560_v34 = vadd.f32 %v1559_v4, %v1511_v31  ;;  %v1415_v36 = vadd.f32 %v1414_v33, %v4605_v23 }
 0x22d   : > { %v1464_v40 = vadd.f32 %v1463_v13, %v1415_v36  ;;  %v3399_v48 = vmul.f32 -1.442695, %v1560_v34 }
 0x22f   : > { %v3608_v52 = vpop.eup %3607  ;;  %v3384_v54 = vmul.f32 -1.442695, %v1464_v40  ;;  %3609 = vpow2.f32 %v3399_v48  ;;  %v4681_v48 = vpop.f32.mrf.mxu2 }
 0x230   : > { %v1512_v42 = vpop.f32.mrf.mxu3  ;;  %v4633_v56 = vadd.f32 1.0, %v3608_v52 }
 0x231   : > { %v1513_v43 = vadd.f32 %v1512_v42, %v4614_v14 }
 0x232   : > { %v1417_v44 = vpop.f32.mrf.mxu1  ;;  %v1868_v52 = vand.u32 2147483647, %v4633_v56  ;;  %vm1864_vm2 = vweird.f32 %v4633_v56 }
 0x233   : > { %v1562_v38 = vadd.f32 %v1561_v12, %v1513_v43  ;;  %v1418_v45 = vadd.f32 %v1417_v44, %v4605_v23 }
 0x234   : > { %vm4701_vm4 = vcmp.eq.f32.partialorder %v1868_v52, 8.507059e+37 }
 0x235   : > { %v1467_v49 = vadd.f32 %v1466_v19, %v1418_v45  ;;  %1612 = vmatmul.bf16.gmra.mxu1 %v4418_v3  ;;  %1710 = vmatmul.bf16.gmra.mxu3 %v4418_v3  ;;  %v3400_v53 = vmul.f32 -1.442695, %v1562_v38  ;;  %v4637_v3 = vpop.f32.mrf.mxu0  ;;  %v3610_v2 = vpop.eup %3609 }
 0x236   : > { %v4643_v10 = vadd.f32 1.0, %v3610_v2  ;;  %1789 = vmatmul.bf16.gmra.mxu0 %v4547_v32 }
 0x237   : > { %3611 = vpow2.f32 %v3400_v53  ;;  %v3385_v58 = vmul.f32 -1.442695, %v1467_v49 }
 0x238   : > { %v1515_v55 = vpop.f32.mrf.mxu3  ;;  %3613 = vpow2.f32 %v3384_v54  ;;  %vm2168_vm5 = vweird.f32 %v4643_v10 }
 0x239   : > { %v1516_v57 = vadd.f32 %v1515_v55, %v4614_v14  ;;  %3615 = vrcp.f32 %v4633_v56  ;;  %1691 = vmatmul.bf16.gmra.mxu2 %v4547_v32 }
 0x23a   : > { %v1419_v59 = vpop.f32.mrf.mxu1  ;;  %3617 = vpow2.f32 %v3385_v58 }
 0x23b   : > { %v1565_v60 = vadd.f32 %v1564_v18, %v1516_v57  ;;  %v1420_v62 = vadd.f32 %v1419_v59, %v4605_v23  ;;  %v1870_v59 = vand.u32 2147483648, %v4633_v56 }
 0x23d   : > { %v1469_v63 = vadd.f32 %v1468_v21, %v1420_v62  ;;  %v3612_v4 = vpop.eup %3611  ;;  %v3401_v5 = vmul.f32 -1.442695, %v1565_v60  ;;  %v4652_v21 = vpop.f32.mrf.mxu0  ;;  %v2174_v60 = vand.u32 2147483648, %v4643_v10 }
 0x23e   : > { %v3614_v9 = vpop.eup %3613  ;;  %v4648_v15 = vadd.f32 1.0, %v3612_v4 }
 0x23f   : > { %v4646_v13 = vpop.eup %3615  ;;  %3619 = vpow2.f32 %v3401_v5  ;;  %v4654_v24 = vadd.f32 1.0, %v3614_v9 }
 0x240   : > { %v1517_v6 = vpop.f32.mrf.mxu3  ;;  %v3618_v19 = vpop.eup %3617  ;;  %v1860_v30 = vmul.f32 %v4646_v13, %v4633_v56  ;;  %3621 = vrcp.f32 %v4643_v10  ;;  %vm1865_vm3 = vweird.f32 %v4646_v13  ;;  %vm2183_vm10 = vweird.f32 %v4648_v15 }
 0x241   : > { %v1518_v8 = vadd.f32 %v1517_v6, %v4614_v14  ;;  %3623 = vrcp.f32 %v4648_v15  ;;  %v4664_v31 = vadd.f32 1.0, %v3618_v19  ;;  %vm4730_vm6 = vmor %vm1864_vm2, %vm1865_vm3  ;;  %vm1879_vm8 = vweird.f32 %v4654_v24 }
 0x242   : > { %v1422_v12 = vpop.f32.mrf.mxu1  ;;  %3625 = vrcp.f32 %v4654_v24  ;;  %v1861_v36 = vsub.f32 1.0, %v1860_v30  ;;  %v1871_v30 = vor.u32 1.1754944e-38, %v1870_v59 }
 0x243   : > { %v1567_v16 = vadd.f32 %v4602_v20, %v1518_v8  ;;  %v1423_v18 = vadd.f32 %v1422_v12, %v4605_v23  ;;  %v3386_v20 = vmul.f32 -1.442695, %v1469_v63  ;;  %v1885_v8 = vand.u32 2147483648, %v4654_v24 }
 0x244   : > { %v1862_v49 = vmul.f32 %v4646_v13, %v1861_v36  ;;  %v4735_v36 = vor.u32 1.1754944e-38, %v2174_v60  ;;  %v2189_v60 = vand.u32 2147483648, %v4648_v15  ;;  %vm1894_vm15 = vweird.f32 %v4664_v31 }
 0x245   : > { %v1472_v25 = vadd.f32 %v1471_v29, %v1423_v18  ;;  %1617 = vmatmul.bf16.gmra.mxu1 %v4451_v26  ;;  %1715 = vmatmul.bf16.gmra.mxu3 %v4451_v26  ;;  %v3402_v33 = vmul.f32 -1.442695, %v1567_v16  ;;  %v3620_v34 = vpop.eup %3619  ;;  %3627 = vpow2.f32 %v3386_v20  ;;  %v4674_v22 = vpop.f32.mrf.mxu0 }
 0x246   : > { %3629 = vrcp.f32 %v4664_v31  ;;  %v4672_v43 = vpop.eup %3621  ;;  %v4678_v38 = vadd.f32 1.0, %v3620_v34  ;;  %v1863_v5 = vadd.f32 %v4646_v13, %v1862_v49 }
 0x247   : > { %3631 = vpow2.f32 %v3402_v33  ;;  %v4676_v44 = vpop.eup %3623  ;;  %v2164_v53 = vmul.f32 %v4672_v43, %v4643_v10  ;;  %v3387_v54 = vmul.f32 -1.442695, %v1472_v25  ;;  %vm2169_vm7 = vweird.f32 %v4672_v43 }
 0x248   : > { %v1520_v29 = vpop.f32.mrf.mxu3  ;;  %v2179_v57 = vmul.f32 %v4676_v44, %v4648_v15  ;;  %3633 = vrcp.f32 %v4678_v38  ;;  %v1867_v56 = vsel %vm4730_vm6, %v4646_v13, %v1863_v5  ;;  %vm2184_vm12 = vweird.f32 %v4676_v44  ;;  %vm4789_vm14 = vmor %vm2168_vm5, %vm2169_vm7 }
 0x249   : > { %v1521_v26 = vadd.f32 %v1520_v29, %v4614_v14  ;;  %v2165_v9 = vsub.f32 1.0, %v2164_v53  ;;  %3635 = vpow2.f32 %v3387_v54  ;;  %v2187_v54 = vand.u32 2147483647, %v4648_v15  ;;  %vm4819_vm2 = vmor %vm2183_vm10, %vm2184_vm12 }
 0x24a   : > { %v1424_v37 = vpop.f32.mrf.mxu1  ;;  %v2180_v19 = vsub.f32 1.0, %v2179_v57  ;;  %vm2198_vm1 = vweird.f32 %v4678_v38 }
 0x24b   : > { %v1570_v40 = vadd.f32 %v4609_v27, %v1521_v26  ;;  %v1425_v42 = vadd.f32 %v1424_v37, %v4605_v23  ;;  %v4685_v27 = vpop.eup %3625  ;;  %v4724_v26 = vpop.f32.mrf.mxu2  ;;  %v1883_v37 = vand.u32 2147483647, %v4654_v24  ;;  %vm4774_vm13 = vcmp.eq.f32.partialorder %v2187_v54, 8.507059e+37 }
 0x24c   : > { %v3628_v55 = vpop.eup %3627  ;;  %v1875_v18 = vmul.f32 %v4685_v27, %v4654_v24  ;;  %v2181_v52 = vmul.f32 %v4676_v44, %v2180_v19  ;;  %vm1880_vm9 = vweird.f32 %v4685_v27 }
 0x24d   : > { %v1474_v45 = vadd.f32 %v4621_v41, %v1425_v42  ;;  %v4692_v41 = vpop.eup %3629  ;;  %v3403_v2 = vmul.f32 -1.442695, %v1570_v40  ;;  %v4710_v25 = vadd.f32 1.0, %v3628_v55  ;;  %v2166_v40 = vmul.f32 %v4672_v43, %v2165_v9 }
 0x24e   : > { %v3632_v63 = vpop.eup %3631  ;;  %v1890_v20 = vmul.f32 %v4692_v41, %v4664_v31  ;;  %v4746_v42 = vor.u32 1.1754944e-38, %v1885_v8  ;;  %v1876_v49 = vsub.f32 1.0, %v1875_v18  ;;  %vm4803_vm0 = vcmp.eq.f32.partialorder %v1883_v37, 8.507059e+37 }
 0x24f   : > { %v4715_v33 = vadd.f32 1.0, %v3632_v63  ;;  %3637 = vpow2.f32 %v3403_v2  ;;  %v3388_v47 = vmul.f32 -1.442695, %v1474_v45  ;;  %v4763_v45 = vsel %vm4701_vm4, %v1871_v30, %v1867_v56  ;;  %vm4843_vm4 = vmor %vm1879_vm8, %vm1880_vm9 }
 0x250   : > { %v1522_v58 = vpop.f32.mrf.mxu3  ;;  %3639 = vrcp.f32 %v4710_v25  ;;  %v1891_v57 = vsub.f32 1.0, %v1890_v20  ;;  %v2167_v2 = vadd.f32 %v4672_v43, %v2166_v40  ;;  %v1877_v9 = vmul.f32 %v4685_v27, %v1876_v49 }
 0x251   : > { %v1523_v62 = vadd.f32 %v1522_v58, %v4614_v14  ;;  %3641 = vrcp.f32 %v4715_v33  ;;  %vm1895_vm3 = vweird.f32 %v4692_v41  ;;  %vm1909_vm10 = vweird.f32 %v4710_v25 }
 0x252   : > { %v1427_v4 = vpop.f32.mrf.mxu1  ;;  %3643 = vpow2.f32 %v3388_v47  ;;  %v1892_v18 = vmul.f32 %v4692_v41, %v1891_v57  ;;  %v1878_v57 = vadd.f32 %v4685_v27, %v1877_v9  ;;  %vm4858_vm5 = vmor %vm1894_vm15, %vm1895_vm3 }
 0x253   : > { %v1572_v12 = vadd.f32 %v4619_v39, %v1523_v62  ;;  %v1428_v16 = vadd.f32 %v1427_v4, %v4605_v23  ;;  %v4722_v39 = vpop.f32.mrf.mxu0  ;;  %v2202_v4 = vand.u32 2147483647, %v4678_v38 }
 0x255   : > { %v4718_v29 = vadd.f32 %v4630_v51, %v1428_v16  ;;  %1622 = vmatmul.bf16.gmra.mxu1 %v4484_v50  ;;  %1720 = vmatmul.bf16.gmra.mxu3 %v4484_v50  ;;  %v2172_v51 = vand.u32 2147483647, %v4643_v10  ;;  %v4738_v50 = vpop.eup %3633  ;;  %v2182_v16 = vadd.f32 %v4676_v44, %v2181_v52  ;;  %v3404_v20 = vmul.f32 -1.442695, %v1572_v12 }
 0x256   : > { %v3636_v55 = vpop.eup %3635  ;;  %v2194_v13 = vmul.f32 %v4738_v50, %v4678_v38  ;;  %v2171_v12 = vsel %vm4789_vm14, %v4672_v43, %v2167_v2  ;;  %v1898_v10 = vand.u32 2147483647, %v4664_v31  ;;  %v1900_v52 = vand.u32 2147483648, %v4664_v31 }
 0x257   : > { %vm4766_vm11 = vcmp.eq.f32.partialorder %v2172_v51, 8.507059e+37  ;;  %v3638_v5 = vpop.eup %3637  ;;  %v4770_v8 = vadd.f32 1.0, %v3636_v55  ;;  %v2190_v51 = vor.u32 1.1754944e-38, %v2189_v60  ;;  %v4812_v55 = vpop.f32.mrf.mxu2  ;;  %v2186_v47 = vsel %vm4819_vm2, %v4676_v44, %v2182_v16 }
 0x258   : > { %v1525_v53 = vpop.f32.mrf.mxu3  ;;  %v4783_v19 = vpop.eup %3639  ;;  %v2195_v30 = vsub.f32 1.0, %v2194_v13  ;;  %v4796_v40 = vadd.f32 1.0, %v3638_v5  ;;  %v3389_v44 = vmul.f32 -1.442695, %v4718_v29  ;;  %v1901_v29 = vor.u32 1.1754944e-38, %v1900_v52 }
 0x259   : > { %v1526_v58 = vadd.f32 %v1525_v53, %v4614_v14  ;;  %v2204_v53 = vand.u32 2147483648, %v4678_v38  ;;  %3645 = vrcp.f32 %v4770_v8  ;;  %v1905_v15 = vmul.f32 %v4783_v19, %v4710_v25 }
 0x25a   : > { %v1429_v59 = vpop.f32.mrf.mxu1  ;;  %v2196_v13 = vmul.f32 %v4738_v50, %v2195_v30  ;;  %3647 = vpow2.f32 %v3404_v20  ;;  %v2723_v30 = vld [vmem:[%s4062_s30] sm:$0xff]  ;;  %vm2199_vm6 = vweird.f32 %v4738_v50  ;;  %vm1899_vm7 = vcmp.eq.f32.partialorder %v1898_v10, 8.507059e+37 }
 0x25b   : > { %v1575_v62 = vadd.f32 %v4626_v46, %v1526_v58  ;;  %v1430_v63 = vadd.f32 %v1429_v59, %v4605_v23  ;;  %v4798_v56 = vpop.f32.mrf.mxu0  ;;  %v1893_v58 = vadd.f32 %v4692_v41, %v1892_v18  ;;  %3649 = vrcp.f32 %v4796_v40  ;;  %vm4903_vm8 = vmor %vm2198_vm1, %vm2199_vm6 }
 0x25c   : > { %v2176_v18 = vsel %vm4766_vm11, %v4735_v36, %v2171_v12  ;;  %v2191_v36 = vsel %vm4774_vm13, %v2190_v51, %v2186_v47  ;;  %3651 = vpow2.f32 %v3389_v44  ;;  %vm4907_vm9 = vcmp.eq.f32.partialorder %v2202_v4, 8.507059e+37 }
 0x25d   : > { %v4779_v6 = vadd.f32 %v4640_v61, %v1430_v63  ;;  %v4794_v61 = vpop.eup %3641  ;;  %v3405_v16 = vmul.f32 -1.442695, %v1575_v62  ;;  %v1897_v31 = vsel %vm4858_vm5, %v4692_v41, %v1893_v58  ;;  %v4881_v46 = vmul.f32 %v2723_v30, %v2176_v18 }
 0x25e   : > { %v2209_v59 = vmul.f32 %v4794_v61, %v4715_v33  ;;  %v3644_v63 = vpop.eup %3643  ;;  %v2205_v47 = vor.u32 1.1754944e-38, %v2204_v53  ;;  %vm1910_vm11 = vweird.f32 %v4783_v19  ;;  %vm2214_vm12 = vweird.f32 %v4794_v61 }
 0x25f   : > { %v4874_v20 = vpop.eup %3645  ;;  %v4876_v12 = vadd.f32 1.0, %v3644_v63  ;;  %3653 = vpow2.f32 %v3405_v16  ;;  %vm2213_vm14 = vweird.f32 %v4715_v33  ;;  %vm4980_vm1 = vmor %vm1909_vm10, %vm1910_vm11 }
 0x260   : > { %v1527_v54 = vpop.f32.mrf.mxu3  ;;  %v2210_v34 = vsub.f32 1.0, %v2209_v59  ;;  %v3648_v51 = vpop.eup %3647  ;;  %v1920_v7 = vmul.f32 %v4874_v20, %v4770_v8  ;;  %vm4959_vm15 = vmor %vm2213_vm14, %vm2214_vm12  ;;  %vm1925_vm3 = vweird.f32 %v4874_v20 }
 0x261   : > { %v1528_v37 = vadd.f32 %v1527_v54, %v4614_v14  ;;  %v4892_v43 = vpop.eup %3649  ;;  %3655 = vrcp.f32 %v4876_v12  ;;  %v4914_v59 = vpop.f32.mrf.mxu2  ;;  %vm1939_vm11 = vweird.f32 %v4876_v12 }
 0x262   : > { %v1432_v60 = vpop.f32.mrf.mxu1  ;;  %v2211_v58 = vmul.f32 %v4794_v61, %v2210_v34  ;;  %v3652_v9 = vpop.eup %3651  ;;  %vm2229_vm5 = vweird.f32 %v4892_v43 }
 0x263   : > { %v1577_v2 = vadd.f32 %v4637_v3, %v1528_v37  ;;  %v1433_v5 = vadd.f32 %v1432_v60, %v4605_v23  ;;  %v1882_v3 = vsel %vm4843_vm4, %v4685_v27, %v1878_v57  ;;  %v2724_v27 = vld [vmem:[%s4062_s30 + $0x8] sm:$0xff]  ;;  %v4890_v57 = vsel %vm1899_vm7, %v1901_v29, %v1897_v31  ;;  %v4897_v10 = vpop.f32.mrf.mxu0 }
 0x264   : > { %v4886_v52 = vsel %vm4803_vm0, %v4746_v42, %v1882_v3  ;;  %v4888_v54 = vmul.f32 %v2724_v27, %v2191_v36  ;;  %v4919_v60 = vadd.f32 1.0, %v3648_v51  ;;  %v2725_v3 = vld [vmem:[%s4062_s30 + $0x10] sm:$0xff]  ;;  %v2212_v24 = vadd.f32 %v4794_v61, %v2211_v58 }
 0x265   : > { %v4863_v62 = vadd.f32 %v4658_v28, %v1433_v5  ;;  %1627 = vmatmul.bf16.gmra.mxu1 %v4517_v11  ;;  %1725 = vmatmul.bf16.gmra.mxu3 %v4517_v11  ;;  %v2197_v28 = vadd.f32 %v4738_v50, %v2196_v13  ;;  %v1906_v11 = vsub.f32 1.0, %v1905_v15  ;;  %v3390_v13 = vmul.f32 -1.442695, %v4779_v6  ;;  %v3654_v30 = vpop.eup %3653 }
 0x266   : > { %v2224_v5 = vmul.f32 %v4892_v43, %v4796_v40  ;;  %v1913_v6 = vand.u32 2147483647, %v4710_v25  ;;  %v3406_v16 = vmul.f32 -1.442695, %v1577_v2  ;;  %v2219_v29 = vand.u32 2147483648, %v4715_v33 }
 0x267   : > { %v2201_v38 = vsel %vm4903_vm8, %v4738_v50, %v2197_v28  ;;  %v1907_v44 = vmul.f32 %v4783_v19, %v1906_v11  ;;  %v1921_v50 = vsub.f32 1.0, %v1920_v7  ;;  %3657 = vpow2.f32 %v3390_v13  ;;  %v4942_v27 = vpop.eup %3655 }
 0x268   : > { %v1530_v41 = vpop.f32.mrf.mxu3  ;;  %v2234_v36 = vand.u32 2147483648, %v4796_v40  ;;  %3659 = vrcp.f32 %v4919_v60  ;;  %v2225_v31 = vsub.f32 1.0, %v2224_v5  ;;  %v4944_v4 = vadd.f32 1.0, %v3652_v9 }
 0x269   : > { %v1531_v37 = vadd.f32 %v1530_v41, %v4614_v14  ;;  %v1908_v2 = vadd.f32 %v4783_v19, %v1907_v44  ;;  %vm4946_vm13 = vcmp.eq.f32.partialorder %v1913_v6, 8.507059e+37  ;;  %v2217_v11 = vand.u32 2147483647, %v4715_v33 }
 0x26a   : > { %v1434_v15 = vpop.f32.mrf.mxu1  ;;  %v4952_v51 = vadd.f32 1.0, %v3654_v30  ;;  %3661 = vpow2.f32 %v3406_v16  ;;  %vm2228_vm0 = vweird.f32 %v4796_v40  ;;  %v3391_v42 = vmul.f32 -1.442695, %v4863_v62  ;;  %v2726_v16 = vld [vmem:[%s4062_s30 + $0x18] sm:$0xff] }
 0x26b   : > { %v1580_v63 = vadd.f32 %v4652_v21, %v1531_v37  ;;  %v1435_v53 = vadd.f32 %v1434_v15, %v4605_v23  ;;  %v2206_v21 = vsel %vm4907_vm9, %v2205_v47, %v2201_v38  ;;  %v2216_v33 = vsel %vm4959_vm15, %v4794_v61, %v2212_v24  ;;  %v4974_v44 = vpop.f32.mrf.mxu0  ;;  %vm5047_vm8 = vmor %vm2228_vm0, %vm2229_vm5 }
 0x26c   : > { %v4955_v7 = vmul.f32 %v2725_v3, %v2206_v21  ;;  %v2220_v47 = vor.u32 1.1754944e-38, %v2219_v29  ;;  %v1922_v58 = vmul.f32 %v4874_v20, %v1921_v50  ;;  %v1935_v13 = vmul.f32 %v4942_v27, %v4876_v12 }
 0x26d   : > { %v4930_v18 = vadd.f32 %v4681_v48, %v1435_v53  ;;  %v1915_v48 = vand.u32 2147483648, %v4710_v25  ;;  %v3407_v15 = vmul.f32 -1.442695, %v1580_v63  ;;  %v3658_v62 = vpop.eup %3657  ;;  %v2226_v5 = vmul.f32 %v4892_v43, %v2225_v31  ;;  %v4986_v63 = vpop.f32.mrf.mxu2 }
 0x26e   : > { %3663 = vrcp.f32 %v4944_v4  ;;  %vm2218_vm2 = vcmp.eq.f32.partialorder %v2217_v11, 8.507059e+37  ;;  %v4991_v6 = vpop.eup %3659  ;;  %v1923_v21 = vadd.f32 %v4874_v20, %v1922_v58  ;;  %v1936_v3 = vsub.f32 1.0, %v1935_v13 }
 0x26f   : > { %3665 = vrcp.f32 %v4952_v51  ;;  %v1916_v9 = vor.u32 1.1754944e-38, %v1915_v48  ;;  %v2221_v50 = vsel %vm2218_vm2, %v2220_v47, %v2216_v33  ;;  %v5003_v24 = vadd.f32 1.0, %v3658_v62 }
 0x270   : > { %v1532_v34 = vpop.f32.mrf.mxu3  ;;  %3667 = vpow2.f32 %v3391_v42  ;;  %v3662_v30 = vpop.eup %3661  ;;  %vm1924_vm4 = vweird.f32 %v4770_v8  ;;  %v1930_v29 = vand.u32 2147483648, %v4770_v8  ;;  %v3392_v48 = vmul.f32 -1.442695, %v4930_v18 }
 0x271   : > { %v1533_v41 = vadd.f32 %v1532_v34, %v4614_v14  ;;  %3669 = vpow2.f32 %v3407_v15  ;;  %v5018_v32 = vmul.f32 %v2726_v16, %v2221_v50  ;;  %vm5022_vm6 = vmor %vm1924_vm4, %vm1925_vm3  ;;  %v2232_v42 = vand.u32 2147483647, %v4796_v40 }
 0x272   : > { %v1437_v49 = vpop.f32.mrf.mxu1  ;;  %v1927_v18 = vsel %vm5022_vm6, %v4874_v20, %v1923_v21  ;;  %3671 = vrcp.f32 %v5003_v24  ;;  %v1937_v58 = vmul.f32 %v4942_v27, %v1936_v3  ;;  %v1931_v61 = vor.u32 1.1754944e-38, %v1930_v29 }
 0x273   : > { %v1582_v38 = vadd.f32 %v4674_v22, %v1533_v41  ;;  %v1438_v53 = vadd.f32 %v1437_v49, %v4605_v23  ;;  %v1912_v22 = vsel %vm4980_vm1, %v4783_v19, %v1908_v2  ;;  %v1928_v19 = vand.u32 2147483647, %v4770_v8 }
 0x274   : > { %v2227_v2 = vadd.f32 %v4892_v43, %v2226_v5  ;;  %v5016_v34 = vsel %vm4946_vm13, %v1916_v9, %v1912_v22  ;;  %v5026_v8 = vpop.eup %3663  ;;  %v5028_v41 = vadd.f32 1.0, %v3662_v30  ;;  %3673 = vpow2.f32 %v3392_v48  ;;  %v5058_v9 = vpop.f32.mrf.mxu0 }
 0x275   : > { %v4995_v25 = vadd.f32 %v4724_v26, %v1438_v53  ;;  %1632 = vmatmul.bf16.gmra.mxu1 %v4550_v35  ;;  %1730 = vmatmul.bf16.gmra.mxu3 %v4550_v35  ;;  %v2239_v35 = vmul.f32 %v4991_v6, %v4919_v60  ;;  %vm5033_vm7 = vcmp.eq.f32.partialorder %v1928_v19, 8.507059e+37  ;;  %v5038_v49 = vpop.eup %3665  ;;  %v3408_v53 = vmul.f32 -1.442695, %v1582_v38  ;;  %v5064_v16 = vpop.f32.mrf.mxu2 }
 0x276   : > { %v3668_v13 = vpop.eup %3667  ;;  %v1950_v5 = vmul.f32 %v5026_v8, %v4944_v4  ;;  %v2235_v50 = vor.u32 1.1754944e-38, %v2234_v36  ;;  %v2264_v38 = vand.u32 2147483648, %v4952_v51  ;;  %3675 = vrcp.f32 %v5028_v41 }
 0x277   : > { %v2240_v15 = vsub.f32 1.0, %v2239_v35  ;;  %v3670_v62 = vpop.eup %3669  ;;  %vm2233_vm9 = vcmp.eq.f32.partialorder %v2232_v42, 8.507059e+37  ;;  %v5070_v21 = vadd.f32 1.0, %v3668_v13  ;;  %v5074_v30 = vadd.f32 %v4942_v27, %v1937_v58 }
 0x278   : > { %v1535_v26 = vpop.f32.mrf.mxu3  ;;  %vm1940_vm10 = vweird.f32 %v4942_v27  ;;  %v2254_v36 = vmul.f32 %v5038_v49, %v4952_v51  ;;  %v5080_v3 = vadd.f32 1.0, %v3670_v62  ;;  %3677 = vpow2.f32 %v3408_v53 }
 0x279   : > { %v1536_v31 = vadd.f32 %v1535_v26, %v4614_v14  ;;  %v2241_v40 = vmul.f32 %v4991_v6, %v2240_v15  ;;  %v5082_v26 = vpop.eup %3671  ;;  %v1951_v29 = vsub.f32 1.0, %v1950_v5  ;;  %vm5089_vm12 = vmor %vm1939_vm11, %vm1940_vm10  ;;  %v1943_v28 = vand.u32 2147483647, %v4876_v12 }
 0x27a   : > { %v1439_v37 = vpop.f32.mrf.mxu1  ;;  %v1945_v42 = vand.u32 2147483648, %v4876_v12  ;;  %3679 = vrcp.f32 %v5070_v21  ;;  %v2255_v13 = vsub.f32 1.0, %v2254_v36  ;;  %v5106_v15 = vmul.f32 %v5082_v26, %v5003_v24 }
 0x27b   : > { %v1585_v33 = vadd.f32 %v4722_v39, %v1536_v31  ;;  %v1440_v47 = vadd.f32 %v1439_v37, %v4605_v23  ;;  %v2231_v39 = vsel %vm5047_vm8, %v4892_v43, %v2227_v2  ;;  %v5068_v43 = vsel %vm5033_vm7, %v1931_v61, %v1927_v18 }
 0x27c   : > { %v2236_v19 = vsel %vm2233_vm9, %v2235_v50, %v2231_v39  ;;  %v3393_v2 = vmul.f32 -1.442695, %v4995_v25  ;;  %3681 = vrcp.f32 %v5080_v3  ;;  %v2242_v12 = vadd.f32 %v4991_v6, %v2241_v40 }
 0x27d   : > { %v1489_v22 = vadd.f32 %v4812_v55, %v1440_v47  ;;  %v2727_v55 = vld [vmem:[%s4062_s30 + $0x20] sm:$0xff]  ;;  %v3409_v31 = vmul.f32 -1.442695, %v1585_v33  ;;  %v3674_v47 = vpop.eup %3673  ;;  %v1942_v33 = vsel %vm5089_vm12, %v4942_v27, %v5074_v30  ;;  %vm2244_vm13 = vweird.f32 %v4991_v6 }
 0x27e   : > { %v5087_v37 = vmul.f32 %v2727_v55, %v2236_v19  ;;  %v5102_v58 = vpop.eup %3675  ;;  %3683 = vpow2.f32 %v3393_v2  ;;  %v2247_v53 = vand.u32 2147483647, %v4919_v60  ;;  %v5115_v39 = vadd.f32 1.0, %v3674_v47  ;;  %v5121_v19 = vpop.f32.mrf.mxu0 }
 0x27f   : > { %v3678_v61 = vpop.eup %3677  ;;  %3685 = vpow2.f32 %v3409_v31  ;;  %v2249_v62 = vand.u32 2147483648, %v4919_v60  ;;  %v1952_v5 = vmul.f32 %v5026_v8, %v1951_v29  ;;  %v2269_v50 = vmul.f32 %v5102_v58, %v5028_v41  ;;  %v5131_v29 = vpop.f32.mrf.mxu2 }
 0x280   : > { %v1537_v35 = vpop.f32.mrf.mxu3  ;;  %vm5123_vm14 = vcmp.eq.f32.partialorder %v1943_v28, 8.507059e+37  ;;  %vm2243_vm15 = vweird.f32 %v4919_v60  ;;  %v2256_v55 = vmul.f32 %v5038_v49, %v2255_v13  ;;  %vm2258_vm0 = vweird.f32 %v4952_v51 }
 0x281   : > { %v1538_v48 = vadd.f32 %v1537_v35, %v4614_v14  ;;  %v1966_v40 = vsub.f32 1.0, %v5106_v15  ;;  %v1946_v2 = vor.u32 1.1754944e-38, %v1945_v42  ;;  %vm5135_vm1 = vmor %vm2243_vm15, %vm2244_vm13  ;;  %v5141_v60 = vadd.f32 1.0, %v3678_v61 }
 0x282   : > { %v1442_v11 = vpop.f32.mrf.mxu1  ;;  %vm1954_vm2 = vweird.f32 %v4944_v4  ;;  %3687 = vrcp.f32 %v5115_v39  ;;  %vm2248_vm3 = vcmp.eq.f32.partialorder %v2247_v53, 8.507059e+37  ;;  %v2250_v47 = vor.u32 1.1754944e-38, %v2249_v62  ;;  %v2728_v62 = vld [vmem:[%s4062_s30 + $0x28] sm:$0xff] }
 0x283   : > { %v1587_v25 = vadd.f32 %v4798_v56, %v1538_v48  ;;  %v1443_v20 = vadd.f32 %v1442_v11, %v4605_v23  ;;  %v5139_v48 = vpop.eup %3679  ;;  %v2246_v11 = vsel %vm5135_vm1, %v4991_v6, %v2242_v12  ;;  %v2270_v13 = vsub.f32 1.0, %v2269_v50 }
 0x284   : > { %v5148_v28 = vpop.eup %3681  ;;  %vm1955_vm4 = vweird.f32 %v5026_v8  ;;  %vm2259_vm5 = vweird.f32 %v5038_v49  ;;  %vm1969_vm10 = vweird.f32 %v5003_v24  ;;  %vm1970_vm11 = vweird.f32 %v5082_v26 }
 0x285   : > { %v1492_v56 = vadd.f32 %v4914_v59, %v1443_v20  ;;  %1637 = vmatmul.bf16.gmra.mxu1 %v4586_v0  ;;  %1735 = vmatmul.bf16.gmra.mxu3 %v4586_v0  ;;  %v3394_v59 = vmul.f32 -1.442695, %v1489_v22  ;;  %v3410_v36 = vmul.f32 -1.442695, %v1587_v25  ;;  %v5152_v25 = vadd.f32 %v5026_v8, %v1952_v5  ;;  %v3684_v20 = vpop.eup %3683  ;;  %vm5189_vm6 = vmor %vm1954_vm2, %vm1955_vm4 }
 0x286   : > { %v3686_v12 = vpop.eup %3685  ;;  %v2251_v22 = vsel %vm2248_vm3, %v2250_v47, %v2246_v11  ;;  %v1958_v5 = vand.u32 2147483647, %v4944_v4  ;;  %v2284_v50 = vmul.f32 %v5148_v28, %v5080_v3  ;;  %vm5213_vm8 = vmor %vm2258_vm0, %vm2259_vm5  ;;  %vm2274_vm12 = vweird.f32 %v5102_v58 }
 0x287   : > { %3689 = vpow2.f32 %v3394_v59  ;;  %v5168_v59 = vadd.f32 1.0, %v3684_v20  ;;  %v5196_v18 = vmul.f32 %v2728_v62, %v2251_v22  ;;  %v1957_v27 = vsel %vm5189_vm6, %v5026_v8, %v5152_v25 }
 0x288   : > { %v1540_v35 = vpop.f32.mrf.mxu3  ;;  %3691 = vpow2.f32 %v3410_v36  ;;  %v5173_v36 = vmul.f32 %v5102_v58, %v2270_v13  ;;  %v5193_v47 = vpop.eup %3687  ;;  %v3395_v13 = vmul.f32 -1.442695, %v1492_v56  ;;  %vm5205_vm7 = vcmp.eq.f32.partialorder %v1958_v5, 8.507059e+37 }
 0x289   : > { %v1541_v31 = vadd.f32 %v1540_v35, %v4614_v14  ;;  %v5158_v35 = vmul.f32 %v5139_v48, %v5070_v21  ;;  %3693 = vrcp.f32 %v5141_v60  ;;  %6252 = vst [vmem:[#allocation6_spill] sm:$0xff] %v5196_v18  ;;  %v2262_v8 = vand.u32 2147483647, %v4952_v51  ;;  %v5219_v5 = vpop.f32.mrf.mxu2 }
 0x28a   : > { %v1444_v42 = vpop.f32.mrf.mxu1  ;;  %3695 = vrcp.f32 %v5168_v59  ;;  %vm2273_vm15 = vweird.f32 %v5028_v41  ;;  %vm2288_vm0 = vweird.f32 %v5080_v3  ;;  %vm1985_vm3 = vweird.f32 %v5139_v48 }
 0x28b   : > { %v1590_v61 = vadd.f32 %v4897_v10, %v1541_v31  ;;  %v1445_v6 = vadd.f32 %v1444_v42, %v4605_v23  ;;  %v1960_v10 = vand.u32 2147483648, %v4944_v4  ;;  %v2257_v31 = vadd.f32 %v5038_v49, %v2256_v55  ;;  %vm5330_vm1 = vmor %vm2273_vm15, %vm2274_vm12 }
 0x28c   : > { %v5185_v42 = vsel %vm5123_vm14, %v1946_v2, %v1942_v33  ;;  %v5203_v33 = vpop.f32.mrf.mxu0  ;;  %vm2263_vm9 = vcmp.eq.f32.partialorder %v2262_v8, 8.507059e+37  ;;  %vm5311_vm14 = vmor %vm1969_vm10, %vm1970_vm11  ;;  %vm2289_vm4 = vweird.f32 %v5148_v28  ;;  %vm1984_vm5 = vweird.f32 %v5070_v21 }
 0x28d   : > { %v1494_v53 = vadd.f32 %v4986_v63, %v1445_v6  ;;  %v5176_v63 = vadd.f32 1.0, %v3686_v12  ;;  %v3690_v30 = vpop.eup %3689  ;;  %v1961_v2 = vor.u32 1.1754944e-38, %v1960_v10  ;;  %v2285_v12 = vsub.f32 1.0, %v2284_v50  ;;  %vm5391_vm6 = vmor %vm1984_vm5, %vm1985_vm3 }
 0x28e   : > { %v3692_v25 = vpop.eup %3691  ;;  %v3411_v22 = vmul.f32 -1.442695, %v1590_v61  ;;  %v2261_v10 = vsel %vm5213_vm8, %v5038_v49, %v2257_v31  ;;  %v5234_v20 = vadd.f32 1.0, %v3690_v30  ;;  %v2265_v49 = vor.u32 1.1754944e-38, %v2264_v38  ;;  %v2729_v30 = vld [vmem:[%s4062_s30 + $0x30] sm:$0xff] }
 0x28f   : > { %v5224_v55 = vpop.eup %3693  ;;  %3697 = vrcp.f32 %v5176_v63  ;;  %v5238_v31 = vadd.f32 1.0, %v3692_v25  ;;  %v3396_v51 = vmul.f32 -1.442695, %v1494_v53  ;;  %v5256_v25 = vperm.slane %v4600_v1, 2 }
 0x290   : > { %v1542_v6 = vpop.f32.mrf.mxu3  ;;  %3699 = vpow2.f32 %v3395_v13  ;;  %v2299_v13 = vmul.f32 %v5224_v55, %v5141_v60  ;;  %v2266_v38 = vsel %vm2263_vm9, %v2265_v49, %v2261_v10  ;;  %v5262_v15 = vpop.eup %3695  ;;  %v1973_v53 = vand.u32 2147483647, %v5003_v24 }
 0x291   : > { %v1543_v4 = vadd.f32 %v1542_v6, %v4614_v14  ;;  %v5228_v6 = vmul.f32 %v5193_v47, %v5115_v39  ;;  %3701 = vpow2.f32 %v3411_v22  ;;  %v5272_v0 = vmul.f32 %v2729_v30, %v2266_v38 }
 0x292   : > { %v1447_v62 = vpop.f32.mrf.mxu1  ;;  %3703 = vrcp.f32 %v5234_v20  ;;  %v2272_v10 = vadd.f32 %v5102_v58, %v5173_v36  ;;  %vm5295_vm13 = vcmp.eq.f32.partialorder %v1973_v53, 8.507059e+37  ;;  %vm2303_vm10 = vweird.f32 %v5141_v60 }
 0x293   : > { %v1592_v50 = vadd.f32 %v4974_v44, %v1543_v4  ;;  %v1448_v61 = vadd.f32 %v1447_v62, %v4605_v23  ;;  %v1967_v44 = vmul.f32 %v5082_v26, %v1966_v40  ;;  %v5252_v4 = vmul.f32 %v5148_v28, %v2285_v12  ;;  %6258 = vst [vmem:[#allocation8_spill] sm:$0xff] %v5272_v0 }
 0x294   : > { %3705 = vrcp.f32 %v5238_v31  ;;  %v2300_v12 = vsub.f32 1.0, %v2299_v13  ;;  %v1975_v62 = vand.u32 2147483648, %v5003_v24  ;;  %vm2000_vm11 = vweird.f32 %v5193_v47 }
 0x295   : > { %v5241_v56 = vadd.f32 %v5064_v16, %v1448_v61  ;;  %1642 = vmatmul.bf16.gmra.mxu1 %v4592_v17  ;;  %1740 = vmatmul.bf16.gmra.mxu3 %v4592_v17  ;;  %v5260_v17 = vsel %vm5205_vm7, %v1961_v2, %v1957_v27  ;;  %v5268_v8 = vpop.eup %3697  ;;  %v5275_v27 = vadd.f32 %v5082_v26, %v1967_v44  ;;  %3707 = vpow2.f32 %v3396_v51  ;;  %v5288_v44 = vpop.f32.mrf.mxu0  ;;  %vm5405_vm7 = vmor %vm2288_vm0, %vm2289_vm4 }
 0x296   : > { %6257 = vst [vmem:[#allocation7_spill] sm:$0xff] %v5260_v17  ;;  %v3700_v2 = vpop.eup %3699  ;;  %v5282_v61 = vmul.f32 %v5262_v15, %v5168_v59  ;;  %v2314_v51 = vmul.f32 %v5268_v8, %v5176_v63  ;;  %v3412_v30 = vmul.f32 -1.442695, %v1592_v50  ;;  %vm1999_vm12 = vweird.f32 %v5115_v39 }
 0x297   : > { %v3702_v13 = vpop.eup %3701  ;;  %v1972_v24 = vsel %vm5311_vm14, %v5082_v26, %v5275_v27  ;;  %v2276_v26 = vsel %vm5330_vm1, %v5102_v58, %v2272_v10  ;;  %vm2304_vm15 = vweird.f32 %v5224_v55  ;;  %vm2318_vm0 = vweird.f32 %v5176_v63 }
 0x298   : > { %v1545_v40 = vpop.f32.mrf.mxu3  ;;  %v5316_v53 = vpop.eup %3703  ;;  %v5343_v50 = vadd.f32 1.0, %v3702_v13  ;;  %3709 = vpow2.f32 %v3412_v30  ;;  %vm5517_vm1 = vmor %vm2303_vm10, %vm2304_vm15  ;;  %vm2015_vm4 = vweird.f32 %v5262_v15  ;;  %vm2319_vm5 = vweird.f32 %v5268_v8 }
 0x299   : > { %v1546_v1 = vadd.f32 %v1545_v40, %v4614_v14  ;;  %v5293_v40 = vpop.f32.mrf.mxu2 }
 0x29a   : > { %v1449_v22 = vpop.f32.mrf.mxu1  ;;  %v5337_v0 = vpop.eup %3705 }
 0x29b   : > { %v5285_v49 = vadd.f32 %v5058_v9, %v1546_v1  ;;  %v1450_v38 = vadd.f32 %v1449_v22, %v4605_v23  ;;  %v2277_v9 = vand.u32 2147483647, %v5028_v41  ;;  %v2279_v1 = vand.u32 2147483648, %v5028_v41  ;;  %v3708_v27 = vpop.eup %3707  ;;  %v2730_v41 = vld [vmem:[%s4062_s30 + $0x38] sm:$0xff] }
 0x29c   : > { %v5302_v22 = vadd.f32 1.0, %v3700_v2  ;;  %v3863_v2 = vld [vmem:[%s6191_s6] sm:$0xf]  ;;  %v6265_v23 = vsub.f32 1.0, %v5158_v35  ;;  %v2329_v58 = vmul.f32 %v5337_v0, %v5238_v31 }
 0x29d   : > { %v5305_v11 = vadd.f32 %v5131_v29, %v1450_v38  ;;  %v5322_v29 = vperm.slane %v3863_v2, 3  ;;  %v1976_v38 = vor.u32 1.1754944e-38, %v1975_v62  ;;  %v5340_v2 = vmul.f32 %v5224_v55, %v2300_v12 }
 0x29e   : > { %v1982_v16 = vmul.f32 %v5139_v48, %v6265_v23  ;;  %v2315_v62 = vsub.f32 1.0, %v2314_v51  ;;  %vm2278_vm2 = vcmp.eq.f32.partialorder %v2277_v9, 8.507059e+37  ;;  %v2280_v35 = vor.u32 1.1754944e-38, %v2279_v1 }
 0x29f   : > { %v5350_v23 = vmul.f32 %v5316_v53, %v5234_v20  ;;  %3711 = vrcp.f32 %v5302_v22  ;;  %v3397_v12 = vmul.f32 -1.442695, %v5241_v56  ;;  %v5360_v9 = vadd.f32 1.0, %v3708_v27  ;;  %v5373_v27 = vpop.f32.mrf.mxu0 }
 0x2a0   : > { %v1547_v18 = vpop.f32.mrf.mxu3  ;;  %v2281_v51 = vsel %vm2278_vm2, %v2280_v35, %v2276_v26  ;;  %v1983_v30 = vadd.f32 %v5139_v48, %v1982_v16  ;;  %3713 = vrcp.f32 %v5343_v50  ;;  %v2287_v26 = vadd.f32 %v5148_v28, %v5252_v4  ;;  %v3710_v35 = vpop.eup %3709 }
 0x2a1   : > { %v1548_v13 = vadd.f32 %v1547_v18, %v4614_v14  ;;  %6266 = vst [vmem:[#allocation9_spill] sm:$0xff] %v5360_v9  ;;  %v1988_v14 = vand.u32 2147483647, %v5070_v21  ;;  %v1990_v18 = vand.u32 2147483648, %v5070_v21  ;;  %3715 = vpow2.f32 %v3397_v12  ;;  %v5385_v17 = vpop.f32.mrf.mxu2 }
 0x2a2   : > { %v1608_v10 = vpop.f32.mrf.mxu1  ;;  %v5387_v12 = vmul.f32 %v2730_v41, %v2281_v51  ;;  %v2330_v21 = vsub.f32 1.0, %v2329_v58  ;;  %3717 = vrcp.f32 %v5360_v9  ;;  %v3413_v51 = vmul.f32 -1.442695, %v5285_v49 }
 0x2a3   : > { %v5363_v1 = vadd.f32 %v5121_v19, %v1548_v13  ;;  %v1609_v56 = vadd.f32 %v1608_v10, %v5256_v25  ;;  %v5377_v19 = vsel %vm5295_vm13, %v1976_v38, %v1972_v24  ;;  %v5381_v13 = vmul.f32 %v5268_v8, %v2315_v62  ;;  %vm5467_vm13 = vmor %vm1999_vm12, %vm2000_vm11 }
 0x2a4   : > { %v1987_v24 = vsel %vm5391_vm6, %v5139_v48, %v1983_v30  ;;  %v2292_v62 = vand.u32 2147483647, %v5080_v3  ;;  %vm1989_vm8 = vcmp.eq.f32.partialorder %v1988_v14, 8.507059e+37  ;;  %v1991_v58 = vor.u32 1.1754944e-38, %v1990_v18 }
 0x2a5   : > { %v1658_v16 = vadd.f32 %v5219_v5, %v1609_v56  ;;  %v5395_v36 = vpop.eup %3711  ;;  %v2291_v41 = vsel %vm5405_vm7, %v5148_v28, %v2287_v26  ;;  %v5417_v5 = vadd.f32 1.0, %v3710_v35  ;;  %v6271_v38 = vand.u32 2147483648, %v5080_v3  ;;  %vm5588_vm7 = vmor %vm2318_vm0, %vm2319_vm5 }
 0x2a6   : > { %v5414_v48 = vpop.eup %3713  ;;  %v5422_v49 = vmul.f32 %v5395_v36, %v5302_v22  ;;  %v5424_v18 = vsel %vm1989_vm8, %v1991_v58, %v1987_v24  ;;  %v6272_v26 = vsub.f32 1.0, %v5228_v6  ;;  %vm2293_vm9 = vcmp.eq.f32.partialorder %v2292_v62, 8.507059e+37 }
 0x2a7   : > { %3719 = vtanh.f32 %v1658_v16  ;;  %v2295_v28 = vor.u32 1.1754944e-38, %v6271_v38  ;;  %v3716_v35 = vpop.eup %3715  ;;  %v5432_v16 = vmul.f32 %v5337_v0, %v2330_v21  ;;  %v2344_v24 = vmul.f32 %v5414_v48, %v5343_v50  ;;  %v2731_v38 = vld [vmem:[%s4062_s30 + $0x40] sm:$0xff] }
 0x2a8   : > { %v1706_v56 = vpop.f32.mrf.mxu3  ;;  %v1997_v30 = vmul.f32 %v5193_v47, %v6272_v26  ;;  %3721 = vpow2.f32 %v3413_v51  ;;  %v3398_v3 = vmul.f32 -1.442695, %v5305_v11  ;;  %v5440_v6 = vpop.eup %3717  ;;  %vm2014_vm2 = vweird.f32 %v5168_v59 }
 0x2a9   : > { %v1707_v4 = vadd.f32 %v1706_v56, %v5322_v29  ;;  %v2296_v58 = vsel %vm2293_vm9, %v2295_v28, %v2291_v41  ;;  %3723 = vrcp.f32 %v5417_v5  ;;  %v5451_v41 = vpop.f32.mrf.mxu0  ;;  %v5459_v26 = vmul.f32 %v5440_v6, %v5360_v9  ;;  %vm5569_vm6 = vmor %vm2014_vm2, %vm2015_vm4 }
 0x2aa   : > { %v1610_v14 = vpop.f32.mrf.mxu1  ;;  %v1998_v51 = vadd.f32 %v5193_v47, %v1997_v30  ;;  %v5453_v28 = vmul.f32 %v2731_v38, %v2296_v58  ;;  %vm2029_vm0 = vweird.f32 %v5234_v20  ;;  %vm2333_vm4 = vweird.f32 %v5238_v31 }
 0x2ab   : > { %v1756_v56 = vadd.f32 %v5203_v33, %v1707_v4  ;;  %v1611_v10 = vadd.f32 %v1610_v14, %v5256_v25  ;;  %v2003_v4 = vand.u32 2147483647, %v5115_v39  ;;  %v5447_v14 = vadd.f32 1.0, %v3716_v35 }
 0x2ad   : > { %v3415_v21 = vmul.f32 -1.442695, %v1756_v56  ;;  %v1660_v33 = vadd.f32 %v5293_v40, %v1611_v10  ;;  %6273 = vst [vmem:[#allocation10_spill] sm:$0xff] %v5447_v14  ;;  %v3720_v11 = vpop.eup %3719  ;;  %v2005_v40 = vand.u32 2147483648, %v5115_v39  ;;  %v2345_v10 = vsub.f32 1.0, %v2344_v24  ;;  %v5462_v56 = vpop.f32.mrf.mxu2 }
 0x2ae   : > { %v2755_v30 = vmul.f32 %v3720_v11, %v4763_v45  ;;  %vm5471_vm14 = vcmp.eq.f32.partialorder %v2003_v4, 8.507059e+37  ;;  %v2302_v45 = vadd.f32 %v5224_v55, %v5340_v2  ;;  %v3722_v24 = vpop.eup %3721  ;;  %v2002_v4 = vsel %vm5467_vm13, %v5193_v47, %v1998_v51 }
 0x2af   : > { %3725 = vpow2.f32 %v3415_v21  ;;  %v5485_v11 = vpop.eup %3723  ;;  %v2006_v2 = vor.u32 1.1754944e-38, %v2005_v40  ;;  %v5491_v9 = vmul.f32 %v5414_v48, %v2345_v10  ;;  %v2307_v47 = vand.u32 2147483647, %v5141_v60 }
 0x2b0   : > { %3727 = vpow2.f32 %v3398_v3  ;;  %v1708_v35 = vpop.f32.mrf.mxu3  ;;  %v3414_v3 = vmul.f32 -1.442695, %v5363_v1  ;;  %v5480_v38 = vadd.f32 %v2755_v30, %v4881_v46  ;;  %6278 = vst [vmem:[#allocation11_spill] sm:$0xff] %v5485_v11  ;;  %v5509_v1 = vadd.f32 1.0, %v3722_v24 }
 0x2b1   : > { %3729 = vtanh.f32 %v1660_v33  ;;  %v1709_v21 = vadd.f32 %v1708_v35, %v5322_v29  ;;  %v5501_v40 = vsel %vm5471_vm14, %v2006_v2, %v2002_v4  ;;  %v6283_v39 = vand.u32 2147483648, %v5141_v60 }
 0x2b2   : > { %3731 = vrcp.f32 %v5447_v14  ;;  %v1613_v33 = vpop.f32.mrf.mxu1  ;;  %2835 = vst [vmem:[%s4072_s22] sm:$0xff] %v5480_v38  ;;  %vm2308_vm3 = vcmp.eq.f32.partialorder %v2307_v47, 8.507059e+37  ;;  %v2018_v2 = vand.u32 2147483647, %v5168_v59 }
 0x2b3   : > { %v1758_v35 = vadd.f32 %v5288_v44, %v1709_v21  ;;  %v1614_v62 = vadd.f32 %v1613_v33, %v5256_v25  ;;  %v6279_v21 = vsub.f32 1.0, %v5282_v61  ;;  %v2359_v33 = vmul.f32 %v5485_v11, %v5417_v5  ;;  %6280 = vst [vmem:[#allocation12_spill] sm:$0xff] %v5509_v1 }
 0x2b4   : > { %3733 = vpow2.f32 %v3414_v3  ;;  %v2310_v24 = vor.u32 1.1754944e-38, %v6283_v39  ;;  %v2732_v39 = vld [vmem:[%s4062_s30 + $0x48] sm:$0xff]  ;;  %vm5623_vm10 = vcmp.eq.f32.partialorder %v2018_v2, 8.507059e+37 }
 0x2b5   : > { %v3726_v51 = vpop.eup %3725  ;;  %v3416_v30 = vmul.f32 -1.442695, %v1758_v35  ;;  %v1663_v44 = vadd.f32 %v5385_v17, %v1614_v62  ;;  %v2012_v10 = vmul.f32 %v5262_v15, %v6279_v21  ;;  %v2306_v62 = vsel %vm5517_vm1, %v5224_v55, %v2302_v45  ;;  %v5536_v45 = vpop.f32.mrf.mxu0 }
 0x2b6   : > { %v3728_v58 = vpop.eup %3727  ;;  %v5511_v35 = vadd.f32 1.0, %v3726_v51  ;;  %v5539_v17 = vpop.f32.mrf.mxu2  ;;  %v2311_v47 = vsel %vm2308_vm3, %v2310_v24, %v2306_v62  ;;  %v2317_v62 = vadd.f32 %v5268_v8, %v5381_v13  ;;  %vm2030_vm3 = vweird.f32 %v5316_v53 }
 0x2b7   : > { %v3730_v61 = vpop.eup %3729  ;;  %3735 = vpow2.f32 %v3416_v30  ;;  %v5532_v51 = vadd.f32 1.0, %v3728_v58  ;;  %v2360_v30 = vsub.f32 1.0, %v2359_v33  ;;  %v5543_v46 = vadd.f32 %v5262_v15, %v2012_v10 }
 0x2b8   : > { %v5527_v3 = vpop.eup %3731  ;;  %3737 = vrcp.f32 %v5511_v35  ;;  %v1711_v4 = vpop.f32.mrf.mxu3  ;;  %v2756_v55 = vmul.f32 %v3730_v61, %v4886_v52  ;;  %v2322_v10 = vand.u32 2147483647, %v5176_v63  ;;  %vm2488_vm11 = vweird.f32 %v5511_v35 }
 0x2b9   : > { %6284 = vst [vmem:[#allocation13_spill] sm:$0xff] %v5527_v3  ;;  %3739 = vtanh.f32 %v1663_v44  ;;  %v1712_v60 = vadd.f32 %v1711_v4, %v5322_v29  ;;  %v5553_v4 = vmul.f32 %v5527_v3, %v5447_v14  ;;  %v6292_v14 = vsub.f32 1.0, %v5350_v23 }
 0x2ba   : > { %3741 = vrcp.f32 %v5509_v1  ;;  %v1615_v21 = vpop.f32.mrf.mxu1  ;;  %v5547_v52 = vadd.f32 %v2756_v55, %v4888_v54  ;;  %v3734_v61 = vpop.eup %3733  ;;  %v5563_v55 = vmul.f32 %v2732_v39, %v2311_v47  ;;  %v2020_v47 = vand.u32 2147483648, %v5168_v59 }
 0x2bb   : > { %v1761_v44 = vadd.f32 %v5373_v27, %v1712_v60  ;;  %v1616_v33 = vadd.f32 %v1615_v21, %v5256_v25  ;;  %3743 = vrcp.f32 %v5532_v51  ;;  %v5574_v21 = vmul.f32 %v5485_v11, %v2360_v30 }
 0x2bc   : > { %2836 = vst [vmem:[%s4072_s22 + $0x8] sm:$0xff] %v5547_v52  ;;  %v5599_v3 = vadd.f32 1.0, %v3734_v61  ;;  %vm5605_vm8 = vcmp.eq.f32.partialorder %v2322_v10, 8.507059e+37  ;;  %v2492_v61 = vand.u32 2147483647, %v5511_v35 }
 0x2bd   : > { %v3736_v24 = vpop.eup %3735  ;;  %v3417_v54 = vmul.f32 -1.442695, %v1761_v44  ;;  %v1665_v27 = vadd.f32 %v5462_v56, %v1616_v33  ;;  %6285 = vst [vmem:[#allocation14_spill] sm:$0xff] %v5563_v55  ;;  %v6291_v33 = vand.u32 2147483648, %v5176_v63  ;;  %v2027_v56 = vmul.f32 %v5316_v53, %v6292_v14 }
 0x2be   : > { %v3738_v60 = vpop.eup %3737  ;;  %6288 = vst [vmem:[#allocation15_spill] sm:$0xff] %v5574_v21  ;;  %v5576_v58 = vadd.f32 1.0, %v3736_v24  ;;  %v2321_v55 = vsel %vm5588_vm7, %v5268_v8, %v2317_v62  ;;  %vm2493_vm13 = vcmp.eq.f32.partialorder %v2492_v61, 8.507059e+37  ;;  %vm5716_vm7 = vmor %vm2029_vm0, %vm2030_vm3  ;;  %vm2045_vm3 = vweird.f32 %v5395_v36 }
 0x2bf   : > { %v3740_v39 = vpop.eup %3739  ;;  %v2484_v44 = vmul.f32 %v3738_v60, %v5511_v35  ;;  %3745 = vpow2.f32 %v3417_v54  ;;  %v2325_v24 = vor.u32 1.1754944e-38, %v6291_v33  ;;  %vm2489_vm9 = vweird.f32 %v3738_v60 }
 0x2c0   : > { %v5597_v59 = vpop.eup %3741  ;;  %3747 = vrcp.f32 %v5576_v58  ;;  %v1713_v54 = vpop.f32.mrf.mxu3  ;;  %v2757_v23 = vmul.f32 %v3740_v39, %v4890_v57  ;;  %v2494_v33 = vand.u32 2147483648, %v5511_v35  ;;  %vm2490_vm12 = vmor %vm2488_vm11, %vm2489_vm9  ;;  %v2507_v61 = vand.u32 2147483647, %v5576_v58 }
 0x2c1   : > { %v2485_v63 = vsub.f32 1.0, %v2484_v44  ;;  %3749 = vtanh.f32 %v1665_v27  ;;  %v1714_v14 = vadd.f32 %v1713_v54, %v5322_v29  ;;  %v5614_v8 = vpop.eup %3743  ;;  %v5621_v39 = vpop.f32.mrf.mxu0  ;;  %v2374_v30 = vmul.f32 %v5597_v59, %v5509_v1 }
 0x2c2   : > { %3751 = vtanh.f32 %v5480_v38  ;;  %v1618_v21 = vpop.f32.mrf.mxu1  ;;  %v5617_v10 = vadd.f32 %v2757_v23, %v4955_v7  ;;  %v1669_v54 = vpop.f32.mrf.mxu2  ;;  %v2326_v7 = vsel %vm5605_vm8, %v2325_v24, %v2321_v55  ;;  %v2495_v44 = vor.u32 1.1754944e-38, %v2494_v33 }
 0x2c3   : > { %v2486_v62 = vmul.f32 %v3738_v60, %v2485_v63  ;;  %v1763_v57 = vadd.f32 %v5451_v41, %v1714_v14  ;;  %v1619_v27 = vadd.f32 %v1618_v21, %v5256_v25  ;;  %v2021_v63 = vor.u32 1.1754944e-38, %v2020_v47 }
 0x2c4   : > { %2837 = vst [vmem:[%s4072_s22 + $0x10] sm:$0xff] %v5617_v10  ;;  %v5636_v21 = vadd.f32 %v5316_v53, %v2027_v56  ;;  %3753 = vrcp.f32 %v5599_v3  ;;  %v2375_v56 = vsub.f32 1.0, %v2374_v30  ;;  %vm2503_vm15 = vweird.f32 %v5576_v58 }
 0x2c5   : > { %v3746_v23 = vpop.eup %3745  ;;  %v2487_v41 = vadd.f32 %v3738_v60, %v2486_v62  ;;  %v3418_v2 = vmul.f32 -1.442695, %v1763_v57  ;;  %v1668_v11 = vadd.f32 %v5539_v17, %v1619_v27  ;;  %v2399_v57 = vand.u32 2147483648, %v5599_v3 }
 0x2c6   : > { %v3748_v14 = vpop.eup %3747  ;;  %v5640_v47 = vadd.f32 1.0, %v3746_v23  ;;  %vm2508_vm2 = vcmp.eq.f32.partialorder %v2507_v61, 8.507059e+37  ;;  %vm2334_vm8 = vweird.f32 %v5337_v0 }
 0x2c7   : > { %v3750_v55 = vpop.eup %3749  ;;  %v2491_v24 = vsel %vm2490_vm12, %v3738_v60, %v2487_v41  ;;  %v2499_v35 = vmul.f32 %v3748_v14, %v5576_v58  ;;  %3755 = vpow2.f32 %v3418_v2  ;;  %v2733_v60 = vld [vmem:[%s4062_s30 + $0x50] sm:$0xff]  ;;  %v2509_v41 = vand.u32 2147483648, %v5576_v58 }
 0x2c8   : > { %v3752_v62 = vpop.eup %3751  ;;  %v2496_v1 = vsel %vm2493_vm13, %v2495_v44, %v2491_v24  ;;  %3757 = vrcp.f32 %v5640_v47  ;;  %v1716_v33 = vpop.f32.mrf.mxu3  ;;  %v2758_v27 = vmul.f32 %v3750_v55, %v5016_v34  ;;  %vm2504_vm14 = vweird.f32 %v3748_v14  ;;  %vm5753_vm13 = vmor %vm2333_vm4, %vm2334_vm8 }
 0x2c9   : > { %v2803_v23 = vmul.f32 %v3752_v62, %v2496_v1  ;;  %3759 = vtanh.f32 %v5547_v52  ;;  %v2500_v17 = vsub.f32 1.0, %v2499_v35  ;;  %v1717_v30 = vadd.f32 %v1716_v33, %v5322_v29  ;;  %vm2505_vm1 = vmor %vm2503_vm15, %vm2504_vm14 }
 0x2ca   : > { %3761 = vtanh.f32 %v1668_v11  ;;  %v1620_v2 = vpop.f32.mrf.mxu1  ;;  %v5654_v1 = vadd.f32 %v2758_v27, %v5018_v32  ;;  %v5657_v24 = vpop.eup %3753  ;;  %v5661_v34 = vmul.f32 %v5614_v8, %v5532_v51  ;;  %v6297_v55 = vsel %vm5569_vm6, %v5262_v15, %v5543_v46 }
 0x2cb   : > { %2819 = vst [vmem:[%s4067_s12] sm:$0xff] %v2803_v23  ;;  %v2501_v44 = vmul.f32 %v3748_v14, %v2500_v17  ;;  %v1621_v52 = vadd.f32 %v1620_v2, %v5256_v25  ;;  %v1766_v11 = vadd.f32 %v5536_v45, %v1717_v30  ;;  %v5671_v35 = vsel %vm5623_vm10, %v2021_v63, %v6297_v55  ;;  %v5678_v17 = vpop.f32.mrf.mxu0  ;;  %v1672_v63 = vpop.f32.mrf.mxu2 }
 0x2cc   : > { %v5673_v32 = vmul.f32 %v2733_v60, %v2326_v7  ;;  %2838 = vst [vmem:[%s4072_s22 + $0x18] sm:$0xff] %v5654_v1  ;;  %v5682_v15 = vmul.f32 %v5597_v59, %v2375_v56  ;;  %v2510_v46 = vor.u32 1.1754944e-38, %v2509_v41  ;;  %v2086_v60 = vsub.f32 1.0, %v5661_v34 }
 0x2cd   : > { %v3756_v62 = vpop.eup %3755  ;;  %v2502_v33 = vadd.f32 %v3748_v14, %v2501_v44  ;;  %v1670_v23 = vadd.f32 %v1669_v54, %v1621_v52  ;;  %v3419_v38 = vmul.f32 -1.442695, %v1766_v11  ;;  %v2522_v61 = vand.u32 2147483647, %v5640_v47 }
 0x2ce   : > { %v3758_v45 = vpop.eup %3757  ;;  %v5685_v13 = vadd.f32 1.0, %v3756_v62  ;;  %v2524_v44 = vand.u32 2147483648, %v5640_v47  ;;  %vm2518_vm6 = vweird.f32 %v5640_v47  ;;  %vm2348_vm4 = vweird.f32 %v5343_v50 }
 0x2cf   : > { %v3760_v7 = vpop.eup %3759  ;;  %v2506_v58 = vsel %vm2505_vm1, %v3748_v14, %v2502_v33  ;;  %v2514_v54 = vmul.f32 %v3758_v45, %v5640_v47  ;;  %3763 = vtanh.f32 %v1670_v23  ;;  %vm2519_vm5 = vweird.f32 %v3758_v45 }
 0x2d0   : > { %v3762_v27 = vpop.eup %3761  ;;  %v2511_v30 = vsel %vm2508_vm2, %v2510_v46, %v2506_v58  ;;  %3765 = vrcp.f32 %v5685_v13  ;;  %v1718_v56 = vpop.f32.mrf.mxu3  ;;  %v2033_v33 = vand.u32 2147483647, %v5234_v20  ;;  %v2035_v23 = vand.u32 2147483648, %v5234_v20  ;;  %vm2520_vm9 = vmor %vm2518_vm6, %vm2519_vm5 }
 0x2d1   : > { %v2804_v41 = vmul.f32 %v3760_v7, %v2511_v30  ;;  %3767 = vtanh.f32 %v5617_v10  ;;  %v2515_v2 = vsub.f32 1.0, %v2514_v54  ;;  %v2759_v14 = vmul.f32 %v3762_v27, %v5068_v43 }
 0x2d2   : > { %3769 = vpow2.f32 %v3419_v38  ;;  %v1719_v52 = vadd.f32 %v1718_v56, %v5322_v29  ;;  %v1623_v11 = vpop.f32.mrf.mxu1  ;;  %v5707_v46 = vadd.f32 %v5337_v0, %v5432_v16  ;;  %v2525_v16 = vor.u32 1.1754944e-38, %v2524_v44 }
 0x2d3   : > { %2820 = vst [vmem:[%s4067_s12 + $0x8] sm:$0xff] %v2804_v41  ;;  %v2516_v55 = vmul.f32 %v3758_v45, %v2515_v2  ;;  %v5699_v62 = vadd.f32 %v2759_v14, %v5087_v37  ;;  %v1624_v10 = vadd.f32 %v1623_v11, %v5256_v25  ;;  %vm2523_vm10 = vcmp.eq.f32.partialorder %v2522_v61, 8.507059e+37  ;;  %v5728_v56 = vpop.f32.mrf.mxu0  ;;  %v6300_v14 = vld [vmem:[#allocation6_spill] sm:$0xff] }
 0x2d4   : > { %v1768_v43 = vadd.f32 %v5621_v39, %v1719_v52  ;;  %v2389_v2 = vmul.f32 %v5657_v24, %v5599_v3  ;;  %vm5742_vm11 = vcmp.eq.f32.partialorder %v2033_v33, 8.507059e+37  ;;  %vm2533_vm14 = vweird.f32 %v5685_v13 }
 0x2d5   : > { %v3764_v38 = vpop.eup %3763  ;;  %v2517_v7 = vadd.f32 %v3758_v45, %v2516_v55  ;;  %2839 = vst [vmem:[%s4072_s22 + $0x20] sm:$0xff] %v5699_v62  ;;  %v1673_v37 = vadd.f32 %v1672_v63, %v1624_v10  ;;  %v2032_v63 = vsel %vm5716_vm7, %v5316_v53, %v5636_v21  ;;  %v1674_v21 = vpop.f32.mrf.mxu2  ;;  %v2539_v55 = vand.u32 2147483648, %v5685_v13 }
 0x2d6   : > { %v3766_v58 = vpop.eup %3765  ;;  %v2760_v54 = vmul.f32 %v3764_v38, %v5185_v42  ;;  %v3420_v47 = vmul.f32 -1.442695, %v1768_v43  ;;  %v2036_v38 = vor.u32 1.1754944e-38, %v2035_v23  ;;  %v2336_v23 = vsel %vm5753_vm13, %v5337_v0, %v5707_v46 }
 0x2d7   : > { %v3768_v27 = vpop.eup %3767  ;;  %v2521_v20 = vsel %vm2520_vm9, %v3758_v45, %v2517_v7  ;;  %v2529_v30 = vmul.f32 %v3766_v58, %v5685_v13  ;;  %3771 = vtanh.f32 %v1673_v37  ;;  %vm2534_vm12 = vweird.f32 %v3766_v58 }
 0x2d8   : > { %v3770_v41 = vpop.eup %3769  ;;  %v2526_v42 = vsel %vm2523_vm10, %v2525_v16, %v2521_v20  ;;  %v5733_v44 = vadd.f32 %v2760_v54, %v6300_v14  ;;  %3773 = vpow2.f32 %v3420_v47  ;;  %v1721_v53 = vpop.f32.mrf.mxu3  ;;  %v2537_v37 = vand.u32 2147483647, %v5685_v13  ;;  %vm2535_vm15 = vmor %vm2533_vm14, %vm2534_vm12 }
 0x2d9   : > { %v2805_v45 = vmul.f32 %v3768_v27, %v2526_v42  ;;  %v2530_v61 = vsub.f32 1.0, %v2529_v30  ;;  %v5735_v52 = vadd.f32 1.0, %v3770_v41  ;;  %v1722_v11 = vadd.f32 %v1721_v53, %v5322_v29  ;;  %v6305_v41 = vld [vmem:[#allocation7_spill] sm:$0xff] }
 0x2da   : > { %3775 = vtanh.f32 %v5654_v1  ;;  %2840 = vst [vmem:[%s4072_s22 + $0x28] sm:$0xff] %v5733_v44  ;;  %v1625_v10 = vpop.f32.mrf.mxu1  ;;  %v2337_v16 = vand.u32 2147483647, %v5238_v31  ;;  %v2390_v47 = vsub.f32 1.0, %v2389_v2  ;;  %v5767_v20 = vsel %vm5742_vm11, %v2036_v38, %v2032_v63  ;;  %v6307_v63 = vld [vmem:[#allocation8_spill] sm:$0xff] }
 0x2db   : > { %2821 = vst [vmem:[%s4067_s12 + $0x10] sm:$0xff] %v2805_v45  ;;  %v2531_v7 = vmul.f32 %v3766_v58, %v2530_v61  ;;  %3777 = vrcp.f32 %v5735_v52  ;;  %v1771_v33 = vadd.f32 %v5678_v17, %v1722_v11  ;;  %v1626_v39 = vadd.f32 %v1625_v10, %v5256_v25 }
 0x2dc   : > { %v2540_v17 = vor.u32 1.1754944e-38, %v2539_v55  ;;  %v6306_v53 = vsub.f32 1.0, %v5422_v49  ;;  %vm2538_vm0 = vcmp.eq.f32.partialorder %v2537_v37, 8.507059e+37  ;;  %vm5778_vm1 = vcmp.eq.f32.partialorder %v2337_v16, 8.507059e+37 }
 0x2dd   : > { %v3772_v54 = vpop.eup %3771  ;;  %v2532_v27 = vadd.f32 %v3766_v58, %v2531_v7  ;;  %v3421_v14 = vmul.f32 -1.442695, %v1771_v33  ;;  %v1675_v13 = vadd.f32 %v1674_v21, %v1626_v39  ;;  %v1775_v21 = vpop.f32.mrf.mxu0  ;;  %v6310_v38 = vand.u32 2147483648, %v5238_v31 }
 0x2de   : > { %v3774_v30 = vpop.eup %3773  ;;  %v2761_v42 = vmul.f32 %v3772_v54, %v6305_v41  ;;  %v2042_v0 = vmul.f32 %v5395_v36, %v6306_v53  ;;  %v1677_v33 = vpop.f32.mrf.mxu2  ;;  %vm2044_vm2 = vweird.f32 %v5302_v22  ;;  %v2048_v54 = vand.u32 2147483647, %v5302_v22 }
 0x2df   : > { %v2536_v46 = vsel %vm2535_vm15, %v3766_v58, %v2532_v27  ;;  %v5773_v2 = vadd.f32 1.0, %v3774_v30  ;;  %3779 = vpow2.f32 %v3421_v14  ;;  %v5783_v58 = vmul.f32 %v5657_v24, %v2390_v47  ;;  %vm5814_vm5 = vmor %vm2044_vm2, %vm2045_vm3 }
 0x2e0   : > { %v3776_v45 = vpop.eup %3775  ;;  %v2541_v61 = vsel %vm2538_vm0, %v2540_v17, %v2536_v46  ;;  %v5776_v11 = vadd.f32 %v2761_v42, %v6307_v63  ;;  %v1723_v55 = vpop.f32.mrf.mxu3  ;;  %v2340_v7 = vor.u32 1.1754944e-38, %v6310_v38  ;;  %v5792_v39 = vadd.f32 %v5395_v36, %v2042_v0 }
 0x2e1   : > { %v3778_v49 = vpop.eup %3777  ;;  %v2806_v43 = vmul.f32 %v3776_v45, %v2541_v61  ;;  %3781 = vrcp.f32 %v5773_v2  ;;  %v1724_v16 = vadd.f32 %v1723_v55, %v5322_v29  ;;  %v2050_v30 = vand.u32 2147483648, %v5302_v22 }
 0x2e2   : > { %v2544_v37 = vmul.f32 %v3778_v49, %v5735_v52  ;;  %2841 = vst [vmem:[%s4072_s22 + $0x30] sm:$0xff] %v5776_v11  ;;  %v1628_v1 = vpop.f32.mrf.mxu1  ;;  %3783 = vtanh.f32 %v1675_v13  ;;  %v5804_v27 = vsel %vm5778_vm1, %v2340_v7, %v2336_v23  ;;  %v2552_v17 = vand.u32 2147483647, %v5735_v52 }
 0x2e3   : > { %2822 = vst [vmem:[%s4067_s12 + $0x18] sm:$0xff] %v2806_v43  ;;  %v1629_v31 = vadd.f32 %v1628_v1, %v5256_v25  ;;  %3785 = vtanh.f32 %v5699_v62  ;;  %v2554_v41 = vand.u32 2147483648, %v5735_v52  ;;  %v1773_v42 = vadd.f32 %v5728_v56, %v1724_v16 }
 0x2e4   : > { %v2545_v47 = vsub.f32 1.0, %v2544_v37  ;;  %vm2549_vm6 = vweird.f32 %v3778_v49  ;;  %v2047_v0 = vsel %vm5814_vm5, %v5395_v36, %v5792_v39  ;;  %v5824_v56 = vadd.f32 %v5414_v48, %v5491_v9  ;;  %v6321_v39 = vld [vmem:[#allocation9_spill] sm:$0xff] }
 0x2e5   : > { %v1678_v14 = vadd.f32 %v1677_v33, %v1629_v31  ;;  %v3780_v53 = vpop.eup %3779  ;;  %v3422_v22 = vmul.f32 -1.442695, %v1773_v42  ;;  %vm2349_vm7 = vweird.f32 %v5414_v48  ;;  %vm2548_vm8 = vweird.f32 %v5735_v52 }
 0x2e6   : > { %v2546_v23 = vmul.f32 %v3778_v49, %v2545_v47  ;;  %v5826_v13 = vadd.f32 1.0, %v3780_v53  ;;  %vm2550_vm9 = vmor %vm2548_vm8, %vm2549_vm6  ;;  %vm2553_vm10 = vcmp.eq.f32.partialorder %v2552_v17, 8.507059e+37  ;;  %v2555_v9 = vor.u32 1.1754944e-38, %v2554_v41 }
 0x2e7   : > { %v3782_v46 = vpop.eup %3781  ;;  %3787 = vtanh.f32 %v1678_v14  ;;  %v2352_v10 = vand.u32 2147483647, %v5343_v50  ;;  %v2569_v1 = vand.u32 2147483648, %v5773_v2  ;;  %v1679_v14 = vpop.f32.mrf.mxu2  ;;  %vm5842_vm12 = vcmp.eq.f32.partialorder %v2048_v54, 8.507059e+37  ;;  %vm5850_vm13 = vmor %vm2348_vm4, %vm2349_vm7 }
 0x2e8   : > { %v2547_v45 = vadd.f32 %v3778_v49, %v2546_v23  ;;  %3789 = vtanh.f32 %v5733_v44  ;;  %v2559_v61 = vmul.f32 %v3782_v46, %v5773_v2  ;;  %v1726_v63 = vpop.f32.mrf.mxu3  ;;  %v3784_v55 = vpop.eup %3783  ;;  %v2567_v44 = vand.u32 2147483647, %v5773_v2 }
 0x2e9   : > { %3791 = vrcp.f32 %v5826_v13  ;;  %v3786_v43 = vpop.eup %3785  ;;  %v2762_v37 = vmul.f32 %v3784_v55, %v5377_v19  ;;  %v1727_v33 = vadd.f32 %v1726_v63, %v5322_v29  ;;  %vm2564_vm11 = vweird.f32 %v3782_v46 }
 0x2ea   : > { %v2551_v38 = vsel %vm2550_vm9, %v3778_v49, %v2547_v45  ;;  %v2560_v7 = vsub.f32 1.0, %v2559_v61  ;;  %3793 = vpow2.f32 %v3422_v22  ;;  %v1630_v17 = vpop.f32.mrf.mxu1  ;;  %v1777_v49 = vpop.f32.mrf.mxu0  ;;  %v2051_v23 = vor.u32 1.1754944e-38, %v2050_v30 }
 0x2eb   : > { %v2556_v52 = vsel %vm2553_vm10, %v2555_v9, %v2551_v38  ;;  %v5839_v47 = vadd.f32 %v2762_v37, %v5387_v12  ;;  %v1776_v42 = vadd.f32 %v1775_v21, %v1727_v33  ;;  %v1631_v19 = vadd.f32 %v1630_v17, %v5256_v25 }
 0x2ec   : > { %v2807_v16 = vmul.f32 %v3786_v43, %v2556_v52  ;;  %v2561_v31 = vmul.f32 %v3782_v46, %v2560_v7  ;;  %vm2563_vm14 = vweird.f32 %v5773_v2  ;;  %v2351_v54 = vsel %vm5850_vm13, %v5414_v48, %v5824_v56 }
 0x2ed   : > { %v3788_v41 = vpop.eup %3787  ;;  %vm2565_vm15 = vmor %vm2563_vm14, %vm2564_vm11  ;;  %vm2568_vm0 = vcmp.eq.f32.partialorder %v2567_v44, 8.507059e+37  ;;  %v2570_v61 = vor.u32 1.1754944e-38, %v2569_v1  ;;  %2842 = vst [vmem:[%s4072_s22 + $0x38] sm:$0xff] %v5839_v47  ;;  %v3423_v63 = vmul.f32 -1.442695, %v1776_v42  ;;  %vm5864_vm1 = vcmp.eq.f32.partialorder %v2352_v10, 8.507059e+37 }
 0x2ee   : > { %v3790_v22 = vpop.eup %3789  ;;  %2823 = vst [vmem:[%s4067_s12 + $0x20] sm:$0xff] %v2807_v16  ;;  %v2562_v21 = vadd.f32 %v3782_v46, %v2561_v31  ;;  %v2763_v45 = vmul.f32 %v3788_v41, %v5424_v18  ;;  %v1680_v56 = vadd.f32 %v1679_v14, %v1631_v19  ;;  %v6319_v44 = vsub.f32 1.0, %v5459_v26 }
 0x2ef   : > { %v3792_v30 = vpop.eup %3791  ;;  %3795 = vpow2.f32 %v3423_v63  ;;  %v2582_v1 = vand.u32 2147483647, %v5826_v13  ;;  %v2584_v33 = vand.u32 2147483648, %v5826_v13  ;;  %v6320_v16 = vand.u32 2147483648, %v5343_v50  ;;  %v1682_v19 = vpop.f32.mrf.mxu2 }
 0x2f0   : > { %v3794_v18 = vpop.eup %3793  ;;  %v2566_v2 = vsel %vm2565_vm15, %v3782_v46, %v2562_v21  ;;  %v2574_v9 = vmul.f32 %v3792_v30, %v5826_v13  ;;  %v5870_v48 = vadd.f32 %v2763_v45, %v5453_v28  ;;  %v1728_v43 = vpop.f32.mrf.mxu3  ;;  %3797 = vtanh.f32 %v5776_v11  ;;  %v2734_v46 = vld [vmem:[%s4062_s30 + $0x58] sm:$0xff] }
 0x2f1   : > { %v2571_v38 = vsel %vm2568_vm0, %v2570_v61, %v2566_v2  ;;  %v5872_v7 = vadd.f32 1.0, %v3794_v18  ;;  %v1729_v37 = vadd.f32 %v1728_v43, %v5322_v29  ;;  %v2057_v28 = vmul.f32 %v5440_v6, %v6319_v44 }
 0x2f2   : > { %v2808_v10 = vmul.f32 %v3790_v22, %v2571_v38  ;;  %v2575_v52 = vsub.f32 1.0, %v2574_v9  ;;  %2843 = vst [vmem:[%s4072_s22 + $0x40] sm:$0xff] %v5870_v48  ;;  %v2355_v31 = vor.u32 1.1754944e-38, %v6320_v16  ;;  %vm2579_vm2 = vweird.f32 %v3792_v30  ;;  %v1633_v41 = vpop.f32.mrf.mxu1  ;;  %v1780_v42 = vpop.f32.mrf.mxu0  ;;  %v6326_v16 = vld [vmem:[#allocation14_spill] sm:$0xff] }
 0x2f3   : > { %3799 = vrcp.f32 %v5872_v7  ;;  %v1778_v11 = vadd.f32 %v1777_v49, %v1729_v37  ;;  %vm2363_vm3 = vweird.f32 %v5417_v5  ;;  %v1634_v26 = vadd.f32 %v1633_v41, %v5256_v25  ;;  %v6324_v37 = vld [vmem:[#allocation15_spill] sm:$0xff] }
 0x2f4   : > { %2824 = vst [vmem:[%s4067_s12 + $0x28] sm:$0xff] %v2808_v10  ;;  %v2576_v17 = vmul.f32 %v3792_v30, %v2575_v52  ;;  %3801 = vtanh.f32 %v1680_v56  ;;  %v5891_v14 = vmul.f32 %v2734_v46, %v5804_v27  ;;  %v5900_v50 = vsel %vm5842_vm12, %v2051_v23, %v2047_v0  ;;  %v6325_v10 = vld [vmem:[#allocation11_spill] sm:$0xff] }
 0x2f5   : > { %v2356_v49 = vsel %vm5864_vm1, %v2355_v31, %v2351_v54  ;;  %vm2578_vm4 = vweird.f32 %v5826_v13  ;;  %v3424_v22 = vmul.f32 -1.442695, %v1778_v11  ;;  %v5906_v27 = vadd.f32 %v5440_v6, %v2057_v28  ;;  %v3796_v21 = vpop.eup %3795  ;;  %v2735_v54 = vld [vmem:[%s4062_s30 + $0x60] sm:$0xff] }
 0x2f6   : > { %v2577_v12 = vadd.f32 %v3792_v30, %v2576_v17  ;;  %vm2580_vm6 = vmor %vm2578_vm4, %vm2579_vm2  ;;  %v2585_v62 = vor.u32 1.1754944e-38, %v2584_v33  ;;  %v1683_v36 = vadd.f32 %v1682_v19, %v1634_v26  ;;  %vm2060_vm5 = vweird.f32 %v5440_v6  ;;  %v3798_v53 = vpop.eup %3797 }
 0x2f7   : > { %v2065_v0 = vand.u32 2147483648, %v6321_v39  ;;  %vm2583_vm7 = vcmp.eq.f32.partialorder %v2582_v1, 8.507059e+37  ;;  %v5911_v45 = vadd.f32 1.0, %v3796_v21  ;;  %3803 = vpow2.f32 %v3424_v22  ;;  %v1684_v41 = vpop.f32.mrf.mxu2 }
 0x2f8   : > { %v2581_v23 = vsel %vm2580_vm6, %v3792_v30, %v2577_v12  ;;  %v1731_v13 = vpop.f32.mrf.mxu3  ;;  %3805 = vtanh.f32 %v1683_v36  ;;  %v2063_v18 = vand.u32 2147483647, %v6321_v39  ;;  %vm2059_vm8 = vweird.f32 %v6321_v39 }
 0x2f9   : > { %v3800_v61 = vpop.eup %3799  ;;  %v2586_v63 = vsel %vm2583_vm7, %v2585_v62, %v2581_v23  ;;  %v1732_v55 = vadd.f32 %v1731_v13, %v5322_v29  ;;  %3807 = vrcp.f32 %v5911_v45  ;;  %v5920_v43 = vmul.f32 %v2735_v54, %v2356_v49  ;;  %vm5924_vm9 = vmor %vm2059_vm8, %vm2060_vm5 }
 0x2fa   : > { %v3802_v2 = vpop.eup %3801  ;;  %v2809_v9 = vmul.f32 %v3798_v53, %v2586_v63  ;;  %v2589_v56 = vmul.f32 %v3800_v61, %v5872_v7  ;;  %v2362_v52 = vadd.f32 %v6325_v10, %v6324_v37  ;;  %vm2364_vm10 = vweird.f32 %v6325_v10  ;;  %v1635_v28 = vpop.f32.mrf.mxu1 }
 0x2fb   : > { %v2764_v30 = vmul.f32 %v3802_v2, %v5501_v40  ;;  %v1781_v44 = vadd.f32 %v1780_v42, %v1732_v55  ;;  %v2062_v40 = vsel %vm5924_vm9, %v5440_v6, %v5906_v27  ;;  %v2066_v1 = vor.u32 1.1754944e-38, %v2065_v0  ;;  %v1782_v11 = vpop.f32.mrf.mxu0  ;;  %vm5949_vm13 = vmor %vm2363_vm3, %vm2364_vm10 }
 0x2fc   : > { %2825 = vst [vmem:[%s4067_s12 + $0x30] sm:$0xff] %v2809_v9  ;;  %v2590_v46 = vsub.f32 1.0, %v2589_v56  ;;  %3809 = vtanh.f32 %v5839_v47  ;;  %v2599_v33 = vand.u32 2147483648, %v5872_v7  ;;  %v1636_v17 = vadd.f32 %v1635_v28, %v5256_v25 }
 0x2fd   : > { %v2780_v31 = vadd.f32 %v2764_v30, %v6326_v16  ;;  %vm5940_vm11 = vcmp.eq.f32.partialorder %v2063_v18, 8.507059e+37  ;;  %v3804_v26 = vpop.eup %3803  ;;  %vm2594_vm12 = vweird.f32 %v3800_v61  ;;  %v2597_v6 = vand.u32 2147483647, %v5872_v7 }
 0x2fe   : > { %v2591_v19 = vmul.f32 %v3800_v61, %v2590_v46  ;;  %v3425_v49 = vmul.f32 -1.442695, %v1781_v44  ;;  %v3806_v12 = vpop.eup %3805  ;;  %v5954_v22 = vadd.f32 1.0, %v3804_v26  ;;  %v1685_v27 = vadd.f32 %v1684_v41, %v1636_v17 }
 0x2ff   : > { %2844 = vst [vmem:[%s4072_s22 + $0x48] sm:$0xff] %v2780_v31  ;;  %v2366_v21 = vsel %vm5949_vm13, %v6325_v10, %v2362_v52  ;;  %v2367_v62 = vand.u32 2147483647, %v5417_v5  ;;  %v3808_v36 = vpop.eup %3807  ;;  %vm2593_vm14 = vweird.f32 %v5872_v7  ;;  %v2765_v0 = vmul.f32 %v3806_v12, %v5671_v35  ;;  %v6333_v7 = vld [vmem:[#allocation13_spill] sm:$0xff]  ;;  %v1687_v42 = vpop.f32.mrf.mxu2 }
 0x300   : > { %v2592_v39 = vadd.f32 %v3800_v61, %v2591_v19  ;;  %3811 = vpow2.f32 %v3425_v49  ;;  %v1733_v53 = vpop.f32.mrf.mxu3  ;;  %vm2595_vm15 = vmor %vm2593_vm14, %vm2594_vm12  ;;  %v2600_v23 = vor.u32 1.1754944e-38, %v2599_v33  ;;  %v2604_v13 = vmul.f32 %v3808_v36, %v5911_v45 }
 0x301   : > { %3813 = vrcp.f32 %v5954_v22  ;;  %v6331_v54 = vand.u32 2147483648, %v5417_v5  ;;  %vm2598_vm0 = vcmp.eq.f32.partialorder %v2597_v6, 8.507059e+37  ;;  %v5968_v18 = vadd.f32 %v2765_v0, %v5673_v32 }
 0x302   : > { %v2596_v55 = vsel %vm2595_vm15, %v3800_v61, %v2592_v39  ;;  %v6332_v35 = vsub.f32 1.0, %v5553_v4  ;;  %v3810_v9 = vpop.eup %3809  ;;  %v2605_v30 = vsub.f32 1.0, %v2604_v13  ;;  %3815 = vtanh.f32 %v1685_v27  ;;  %v1638_v17 = vpop.f32.mrf.mxu1 }
 0x303   : > { %v2370_v63 = vor.u32 1.1754944e-38, %v6331_v54  ;;  %v2601_v56 = vsel %vm2598_vm0, %v2600_v23, %v2596_v55  ;;  %v1734_v38 = vadd.f32 %v1733_v53, %v5322_v29  ;;  %3817 = vtanh.f32 %v5870_v48  ;;  %2845 = vst [vmem:[%s4072_s22 + $0x50] sm:$0xff] %v5968_v18  ;;  %v6335_v53 = vld [vmem:[#allocation12_spill] sm:$0xff] }
 0x304   : > { %v2072_v2 = vmul.f32 %v6333_v7, %v6332_v35  ;;  %v2810_v37 = vmul.f32 %v3810_v9, %v2601_v56  ;;  %v2614_v5 = vand.u32 2147483648, %v5911_v45  ;;  %vm2368_vm1 = vcmp.eq.f32.partialorder %v2367_v62, 8.507059e+37  ;;  %v2736_v62 = vld [vmem:[%s4062_s30 + $0x68] sm:$0xff] }
 0x305   : > { %v2606_v32 = vmul.f32 %v3808_v36, %v2605_v30  ;;  %vm2609_vm2 = vweird.f32 %v3808_v36  ;;  %v2612_v4 = vand.u32 2147483647, %v5911_v45  ;;  %v1783_v61 = vadd.f32 %v1782_v11, %v1734_v38  ;;  %v1785_v11 = vpop.f32.mrf.mxu0 }
 0x306   : > { %v3812_v10 = vpop.eup %3811  ;;  %2826 = vst [vmem:[%s4067_s12 + $0x38] sm:$0xff] %v2810_v37  ;;  %v5982_v52 = vsel %vm5940_vm11, %v2066_v1, %v2062_v40  ;;  %v2371_v46 = vsel %vm2368_vm1, %v2370_v63, %v2366_v21  ;;  %v5985_v44 = vadd.f32 %v6333_v7, %v2072_v2  ;;  %vm2075_vm3 = vweird.f32 %v6333_v7 }
 0x307   : > { %v5988_v48 = vpop.eup %3813  ;;  %v2607_v28 = vadd.f32 %v3808_v36, %v2606_v32  ;;  %vm2608_vm4 = vweird.f32 %v5911_v45  ;;  %v5991_v33 = vadd.f32 1.0, %v3812_v10  ;;  %v3426_v16 = vmul.f32 -1.442695, %v1783_v61  ;;  %v6334_v45 = vld [vmem:[#allocation10_spill] sm:$0xff]  ;;  %v1689_v61 = vpop.f32.mrf.mxu2 }
 0x308   : > { %vm2610_vm6 = vmor %vm2608_vm4, %vm2609_vm2  ;;  %v2615_v40 = vor.u32 1.1754944e-38, %v2614_v5  ;;  %3819 = vtanh.f32 %v2780_v31  ;;  %v2619_v1 = vmul.f32 %v5988_v48, %v5954_v22  ;;  %v1639_v41 = vadd.f32 %v1638_v17, %v5256_v25  ;;  %v1736_v26 = vpop.f32.mrf.mxu3  ;;  %v3816_v19 = vpop.eup %3815 }
 0x309   : > { %v2611_v6 = vsel %vm2610_vm6, %v3808_v36, %v2607_v28  ;;  %vm2613_vm5 = vcmp.eq.f32.partialorder %v2612_v4, 8.507059e+37  ;;  %3821 = vrcp.f32 %v5991_v33  ;;  %v2078_v49 = vand.u32 2147483647, %v6334_v45  ;;  %v3818_v47 = vpop.eup %3817 }
 0x30a   : > { %v2616_v12 = vsel %vm2613_vm5, %v2615_v40, %v2611_v6  ;;  %v2620_v27 = vsub.f32 1.0, %v2619_v1  ;;  %v2627_v31 = vand.u32 2147483647, %v5954_v22  ;;  %v2766_v21 = vmul.f32 %v3816_v19, %v5767_v20  ;;  %v1640_v38 = vpop.f32.mrf.mxu1 }
 0x30b   : > { %v2811_v39 = vmul.f32 %v3818_v47, %v2616_v12  ;;  %v2629_v0 = vand.u32 2147483648, %v5954_v22  ;;  %3823 = vpow2.f32 %v3426_v16  ;;  %v1688_v36 = vadd.f32 %v1687_v42, %v1639_v41 }
 0x30c   : > { %vm2378_vm7 = vweird.f32 %v6335_v53  ;;  %v2621_v23 = vmul.f32 %v5988_v48, %v2620_v27  ;;  %vm2624_vm8 = vweird.f32 %v5988_v48  ;;  %v6007_v13 = vadd.f32 %v2766_v21, %v5891_v14 }
 0x30d   : > { %v1737_v54 = vadd.f32 %v1736_v26, %v5322_v29  ;;  %2827 = vst [vmem:[%s4067_s12 + $0x40] sm:$0xff] %v2811_v39  ;;  %3825 = vtanh.f32 %v1688_v36  ;;  %v6011_v20 = vmul.f32 %v2736_v62, %v2371_v46  ;;  %vm2074_vm9 = vweird.f32 %v6334_v45 }
 0x30e   : > { %v2080_v63 = vand.u32 2147483648, %v6334_v45  ;;  %v3820_v55 = vpop.eup %3819  ;;  %v2622_v35 = vadd.f32 %v5988_v48, %v2621_v23  ;;  %vm2623_vm10 = vweird.f32 %v5954_v22  ;;  %2846 = vst [vmem:[%s4072_s22 + $0x58] sm:$0xff] %v6007_v13  ;;  %vm6021_vm11 = vmor %vm2074_vm9, %vm2075_vm3  ;;  %v6027_v9 = vadd.f32 %v5597_v59, %v5682_v15  ;;  %v1787_v22 = vpop.f32.mrf.mxu0 }
 0x30f   : > { %v1786_v2 = vadd.f32 %v1785_v11, %v1737_v54  ;;  %v3822_v56 = vpop.eup %3821  ;;  %vm2625_vm12 = vmor %vm2623_vm10, %vm2624_vm8  ;;  %v2630_v30 = vor.u32 1.1754944e-38, %v2629_v0  ;;  %v2077_v37 = vsel %vm6021_vm11, %v6333_v7, %v5985_v44  ;;  %vm6035_vm13 = vcmp.eq.f32.partialorder %v2078_v49, 8.507059e+37  ;;  %v1692_v36 = vpop.f32.mrf.mxu2 }
 0x310   : > { %vm2379_vm14 = vweird.f32 %v5597_v59  ;;  %v2626_v15 = vsel %vm2625_vm12, %v5988_v48, %v2622_v35  ;;  %vm2628_vm15 = vcmp.eq.f32.partialorder %v2627_v31, 8.507059e+37  ;;  %v2634_v32 = vmul.f32 %v3822_v56, %v5991_v33  ;;  %v1738_v10 = vpop.f32.mrf.mxu3 }
 0x311   : > { %v3427_v4 = vmul.f32 -1.442695, %v1786_v2  ;;  %v3824_v46 = vpop.eup %3823  ;;  %v2631_v28 = vsel %vm2628_vm15, %v2630_v30, %v2626_v15  ;;  %v1641_v16 = vadd.f32 %v1640_v38, %v5256_v25  ;;  %v1739_v7 = vadd.f32 %v1738_v10, %v5322_v29  ;;  %vm6056_vm1 = vmor %vm2378_vm7, %vm2379_vm14 }
 0x312   : > { %v2081_v44 = vor.u32 1.1754944e-38, %v2080_v63  ;;  %v2812_v17 = vmul.f32 %v3820_v55, %v2631_v28  ;;  %v2635_v11 = vsub.f32 1.0, %v2634_v32  ;;  %v6044_v40 = vadd.f32 1.0, %v3824_v46  ;;  %v1643_v21 = vpop.f32.mrf.mxu1 }
 0x313   : > { %3827 = vpow2.f32 %v3427_v4  ;;  %v3826_v48 = vpop.eup %3825  ;;  %v2644_v1 = vand.u32 2147483648, %v5991_v33  ;;  %v1690_v41 = vadd.f32 %v1689_v61, %v1641_v16  ;;  %v1788_v42 = vadd.f32 %v1787_v22, %v1739_v7 }
 0x314   : > { %3829 = vtanh.f32 %v5968_v18  ;;  %2828 = vst [vmem:[%s4067_s12 + $0x48] sm:$0xff] %v2812_v17  ;;  %v2636_v26 = vmul.f32 %v3822_v56, %v2635_v11  ;;  %vm2639_vm0 = vweird.f32 %v3822_v56  ;;  %v2642_v19 = vand.u32 2147483647, %v5991_v33 }
 0x315   : > { %3831 = vrcp.f32 %v6044_v40  ;;  %v2767_v6 = vmul.f32 %v3826_v48, %v5900_v50  ;;  %v3428_v45 = vmul.f32 -1.442695, %v1788_v42  ;;  %v2382_v49 = vand.u32 2147483647, %v6335_v53 }
 0x316   : > { %3833 = vtanh.f32 %v1690_v41  ;;  %vm2393_vm2 = vweird.f32 %v5599_v3  ;;  %v2637_v47 = vadd.f32 %v3822_v56, %v2636_v26  ;;  %vm2638_vm3 = vweird.f32 %v5991_v33  ;;  %v1790_v34 = vpop.f32.mrf.mxu0 }
 0x317   : > { %v6065_v50 = vsel %vm6035_vm13, %v2081_v44, %v2077_v37  ;;  %v2381_v12 = vsel %vm6056_vm1, %v5597_v59, %v6027_v9  ;;  %vm2640_vm4 = vmor %vm2638_vm3, %vm2639_vm0  ;;  %v2645_v27 = vor.u32 1.1754944e-38, %v2644_v1  ;;  %v6072_v31 = vadd.f32 %v2767_v6, %v5920_v43  ;;  %v1694_v44 = vpop.f32.mrf.mxu2 }
 0x318   : > { %3835 = vpow2.f32 %v3428_v45  ;;  %v2087_v33 = vmul.f32 %v5614_v8, %v2086_v60  ;;  %v2641_v39 = vsel %vm2640_vm4, %v3822_v56, %v2637_v47  ;;  %vm2643_vm6 = vcmp.eq.f32.partialorder %v2642_v19, 8.507059e+37  ;;  %v1741_v54 = vpop.f32.mrf.mxu3  ;;  %v2737_v56 = vld [vmem:[%s4062_s30 + $0x70] sm:$0xff] }
 0x319   : > { %v3828_v62 = vpop.eup %3827  ;;  %v1644_v0 = vadd.f32 %v1643_v21, %v5256_v25  ;;  %v6342_v59 = vand.u32 2147483648, %v6335_v53  ;;  %v2646_v43 = vsel %vm2643_vm6, %v2645_v27, %v2641_v39  ;;  %2847 = vst [vmem:[%s4072_s22 + $0x60] sm:$0xff] %v6072_v31  ;;  %vm2383_vm5 = vcmp.eq.f32.partialorder %v2382_v49, 8.507059e+37 }
 0x31a   : > { %v3830_v63 = vpop.eup %3829  ;;  %v6082_v55 = vadd.f32 1.0, %v3828_v62  ;;  %v1742_v60 = vadd.f32 %v1741_v54, %v5322_v29  ;;  %vm2089_vm7 = vweird.f32 %v5532_v51  ;;  %v6090_v38 = vadd.f32 %v5614_v8, %v2087_v33  ;;  %v1645_v16 = vpop.f32.mrf.mxu1 }
 0x31b   : > { %v2385_v23 = vor.u32 1.1754944e-38, %v6342_v59  ;;  %v3832_v35 = vpop.eup %3831  ;;  %v2813_v2 = vmul.f32 %v3830_v63, %v2646_v43  ;;  %v1693_v14 = vadd.f32 %v1692_v36, %v1644_v0  ;;  %vm2090_vm8 = vweird.f32 %v5614_v8 }
 0x31c   : > { %v3834_v53 = vpop.eup %3833  ;;  %v2649_v30 = vmul.f32 %v3832_v35, %v6044_v40  ;;  %3837 = vrcp.f32 %v6082_v55  ;;  %v6097_v37 = vadd.f32 %v5657_v24, %v5783_v58  ;;  %vm2394_vm9 = vweird.f32 %v5657_v24  ;;  %vm6112_vm10 = vmor %vm2089_vm7, %vm2090_vm8 }
 0x31d   : > { %v2386_v9 = vsel %vm2383_vm5, %v2385_v23, %v2381_v12  ;;  %2829 = vst [vmem:[%s4067_s12 + $0x50] sm:$0xff] %v2813_v2  ;;  %v2768_v22 = vmul.f32 %v3834_v53, %v5982_v52  ;;  %3839 = vtanh.f32 %v1693_v14  ;;  %v1791_v4 = vadd.f32 %v1790_v34, %v1742_v60  ;;  %vm6121_vm12 = vmor %vm2393_vm2, %vm2394_vm9  ;;  %v2738_v2 = vld [vmem:[%s4062_s30 + $0x78] sm:$0xff] }
 0x31e   : > { %v3836_v5 = vpop.eup %3835  ;;  %3841 = vtanh.f32 %v6007_v13  ;;  %v2650_v15 = vsub.f32 1.0, %v2649_v30  ;;  %v2753_v32 = vmul.f32 %v2737_v56, %v2386_v9  ;;  %v2657_v61 = vand.u32 2147483647, %v6044_v40  ;;  %v1792_v49 = vpop.f32.mrf.mxu0 }
 0x31f   : > { %v2659_v10 = vand.u32 2147483648, %v6044_v40  ;;  %v6104_v52 = vadd.f32 %v2768_v22, %v6011_v20  ;;  %v6106_v46 = vadd.f32 1.0, %v3836_v5  ;;  %vm2654_vm11 = vweird.f32 %v3832_v35 }
 0x320   : > { %v2651_v13 = vmul.f32 %v3832_v35, %v2650_v15  ;;  %v3429_v28 = vmul.f32 -1.442695, %v1791_v4  ;;  %v2093_v7 = vand.u32 2147483647, %v5532_v51  ;;  %vm2653_vm13 = vweird.f32 %v6044_v40  ;;  %v1743_v1 = vpop.f32.mrf.mxu3 }
 0x321   : > { %2848 = vst [vmem:[%s4072_s22 + $0x68] sm:$0xff] %v6104_v52  ;;  %v2092_v17 = vsel %vm6112_vm10, %v5614_v8, %v6090_v38  ;;  %v2095_v11 = vand.u32 2147483648, %v5532_v51  ;;  %v2396_v48 = vsel %vm6121_vm12, %v5657_v24, %v6097_v37  ;;  %3843 = vrcp.f32 %v6106_v46  ;;  %vm2655_vm14 = vmor %vm2653_vm13, %vm2654_vm11 }
 0x322   : > { %v3838_v41 = vpop.eup %3837  ;;  %v2652_v42 = vadd.f32 %v3832_v35, %v2651_v13  ;;  %v1646_v40 = vadd.f32 %v1645_v16, %v5256_v25  ;;  %v1744_v26 = vadd.f32 %v1743_v1, %v5322_v29  ;;  %vm2658_vm15 = vcmp.eq.f32.partialorder %v2657_v61, 8.507059e+37 }
 0x323   : > { %v3840_v19 = vpop.eup %3839  ;;  %v2660_v8 = vor.u32 1.1754944e-38, %v2659_v10  ;;  %v2664_v51 = vmul.f32 %v3838_v41, %v6082_v55  ;;  %v2397_v6 = vand.u32 2147483647, %v5599_v3  ;;  %3845 = vpow2.f32 %v3429_v28 }
 0x324   : > { %v3842_v45 = vpop.eup %3841  ;;  %v2656_v24 = vsel %vm2655_vm14, %v3832_v35, %v2652_v42  ;;  %v2769_v18 = vmul.f32 %v3840_v19, %v6065_v50  ;;  %v1695_v47 = vadd.f32 %v1694_v44, %v1646_v40  ;;  %3847 = vtanh.f32 %v6072_v31 }
 0x325   : > { %v2661_v25 = vsel %vm2658_vm15, %v2660_v8, %v2656_v24  ;;  %v2665_v29 = vsub.f32 1.0, %v2664_v51  ;;  %v1793_v12 = vadd.f32 %v1792_v49, %v1744_v26  ;;  %v2674_v21 = vand.u32 2147483648, %v6082_v55 }
 0x326   : > { %v2814_v27 = vmul.f32 %v3842_v45, %v2661_v25  ;;  %v2785_v33 = vadd.f32 %v2769_v18, %v2753_v32  ;;  %3849 = vtanh.f32 %v1695_v47  ;;  %vm2669_vm0 = vweird.f32 %v3838_v41 }
 0x327   : > { %v2666_v62 = vmul.f32 %v3838_v41, %v2665_v29  ;;  %v2672_v39 = vand.u32 2147483647, %v6082_v55  ;;  %v3430_v50 = vmul.f32 -1.442695, %v1793_v12  ;;  %v3844_v0 = vpop.eup %3843  ;;  %vm2094_vm1 = vcmp.eq.f32.partialorder %v2093_v7, 8.507059e+37 }
 0x328   : > { %2830 = vst [vmem:[%s4067_s12 + $0x58] sm:$0xff] %v2814_v27  ;;  %v2096_v36 = vor.u32 1.1754944e-38, %v2095_v11  ;;  %vm2398_vm2 = vcmp.eq.f32.partialorder %v2397_v6, 8.507059e+37  ;;  %v2400_v31 = vor.u32 1.1754944e-38, %v2399_v57  ;;  %vm2668_vm3 = vweird.f32 %v6082_v55 }
 0x329   : > { %v2667_v59 = vadd.f32 %v3838_v41, %v2666_v62  ;;  %v2679_v23 = vmul.f32 %v3844_v0, %v6106_v46  ;;  %2849 = vst [vmem:[%s4072_s22 + $0x70] sm:$0xff] %v2785_v33  ;;  %3851 = vpow2.f32 %v3430_v50  ;;  %v3846_v54 = vpop.eup %3845  ;;  %vm2670_vm4 = vmor %vm2668_vm3, %vm2669_vm0  ;;  %v2675_v63 = vor.u32 1.1754944e-38, %v2674_v21 }
 0x32a   : > { %v2097_v43 = vsel %vm2094_vm1, %v2096_v36, %v2092_v17  ;;  %v2401_v34 = vsel %vm2398_vm2, %v2400_v31, %v2396_v48  ;;  %v3848_v60 = vpop.eup %3847  ;;  %vm2673_vm6 = vcmp.eq.f32.partialorder %v2672_v39, 8.507059e+37  ;;  %v2481_v57 = vadd.f32 1.0, %v3846_v54 }
 0x32b   : > { %v2671_v35 = vsel %vm2670_vm4, %v3838_v41, %v2667_v59  ;;  %v2680_v3 = vsub.f32 1.0, %v2679_v23  ;;  %3853 = vtanh.f32 %v6104_v52  ;;  %v2687_v55 = vand.u32 2147483647, %v6106_v46 }
 0x32c   : > { %v3850_v14 = vpop.eup %3849  ;;  %v2676_v9 = vsel %vm2673_vm6, %v2675_v63, %v2671_v35  ;;  %v2689_v56 = vand.u32 2147483648, %v6106_v46  ;;  %vm2684_vm5 = vweird.f32 %v3844_v0  ;;  %3855 = vrcp.f32 %v2481_v57 }
 0x32d   : > { %v2815_v53 = vmul.f32 %v3848_v60, %v2676_v9  ;;  %v2681_v30 = vmul.f32 %v3844_v0, %v2680_v3  ;;  %v2754_v38 = vmul.f32 %v2738_v2, %v2401_v34  ;;  %v2770_v22 = vmul.f32 %v3850_v14, %v2097_v43 }
 0x32e   : > { %vm2683_vm7 = vweird.f32 %v6106_v46  ;;  %v2690_v15 = vor.u32 1.1754944e-38, %v2689_v56  ;;  %vm2688_vm9 = vcmp.eq.f32.partialorder %v2687_v55, 8.507059e+37  ;;  %v2704_v7 = vand.u32 2147483648, %v2481_v57 }
 0x32f   : > { %v3852_v37 = vpop.eup %3851  ;;  %2831 = vst [vmem:[%s4067_s12 + $0x60] sm:$0xff] %v2815_v53  ;;  %v2682_v5 = vadd.f32 %v3844_v0, %v2681_v30  ;;  %vm2685_vm8 = vmor %vm2683_vm7, %vm2684_vm5  ;;  %v2786_v32 = vadd.f32 %v2770_v22, %v2754_v38  ;;  %v2702_v46 = vand.u32 2147483647, %v2481_v57  ;;  %vm2698_vm11 = vweird.f32 %v2481_v57 }
 0x330   : > { %v2482_v4 = vadd.f32 1.0, %v3852_v37  ;;  %v2705_v48 = vor.u32 1.1754944e-38, %v2704_v7 }
 0x331   : > { %v2686_v61 = vsel %vm2685_vm8, %v3844_v0, %v2682_v5  ;;  %v3854_v10 = vpop.eup %3853  ;;  %2850 = vst [vmem:[%s4072_s22 + $0x78] sm:$0xff] %v2786_v32  ;;  %vm2703_vm13 = vcmp.eq.f32.partialorder %v2702_v46, 8.507059e+37 }
 0x332   : > { %v2691_v52 = vsel %vm2688_vm9, %v2690_v15, %v2686_v61  ;;  %v3856_v58 = vpop.eup %3855  ;;  %3857 = vrcp.f32 %v2482_v4  ;;  %v2719_v26 = vand.u32 2147483648, %v2482_v4  ;;  %v2717_v51 = vand.u32 2147483647, %v2482_v4 }
 0x333   : > { %v2816_v13 = vmul.f32 %v3854_v10, %v2691_v52  ;;  %v2694_v28 = vmul.f32 %v3856_v58, %v2481_v57  ;;  %3859 = vtanh.f32 %v2785_v33  ;;  %vm2699_vm10 = vweird.f32 %v3856_v58 }
 0x334   : > { %vm2700_vm12 = vmor %vm2698_vm11, %vm2699_vm10  ;;  %3861 = vtanh.f32 %v2786_v32  ;;  %vm2713_vm15 = vweird.f32 %v2482_v4  ;;  %v2720_v45 = vor.u32 1.1754944e-38, %v2719_v26  ;;  %vm2718_vm1 = vcmp.eq.f32.partialorder %v2717_v51, 8.507059e+37 }
 0x335   : > { %2832 = vst [vmem:[%s4067_s12 + $0x68] sm:$0xff] %v2816_v13  ;;  %v2695_v16 = vsub.f32 1.0, %v2694_v28 }
 0x337   : > { %v2696_v20 = vmul.f32 %v3856_v58, %v2695_v16 }
 0x338   : > { %v3858_v44 = vpop.eup %3857 }
 0x339   : > { %v2697_v17 = vadd.f32 %v3856_v58, %v2696_v20  ;;  %v2709_v11 = vmul.f32 %v3858_v44, %v2482_v4  ;;  %v3860_v42 = vpop.eup %3859  ;;  %vm2714_vm14 = vweird.f32 %v3858_v44 }
 0x33a   : > { %vm2715_vm0 = vmor %vm2713_vm15, %vm2714_vm14  ;;  %v3862_v18 = vpop.eup %3861 }
 0x33b   : > { %v2701_v1 = vsel %vm2700_vm12, %v3856_v58, %v2697_v17  ;;  %v2710_v41 = vsub.f32 1.0, %v2709_v11 }
 0x33c   : > { %v2706_v40 = vsel %vm2703_vm13, %v2705_v48, %v2701_v1 }
 0x33d   : > { %v2817_v19 = vmul.f32 %v3860_v42, %v2706_v40  ;;  %v2711_v8 = vmul.f32 %v3858_v44, %v2710_v41 }
 0x33f   : > { %2833 = vst [vmem:[%s4067_s12 + $0x70] sm:$0xff] %v2817_v19  ;;  %v2712_v6 = vadd.f32 %v3858_v44, %v2711_v8 }
 0x341   : > { %v2716_v24 = vsel %vm2715_vm0, %v3858_v44, %v2712_v6 }
 0x342   : > { %v2721_v49 = vsel %vm2718_vm1, %v2720_v45, %v2716_v24 }
 0x343   : > { %v2818_v47 = vmul.f32 %v3862_v18, %v2721_v49 }
 0x345   : > { %2834 = vst [vmem:[%s4067_s12 + $0x78] sm:$0xff] %v2818_v47 }
 0x346 PF: > { %s19_s11 = sadd.s32 1, %s3918_s11   ;;  %s6347_s22 = sld [smem:[#allocation4_spill]] }
 0x347   : > { %p16_p0 = scmp.ge.s32.totalorder %s19_s11, 11   ;;  %s6348_s15 = sld [smem:[#allocation5_spill]] }
 0x348   : > { %s6349_s27 = smov %s3898_s28  ;;  %s6350_s28 = smov %s4017_s18 }
 0x349   : > { %s6351_s29 = smov %s3910_s9  ;;  %s6352_s30 = smov %s3914_s10 }
 0x34a   :  { %18 = sbr.rel (!%p16_p0) target bundleno = 6 (0x6), region = 153 }
 0x34c   : > { %s6353_s9 = smov %s6347_s22 }
 0x34d   : > { %s6354_s10 = smov %s6348_s15 }

</bundles_post_ra>
